<compile_context>
chip_gen: v7x
topology: tpu7x:2x2x1
jax: 0.10.0
libtpu: 0.0.40
codegen_flags: <defaults>
</compile_context>

<pallas_src>
import functools
import math

import jax
import jax.numpy as jnp
from jax.experimental import pallas as pl
from jax.experimental.pallas import tpu as pltpu

N_EMBD = 512
HIDDEN = 4 * N_EMBD  # 2048
LN_EPS = 1e-5


def _gelu_exact(x_f32):
    # nn.GELU() default is the exact (erf-based) GELU.
    return 0.5 * x_f32 * (1.0 + jax.lax.erf(x_f32 / math.sqrt(2.0)))


def _reward_head_kernel(h_ref, gamma_ref, beta_ref, w1_ref, b1_ref, w2t_ref,
                        b2_ref, o_ref, acc_ref, *, inv_seq_len):
    s_idx = pl.program_id(1)

    # ---- init the running f32 sequence-sum accumulator ----
    @pl.when(s_idx == 0)
    def _():
        acc_ref[...] = jnp.zeros_like(acc_ref)

    # ---- streaming partial sum over this sequence tile, done on the MXU ----
    # ones[b,1,s] @ h[b,s,d] -> psum[b,1,d]; bf16 operands, f32 MXU accumulate.
    # This keeps the hot loop free of VALU cast+add work (important on v7x where
    # DMA at 3.2 TB/s would otherwise become co-critical with the VPU).
    tb, ts = h_ref.shape[0], h_ref.shape[1]
    ones_lhs = jnp.ones((tb, 1, ts), dtype=h_ref.dtype)
    psum = jnp.einsum("bqs,bsd->bqd", ones_lhs, h_ref[...],
                      preferred_element_type=jnp.float32)          # [TB, 1, D]
    acc_ref[...] += psum[:, 0, :]                                  # [TB, D] f32

    # ---- epilogue: LN -> GELU -> Linear -> GELU -> Linear (last seq step) ----
    @pl.when(s_idx == pl.num_programs(1) - 1)
    def _():
        f32 = jnp.float32
        # Mean, emitted as bf16 to match torch's `.to(torch.bfloat16)`.
        x = (acc_ref[...] * inv_seq_len).astype(jnp.bfloat16).astype(f32)

        # LayerNorm(512): stats in f32, output rounded to bf16 (bf16 module).
        mu = jnp.mean(x, axis=-1, keepdims=True)
        var = jnp.mean(jnp.square(x - mu), axis=-1, keepdims=True)
        xn = (x - mu) * jax.lax.rsqrt(var + LN_EPS)
        y = (xn * gamma_ref[...].astype(f32) + beta_ref[...].astype(f32))
        y = y.astype(jnp.bfloat16)

        # GELU -> Linear(512, 2048) on the MXU with f32 accumulation.
        y = _gelu_exact(y.astype(f32)).astype(jnp.bfloat16)
        z = jnp.dot(y, w1_ref[...], preferred_element_type=f32)    # [TB, 2048]
        z = (z + b1_ref[...].astype(f32)).astype(jnp.bfloat16)

        # GELU -> Linear(2048, 1) as a lane-dense VPU multiply-reduce
        # (w2 stored transposed, [1, 2048]) -- avoids an N=1 MXU pass.
        z = _gelu_exact(z.astype(f32))
        w2 = w2t_ref[...].astype(f32)                              # [1, 2048]
        out = jnp.sum(z * w2, axis=-1, keepdims=True)              # [TB, 1]
        out = out + b2_ref[...].astype(f32)
        o_ref[...] = out.astype(o_ref.dtype)


def _vmem_capacity_bytes():
    """Physical VMEM of the local chip; conservative fallback if unknown."""
    try:
        info_fn = getattr(pltpu, "get_tpu_info", None)
        if info_fn is not None:
            cap = int(getattr(info_fn(), "vmem_capacity_bytes", 0) or 0)
            if cap > 0:
                return cap
    except Exception:
        pass
    return 64 << 20  # v7x per-TensorCore VMEM (smallest of v5e/v6e/v7x)


def _pick_batch_tile(B, max_tile=32):
    """Batch tile: multiple of 8 dividing B, capped so grid[0] >= 2 when possible."""
    if B < 16 or B % 8 != 0:
        return B                      # tiny / unaligned batch: single full tile
    cap = min(max_tile, B // 2)       # guarantee >= 2 batch steps (megacore)
    t = cap - cap % 8
    while t >= 8:
        if B % t == 0:
            return t
        t -= 8
    return B


def _pick_seq_tile(S, TB, tile_bytes, itemsize):
    """Largest multiple-of-16 seq tile dividing S under the per-step byte budget."""
    max_ts = max(16, tile_bytes // max(1, TB * N_EMBD * itemsize))
    if S <= max_ts:
        return S                      # full sequence in one step (no alignment needed)
    t = min(S - 1, max_ts)
    t -= t % 16                       # bf16 sublane packing: (16, 128) native tile
    while t >= 16:
        if S % t == 0:
            return t
        t -= 16
    return S                          # fallback: whole sequence in one step


def clm_reward_head(last_hidden_state, gamma, beta, w1, b1, w2t, b2):
    """last_hidden_state: [B, S, 512]; w1: [512, 2048] (in,out); w2t: [1, 2048]."""
    B, S, D = last_hidden_state.shape
    assert D == N_EMBD
    assert w1.shape == (N_EMBD, HIDDEN)
    assert w2t.shape == (1, HIDDEN)

    itemsize = jnp.dtype(last_hidden_state.dtype).itemsize

    # Per-generation sizing: scoped VMEM limit ~3/4 of physical (capped at 96 MiB),
    # streamed tile ~1/3 of that limit (double-buffered => 2/3, weights get the rest).
    vmem_limit = int(min(96 << 20, (3 * _vmem_capacity_bytes()) // 4))
    tile_bytes = int(min(32 << 20, vmem_limit // 3))

    TB = _pick_batch_tile(B)
    TS = _pick_seq_tile(S, TB, tile_bytes, itemsize)
    grid = (B // TB, S // TS)

    const = lambda shape: pl.BlockSpec(shape, lambda b, s, _s=len(shape): (0,) * _s)

    kernel = functools.partial(_reward_head_kernel, inv_seq_len=1.0 / float(S))

    cost = pl.CostEstimate(
        flops=2 * B * S * D + 2 * B * D * HIDDEN + 2 * B * HIDDEN + 10 * B * D,
        transcendentals=B * (D + HIDDEN),        # erf in the two GELUs
        bytes_accessed=B * S * D * itemsize
        + (D * HIDDEN + 2 * HIDDEN + 2 * D + 1) * 2
        + B * 2,
    )

    return pl.pallas_call(
        kernel,
        out_shape=jax.ShapeDtypeStruct((B, 1), jnp.bfloat16),
        grid_spec=pltpu.PrefetchScalarGridSpec(
            num_scalar_prefetch=0,
            grid=grid,
            in_specs=[
                pl.BlockSpec((TB, TS, D), lambda b, s: (b, s, 0)),  # streamed activations
                const((1, D)),        # LayerNorm gamma
                const((1, D)),        # LayerNorm beta
                const((D, HIDDEN)),   # Linear1 weight [in, out]
                const((1, HIDDEN)),   # Linear1 bias
                const((1, HIDDEN)),   # Linear2 weight, transposed (lane-dense)
                const((1, 1)),        # Linear2 bias
            ],
            out_specs=pl.BlockSpec((TB, 1), lambda b, s: (b, 0)),
            scratch_shapes=[pltpu.VMEM((TB, D), jnp.float32)],      # running seq-sum
        ),
        compiler_params=pltpu.CompilerParams(
            dimension_semantics=("parallel", "arbitrary"),
            vmem_limit_bytes=vmem_limit,
        ),
        cost_estimate=cost,
    )(last_hidden_state, gamma, beta, w1, b1, w2t, b2)


def _reference_forward(h, gamma, beta, w1, b1, w2t, b2):
    """Pure-JAX f32 reference mirroring the torch bf16 module boundaries."""
    f32 = jnp.float32
    x = jnp.mean(h.astype(f32), axis=1).astype(jnp.bfloat16).astype(f32)
    mu = jnp.mean(x, axis=-1, keepdims=True)
    var = jnp.mean(jnp.square(x - mu), axis=-1, keepdims=True)
    y = (x - mu) / jnp.sqrt(var + LN_EPS) * gamma.astype(f32) + beta.astype(f32)
    y = _gelu_exact(y)
    z = y @ w1.astype(f32) + b1.astype(f32)
    z = _gelu_exact(z)
    return jnp.sum(z * w2t.astype(f32), axis=-1, keepdims=True) + b2.astype(f32)


def init_params(key):
    k1, k2, k3, k4 = jax.random.split(key, 4)
    gamma = jnp.ones((1, N_EMBD), jnp.bfloat16)
    beta = jnp.zeros((1, N_EMBD), jnp.bfloat16)
    w1 = (0.02 * jax.random.normal(k1, (N_EMBD, HIDDEN))).astype(jnp.bfloat16)
    b1 = (0.02 * jax.random.normal(k2, (1, HIDDEN))).astype(jnp.bfloat16)
    # Linear2 weight stored transposed / lane-dense: [1, 2048] (== PyTorch [1, 2048]).
    w2t = (0.02 * jax.random.normal(k3, (1, HIDDEN))).astype(jnp.bfloat16)
    b2 = (0.02 * jax.random.normal(k4, (1, 1))).astype(jnp.bfloat16)
    return gamma, beta, w1, b1, w2t, b2


if __name__ == "__main__":
    key = jax.random.PRNGKey(0)
    k_h, k_p = jax.random.split(key)

    B, S = 2, 8
    # Stand-in for base_model(...).hidden_states[-1] (bf16, hidden size 512).
    last_hidden_state = jax.random.normal(k_h, (B, S, N_EMBD)).astype(jnp.bfloat16)

    params = init_params(k_p)
    logits = clm_reward_head(last_hidden_state, *params)
    jax.block_until_ready(logits)

    assert logits.shape == (B, 1) and logits.dtype == jnp.bfloat16
    ref = _reference_forward(last_hidden_state, *params)
    err = float(jnp.max(jnp.abs(logits.astype(jnp.float32) - ref)))
    assert err < 1e-1, f"max abs err vs reference: {err}"
    print("KERNEL_OK")
</pallas_src>

<mosaic_0001>
module attributes {stable_mosaic.version = 11 : i64} {
  func.func @_reward_head_kernel(%arg0: i32, %arg1: i32, %arg2: memref<2x8x512xbf16, #tpu.memory_space<vmem>>, %arg3: memref<1x512xbf16, #tpu.memory_space<vmem>>, %arg4: memref<1x512xbf16, #tpu.memory_space<vmem>>, %arg5: memref<512x2048xbf16, #tpu.memory_space<vmem>>, %arg6: memref<1x2048xbf16, #tpu.memory_space<vmem>>, %arg7: memref<1x2048xbf16, #tpu.memory_space<vmem>>, %arg8: memref<1x1xbf16, #tpu.memory_space<vmem>>, %arg9: memref<2x1xbf16, #tpu.memory_space<vmem>>, %arg10: memref<2x512xf32, #tpu.memory_space<vmem>>) attributes {dimension_semantics = [#tpu.dimension_semantics<parallel>, #tpu.dimension_semantics<arbitrary>], iteration_bounds = array<i64: 1, 1>, scalar_prefetch = 0 : i64, scratch_operands = 1 : i64, tpu.core_type = #tpu.core_type<tc>, window_params = [{transform_indices = @transform_0, window_bounds = array<i64: 2, 8, 512>}, {pipeline_mode = #tpu.pipeline_mode<synchronous>, transform_indices = @transform_1, window_bounds = array<i64: 1, 512>}, {pipeline_mode = #tpu.pipeline_mode<synchronous>, transform_indices = @transform_2, window_bounds = array<i64: 1, 512>}, {pipeline_mode = #tpu.pipeline_mode<synchronous>, transform_indices = @transform_3, window_bounds = array<i64: 512, 2048>}, {pipeline_mode = #tpu.pipeline_mode<synchronous>, transform_indices = @transform_4, window_bounds = array<i64: 1, 2048>}, {pipeline_mode = #tpu.pipeline_mode<synchronous>, transform_indices = @transform_5, window_bounds = array<i64: 1, 2048>}, {pipeline_mode = #tpu.pipeline_mode<synchronous>, transform_indices = @transform_6, window_bounds = array<i64: 1, 1>}, {transform_indices = @transform_7, window_bounds = array<i64: 2, 1>}]} {
    %c0_i32 = arith.constant 0 : i32
    %0 = arith.cmpi eq, %arg1, %c0_i32 : i32
    %1 = arith.extui %0 : i1 to i32
    %c0_i32_0 = arith.constant 0 : i32
    %2 = arith.cmpi ne, %1, %c0_i32_0 : i32
    scf.if %2 {
      %cst_10 = arith.constant 0.000000e+00 : f32
      %13 = vector.broadcast %cst_10 : f32 to vector<2x512xf32>
      %c0_11 = arith.constant 0 : index
      %c0_12 = arith.constant 0 : index
      %14 = vector.load %arg10[%c0_11, %c0_12] : memref<2x512xf32, #tpu.memory_space<vmem>>, vector<2x512xf32>
      tpu.vector_store %arg10[%c0_11, %c0_12], %13 {strides = array<i32>} : memref<2x512xf32, #tpu.memory_space<vmem>>, vector<2x512xf32>,
    } else {
    }
    %cst = arith.constant 1.000000e+00 : bf16
    %3 = vector.broadcast %cst : bf16 to vector<2x1x8xbf16>
    %c0 = arith.constant 0 : index
    %c0_1 = arith.constant 0 : index
    %c0_2 = arith.constant 0 : index
    %4 = vector.load %arg2[%c0, %c0_1, %c0_2] : memref<2x8x512xbf16, #tpu.memory_space<vmem>>, vector<2x8x512xbf16>
    "tpu.trace_start"() <{level = 10 : i32, message = "bqs,bsd->bqd"}> : () -> ()
    %cst_3 = arith.constant dense<0.000000e+00> : vector<2x1x512xf32>
    %5 = tpu.matmul %3, %4, %cst_3 {dimension_numbers = #tpu.dot_dimension_numbers<[2], [1], [1], [2], [0, 0, 0, 1, 1, 2], [0], [0]>} : vector<2x1x8xbf16>, vector<2x8x512xbf16>, vector<2x1x512xf32> -> vector<2x1x512xf32>
    "tpu.trace_stop"() : () -> ()
    %c0_4 = arith.constant 0 : index
    %c0_5 = arith.constant 0 : index
    %6 = vector.load %arg10[%c0_4, %c0_5] : memref<2x512xf32, #tpu.memory_space<vmem>>, vector<2x512xf32>
    %7 = vector.shape_cast %5 : vector<2x1x512xf32> to vector<2x512xf32>
    %8 = arith.addf %6, %7 : vector<2x512xf32>
    %c0_6 = arith.constant 0 : index
    %c0_7 = arith.constant 0 : index
    %9 = vector.load %arg10[%c0_6, %c0_7] : memref<2x512xf32, #tpu.memory_space<vmem>>, vector<2x512xf32>
    tpu.vector_store %arg10[%c0_6, %c0_7], %8 {strides = array<i32>} : memref<2x512xf32, #tpu.memory_space<vmem>>, vector<2x512xf32>,
    %c0_i32_8 = arith.constant 0 : i32
    %10 = arith.cmpi eq, %arg1, %c0_i32_8 : i32
    %11 = arith.extui %10 : i1 to i32
    %c0_i32_9 = arith.constant 0 : i32
    %12 = arith.cmpi ne, %11, %c0_i32_9 : i32
    scf.if %12 {
      %c0_10 = arith.constant 0 : index
      %c0_11 = arith.constant 0 : index
      %13 = vector.load %arg10[%c0_10, %c0_11] : memref<2x512xf32, #tpu.memory_space<vmem>>, vector<2x512xf32>
      %cst_12 = arith.constant 1.250000e-01 : f32
      %14 = vector.broadcast %cst_12 : f32 to vector<2x512xf32>
      %15 = arith.mulf %13, %14 : vector<2x512xf32>
      %16 = arith.truncf %15 : vector<2x512xf32> to vector<2x512xbf16>
      %17 = arith.extf %16 : vector<2x512xbf16> to vector<2x512xf32>
      %cst_13 = arith.constant dense<0.000000e+00> : vector<2xf32>
      %18 = vector.multi_reduction <add>, %17, %cst_13 [1] : vector<2x512xf32> to vector<2xf32>
      %19 = vector.shape_cast %18 : vector<2xf32> to vector<2x1xf32>
      %cst_14 = arith.constant 5.120000e+02 : f32
      %20 = vector.broadcast %cst_14 : f32 to vector<2x1xf32>
      %21 = arith.divf %19, %20 : vector<2x1xf32>
      %22 = vector.broadcast %21 : vector<2x1xf32> to vector<2x512xf32>
      %23 = arith.subf %17, %22 : vector<2x512xf32>
      %24 = arith.mulf %23, %23 : vector<2x512xf32>
      %cst_15 = arith.constant dense<0.000000e+00> : vector<2xf32>
      %25 = vector.multi_reduction <add>, %24, %cst_15 [1] : vector<2x512xf32> to vector<2xf32>
      %26 = vector.shape_cast %25 : vector<2xf32> to vector<2x1xf32>
      %cst_16 = arith.constant 5.120000e+02 : f32
      %27 = vector.broadcast %cst_16 : f32 to vector<2x1xf32>
      %28 = arith.divf %26, %27 : vector<2x1xf32>
      %29 = vector.broadcast %21 : vector<2x1xf32> to vector<2x512xf32>
      %30 = arith.subf %17, %29 : vector<2x512xf32>
      %cst_17 = arith.constant 9.99999974E-6 : f32
      %31 = vector.broadcast %cst_17 : f32 to vector<2x1xf32>
      %32 = arith.addf %28, %31 : vector<2x1xf32>
      %33 = math.rsqrt %32 : vector<2x1xf32>
      %34 = vector.broadcast %33 : vector<2x1xf32> to vector<2x512xf32>
      %35 = arith.mulf %30, %34 : vector<2x512xf32>
      %c0_18 = arith.constant 0 : index
      %c0_19 = arith.constant 0 : index
      %36 = vector.load %arg3[%c0_18, %c0_19] : memref<1x512xbf16, #tpu.memory_space<vmem>>, vector<1x512xbf16>
      %37 = arith.extf %36 : vector<1x512xbf16> to vector<1x512xf32>
      %38 = vector.broadcast %37 : vector<1x512xf32> to vector<2x512xf32>
      %39 = arith.mulf %35, %38 : vector<2x512xf32>
      %c0_20 = arith.constant 0 : index
      %c0_21 = arith.constant 0 : index
      %40 = vector.load %arg4[%c0_20, %c0_21] : memref<1x512xbf16, #tpu.memory_space<vmem>>, vector<1x512xbf16>
      %41 = arith.extf %40 : vector<1x512xbf16> to vector<1x512xf32>
      %42 = vector.broadcast %41 : vector<1x512xf32> to vector<2x512xf32>
      %43 = arith.addf %39, %42 : vector<2x512xf32>
      %44 = arith.truncf %43 : vector<2x512xf32> to vector<2x512xbf16>
      %45 = arith.extf %44 : vector<2x512xbf16> to vector<2x512xf32>
      %cst_22 = arith.constant 5.000000e-01 : f32
      %46 = vector.broadcast %cst_22 : f32 to vector<2x512xf32>
      %47 = arith.mulf %46, %45 : vector<2x512xf32>
      %cst_23 = arith.constant 1.41421354 : f32
      %48 = vector.broadcast %cst_23 : f32 to vector<2x512xf32>
      %49 = arith.divf %45, %48 : vector<2x512xf32>
      %50 = math.erf %49 : vector<2x512xf32>
      %cst_24 = arith.constant 1.000000e+00 : f32
      %51 = vector.broadcast %cst_24 : f32 to vector<2x512xf32>
      %52 = arith.addf %51, %50 : vector<2x512xf32>
      %53 = arith.mulf %47, %52 : vector<2x512xf32>
      %54 = arith.truncf %53 : vector<2x512xf32> to vector<2x512xbf16>
      %c0_25 = arith.constant 0 : index
      %c0_26 = arith.constant 0 : index
      %55 = vector.load %arg5[%c0_25, %c0_26] : memref<512x2048xbf16, #tpu.memory_space<vmem>>, vector<512x2048xbf16>
      %cst_27 = arith.constant dense<0.000000e+00> : vector<2x2048xf32>
      %56 = tpu.matmul %54, %55, %cst_27 {dimension_numbers = #tpu.dot_dimension_numbers<[1], [0], [0], [1], [0, 0, 1, 1], [], []>} : vector<2x512xbf16>, vector<512x2048xbf16>, vector<2x2048xf32> -> vector<2x2048xf32>
      %c0_28 = arith.constant 0 : index
      %c0_29 = arith.constant 0 : index
      %57 = vector.load %arg6[%c0_28, %c0_29] : memref<1x2048xbf16, #tpu.memory_space<vmem>>, vector<1x2048xbf16>
      %58 = arith.extf %57 : vector<1x2048xbf16> to vector<1x2048xf32>
      %59 = vector.broadcast %58 : vector<1x2048xf32> to vector<2x2048xf32>
      %60 = arith.addf %56, %59 : vector<2x2048xf32>
      %61 = arith.truncf %60 : vector<2x2048xf32> to vector<2x2048xbf16>
      %62 = arith.extf %61 : vector<2x2048xbf16> to vector<2x2048xf32>
      %cst_30 = arith.constant 5.000000e-01 : f32
      %63 = vector.broadcast %cst_30 : f32 to vector<2x2048xf32>
      %64 = arith.mulf %63, %62 : vector<2x2048xf32>
      %cst_31 = arith.constant 1.41421354 : f32
      %65 = vector.broadcast %cst_31 : f32 to vector<2x2048xf32>
      %66 = arith.divf %62, %65 : vector<2x2048xf32>
      %67 = math.erf %66 : vector<2x2048xf32>
      %cst_32 = arith.constant 1.000000e+00 : f32
      %68 = vector.broadcast %cst_32 : f32 to vector<2x2048xf32>
      %69 = arith.addf %68, %67 : vector<2x2048xf32>
      %70 = arith.mulf %64, %69 : vector<2x2048xf32>
      %c0_33 = arith.constant 0 : index
      %c0_34 = arith.constant 0 : index
      %71 = vector.load %arg7[%c0_33, %c0_34] : memref<1x2048xbf16, #tpu.memory_space<vmem>>, vector<1x2048xbf16>
      %72 = arith.extf %71 : vector<1x2048xbf16> to vector<1x2048xf32>
      %73 = vector.broadcast %72 : vector<1x2048xf32> to vector<2x2048xf32>
      %74 = arith.mulf %70, %73 : vector<2x2048xf32>
      %cst_35 = arith.constant dense<0.000000e+00> : vector<2xf32>
      %75 = vector.multi_reduction <add>, %74, %cst_35 [1] : vector<2x2048xf32> to vector<2xf32>
      %76 = vector.shape_cast %75 : vector<2xf32> to vector<2x1xf32>
      %c0_36 = arith.constant 0 : index
      %c0_37 = arith.constant 0 : index
      %77 = vector.load %arg8[%c0_36, %c0_37] : memref<1x1xbf16, #tpu.memory_space<vmem>>, vector<1x1xbf16>
      %78 = arith.extf %77 : vector<1x1xbf16> to vector<1x1xf32>
      %79 = vector.broadcast %78 : vector<1x1xf32> to vector<2x1xf32>
      %80 = arith.addf %76, %79 : vector<2x1xf32>
      %81 = arith.truncf %80 : vector<2x1xf32> to vector<2x1xbf16>
      %c0_38 = arith.constant 0 : index
      %c0_39 = arith.constant 0 : index
      %82 = vector.load %arg9[%c0_38, %c0_39] : memref<2x1xbf16, #tpu.memory_space<vmem>>, vector<2x1xbf16>
      tpu.vector_store %arg9[%c0_38, %c0_39], %81 {strides = array<i32>} : memref<2x1xbf16, #tpu.memory_space<vmem>>, vector<2x1xbf16>,
    } else {
    }
    return
  }
  func.func @transform_0(%arg0: i32, %arg1: i32) -> (i32, i32, i32) {
    %c0_i32 = arith.constant 0 : i32
    %c0_i32_0 = arith.constant 0 : i32
    return %arg0, %arg1, %c0_i32 : i32, i32, i32
  }
  func.func @transform_1(%arg0: i32, %arg1: i32) -> (i32, i32) {
    %c0_i32 = arith.constant 0 : i32
    %c0_i32_0 = arith.constant 0 : i32
    %c0_i32_1 = arith.constant 0 : i32
    return %c0_i32, %c0_i32_0 : i32, i32
  }
  func.func @transform_2(%arg0: i32, %arg1: i32) -> (i32, i32) {
    %c0_i32 = arith.constant 0 : i32
    %c0_i32_0 = arith.constant 0 : i32
    %c0_i32_1 = arith.constant 0 : i32
    return %c0_i32, %c0_i32_0 : i32, i32
  }
  func.func @transform_3(%arg0: i32, %arg1: i32) -> (i32, i32) {
    %c0_i32 = arith.constant 0 : i32
    %c0_i32_0 = arith.constant 0 : i32
    %c0_i32_1 = arith.constant 0 : i32
    return %c0_i32, %c0_i32_0 : i32, i32
  }
  func.func @transform_4(%arg0: i32, %arg1: i32) -> (i32, i32) {
    %c0_i32 = arith.constant 0 : i32
    %c0_i32_0 = arith.constant 0 : i32
    %c0_i32_1 = arith.constant 0 : i32
    return %c0_i32, %c0_i32_0 : i32, i32
  }
  func.func @transform_5(%arg0: i32, %arg1: i32) -> (i32, i32) {
    %c0_i32 = arith.constant 0 : i32
    %c0_i32_0 = arith.constant 0 : i32
    %c0_i32_1 = arith.constant 0 : i32
    return %c0_i32, %c0_i32_0 : i32, i32
  }
  func.func @transform_6(%arg0: i32, %arg1: i32) -> (i32, i32) {
    %c0_i32 = arith.constant 0 : i32
    %c0_i32_0 = arith.constant 0 : i32
    %c0_i32_1 = arith.constant 0 : i32
    return %c0_i32, %c0_i32_0 : i32, i32
  }
  func.func @transform_7(%arg0: i32, %arg1: i32) -> (i32, i32) {
    %c0_i32 = arith.constant 0 : i32
    %c0_i32_0 = arith.constant 0 : i32
    return %arg0, %c0_i32 : i32, i32
  }
}

</mosaic_0001>

<bundles_post_ra>
// kernel: tpu_custom_call.1
= control target key start
LH: loop header
LB: loop body
LE: loop exit
PB: predicated region body
PF: predicated region fallthrough
CT: control target
= control target key end

     0   :  { %s6056_s0 = inlined_call_operand.hbm [shape: bf16[2,8,512], index: 0, kind: input, shape index: {}]   ;;  %s6057_s1 = inlined_call_operand.hbm [shape: bf16[1,512], index: 1, kind: input, shape index: {}]   ;;  %s6058_s2 = inlined_call_operand.hbm [shape: bf16[1,512], index: 2, kind: input, shape index: {}]   ;;  %s6059_s3 = inlined_call_operand.hbm [shape: bf16[512,2048], index: 3, kind: input, shape index: {}]   ;;  %s6060_s4 = inlined_call_operand.hbm [shape: bf16[1,2048], index: 4, kind: input, shape index: {}]   ;;  %s6061_s5 = inlined_call_operand.hbm [shape: bf16[1,2048], index: 5, kind: input, shape index: {}]   ;;  %s6062_s6 = inlined_call_operand.<no memory space> [shape: bf16[1,1], index: 6, kind: input, shape index: {}]   ;;  %s6063_s7 = inlined_call_operand.hbm [shape: bf16[2,1], index: 7, kind: output, shape index: {}]  }
   0x1   :  { %v12_v0 = vstv %s6062_s6 }
   0x2   :  { %13 = vst [vmem:[#allocation3] sm:$0x1] %v12_v0 }
   0x3   :  { %14 = vsyncpa [#allocation5], 0 }
   0x4   :  { %15 = vsyncpa [#allocation8], 0 }
   0x5   :  { %16 = vsyncpa [#allocation11], 0 }
   0x6   :  { %17 = vsyncpa [#allocation14], 0 }
   0x7   :  { %18 = vsyncpa [#allocation6], 0  ;;  %s5605_s26 = smov [#allocation7]   ;;  %s5606_s28 = smov [#allocation10]  }
   0x8   :  { %s37_s27 = sshll.u32 %s5605_s26, 4  ;;  %s56_s29 = sshll.u32 %s5606_s28, 4  ;;  %s38_s27 = int_to_ptr.vmem [resolvable:$true] %s37_s27  ;;  %s5662_s29 = int_to_ptr.vmem [resolvable:$true] %s56_s29 }
   0x9   :  { %s5441_s9 = scalar_lea.hbm %s6057_s1, 64 }
   0xa   :  { %p5442_p0 = scmp.ne.s32.totalorder %s6057_s1, %s5441_s9  ;;  %p5445_p1 = scmp.lt.u32.totalorder %s5441_s9, %s6057_s1 }
   0xc   :  { %p5447_p2 = pnand %p5445_p1, %p5442_p0 }
   0xe   :  { %5450 = shalt.err (!%p5447_p2)
}
   0xf   :  { %s5451_s13 = scalar_lea.vmem %s38_s27, 64  ;;  %p5456_p4 = scmp.lt.s32.totalorder %s38_s27, %s38_s27 }
  0x10   :  { %p5452_p3 = scmp.ne.s32.totalorder %s38_s27, %s5451_s13  ;;  %p5457_p5 = scmp.lt.s32.totalorder %s5451_s13, %s5451_s13 }
  0x12   :  { %p5458_p6 = por %p5457_p5, %p5456_p4 }
  0x14   :  { %p5459_p7 = pnand %p5458_p6, %p5452_p3 }
  0x16   :  { %5462 = shalt.err (!%p5459_p7)
}
  0x17   :  { %40 = dma.hbm_to_vmem [thread:$0]  %s6057_s1, 64, %s38_s27, [#allocation8]  }
  0x18   :  { %s5463_s18 = scalar_lea.hbm %s6059_s3, 65536 }
  0x19   :  { %p5464_p8 = scmp.ne.s32.totalorder %s6059_s3, %s5463_s18  ;;  %p5467_p9 = scmp.lt.u32.totalorder %s5463_s18, %s6059_s3 }
  0x1b   :  { %p5469_p10 = pnand %p5467_p9, %p5464_p8 }
  0x1d   :  { %5472 = shalt.err (!%p5469_p10)
}
  0x1e   :  { %s5473_s23 = scalar_lea.vmem %s5662_s29, 65536  ;;  %p5478_p12 = scmp.lt.s32.totalorder %s5662_s29, %s5662_s29 }
  0x1f   :  { %p5474_p11 = scmp.ne.s32.totalorder %s5662_s29, %s5473_s23  ;;  %p5479_p13 = scmp.lt.s32.totalorder %s5473_s23, %s5473_s23 }
  0x21   :  { %p5480_p0 = por %p5479_p13, %p5478_p12 }
  0x23   :  { %p5481_p1 = pnand %p5480_p0, %p5474_p11 }
  0x25   :  { %5484 = shalt.err (!%p5481_p1)
}
  0x26   :  { %s5607_s1 = smov 1024   ;;  %s5608_s24 = smov 64  }
  0x27   :  { %62 = dma.hbm_to_vmem [thread:$0]  %s6059_s3, 65536, %s5662_s29, [#allocation11], %s5607_s1, %s5607_s1, %s5608_s24  }
  0x28   :  { %s5609_s27 = smov [#allocation4]   ;;  %s5485_s9 = scalar_lea.hbm %s6056_s0, 512 }
  0x29   :  { %s24_s28 = sshll.u32 %s5609_s27, 4  ;;  %p5486_p2 = scmp.ne.s32.totalorder %s6056_s0, %s5485_s9  ;;  %s25_s28 = int_to_ptr.vmem [resolvable:$true] %s24_s28 }
  0x2a   :  { %p5489_p3 = scmp.lt.u32.totalorder %s5485_s9, %s6056_s0 }
  0x2c   :  { %p5491_p4 = pnand %p5489_p3, %p5486_p2 }
  0x2e   :  { %5494 = shalt.err (!%p5491_p4)
}
  0x2f   :  { %s5495_s13 = scalar_lea.vmem %s25_s28, 512  ;;  %p5500_p6 = scmp.lt.s32.totalorder %s25_s28, %s25_s28 }
  0x30   :  { %p5496_p5 = scmp.ne.s32.totalorder %s25_s28, %s5495_s13  ;;  %p5501_p7 = scmp.lt.s32.totalorder %s5495_s13, %s5495_s13 }
  0x32   :  { %p5502_p8 = por %p5501_p7, %p5500_p6 }
  0x34   :  { %p5503_p9 = pnand %p5502_p8, %p5496_p5 }
  0x36   :  { %5506 = shalt.err (!%p5503_p9)
}
  0x37   :  { %s5610_s3 = smov 256   ;;  %s5611_s29 = smov 16  }
  0x38   :  { %30 = dma.hbm_to_vmem [thread:$0]  %s6056_s0, 512, %s25_s28, [#allocation5], %s5610_s3, %s5610_s3, %s5611_s29  }
  0x39   :  { %s5612_s16 = smov [#allocation9]   ;;  %s5613_s18 = smov [#allocation12]  }
  0x3a   :  { %s47_s17 = sshll.u32 %s5612_s16, 4  ;;  %s69_s19 = sshll.u32 %s5613_s18, 4  ;;  %s48_s17 = int_to_ptr.vmem [resolvable:$true] %s47_s17  ;;  %s70_s19 = int_to_ptr.vmem [resolvable:$true] %s69_s19 }
  0x3b   :  { %s5507_s22 = scalar_lea.hbm %s6058_s2, 64 }
  0x3c   :  { %p5508_p10 = scmp.ne.s32.totalorder %s6058_s2, %s5507_s22  ;;  %p5511_p11 = scmp.lt.u32.totalorder %s5507_s22, %s6058_s2 }
  0x3e   :  { %p5513_p12 = pnand %p5511_p11, %p5508_p10 }
  0x40   :  { %5516 = shalt.err (!%p5513_p12)
}
  0x41   :  { %s5517_s0 = scalar_lea.vmem %s48_s17, 64  ;;  %p5522_p0 = scmp.lt.s32.totalorder %s48_s17, %s48_s17 }
  0x42   :  { %p5518_p13 = scmp.ne.s32.totalorder %s48_s17, %s5517_s0  ;;  %p5523_p1 = scmp.lt.s32.totalorder %s5517_s0, %s5517_s0 }
  0x44   :  { %p5524_p2 = por %p5523_p1, %p5522_p0 }
  0x46   :  { %p5525_p3 = pnand %p5524_p2, %p5518_p13 }
  0x48   :  { %5528 = shalt.err (!%p5525_p3)
}
  0x49   :  { %50 = dma.hbm_to_vmem [thread:$0]  %s6058_s2, 64, %s48_s17, [#allocation8]  }
  0x4a   :  { %s5529_s8 = scalar_lea.hbm %s6060_s4, 256 }
  0x4b   :  { %p5530_p4 = scmp.ne.s32.totalorder %s6060_s4, %s5529_s8  ;;  %p5533_p5 = scmp.lt.u32.totalorder %s5529_s8, %s6060_s4 }
  0x4d   :  { %p5535_p6 = pnand %p5533_p5, %p5530_p4 }
  0x4f   :  { %5538 = shalt.err (!%p5535_p6)
}
  0x50   :  { %s5539_s12 = scalar_lea.vmem %s70_s19, 256  ;;  %p5544_p8 = scmp.lt.s32.totalorder %s70_s19, %s70_s19 }
  0x51   :  { %p5540_p7 = scmp.ne.s32.totalorder %s70_s19, %s5539_s12  ;;  %p5545_p9 = scmp.lt.s32.totalorder %s5539_s12, %s5539_s12 }
  0x53   :  { %p5546_p10 = por %p5545_p9, %p5544_p8 }
  0x55   :  { %p5547_p11 = pnand %p5546_p10, %p5540_p7 }
  0x57   :  { %5550 = shalt.err (!%p5547_p11)
}
  0x58   :  { %72 = dma.hbm_to_vmem [thread:$0]  %s6060_s4, 256, %s70_s19, [#allocation11]  }
  0x59   :  { %s5614_s3 = smov [#allocation13]   ;;  %s5551_s16 = scalar_lea.hbm %s6061_s5, 256 }
  0x5a   :  { %s79_s29 = sshll.u32 %s5614_s3, 4  ;;  %p5552_p12 = scmp.ne.s32.totalorder %s6061_s5, %s5551_s16  ;;  %s80_s29 = int_to_ptr.vmem [resolvable:$true] %s79_s29 }
  0x5b   :  { %p5555_p13 = scmp.lt.u32.totalorder %s5551_s16, %s6061_s5 }
  0x5d   :  { %p5557_p0 = pnand %p5555_p13, %p5552_p12 }
  0x5f   :  { %5560 = shalt.err (!%p5557_p0)
}
  0x60   :  { %s5561_s22 = scalar_lea.vmem %s80_s29, 256  ;;  %p5566_p2 = scmp.lt.s32.totalorder %s80_s29, %s80_s29 }
  0x61   :  { %p5562_p1 = scmp.ne.s32.totalorder %s80_s29, %s5561_s22  ;;  %p5567_p3 = scmp.lt.s32.totalorder %s5561_s22, %s5561_s22 }
  0x63   :  { %p5568_p4 = por %p5567_p3, %p5566_p2 }
  0x65   :  { %p5569_p5 = pnand %p5568_p4, %p5562_p1 }
  0x67   :  { %5572 = shalt.err (!%p5569_p5)
}
  0x68   :  { %82 = dma.hbm_to_vmem [thread:$0]  %s6061_s5, 256, %s80_s29, [#allocation14]  }
  0x69   :  { %5595 = dma.done.wait [#allocation5], 512  }
  0x6a   :  { %5596 = vsyncadd [#allocation5], 4294966784 }
  0x6b   :  { %5597 = dma.done.wait [#allocation8], 128  }
  0x6c   :  { %5598 = vsyncadd [#allocation8], 4294967168 }
  0x6d   :  { %5599 = dma.done.wait [#allocation11], 65792  }
  0x6e   :  { %5600 = vsyncadd [#allocation11], 4294901504 }
  0x6f   :  { %5601 = dma.done.wait [#allocation14], 256  }
  0x70   :  { %5602 = vsyncadd [#allocation14], 4294967040  ;;  %v5615_v1 = vmov 0   ;;  %v110_v2 = vld [vmem:[#allocation4] sm:$0xff]  ;;  %vm128_vm0 = vcmask 1043456   ;;  %v111_v3 = vld [vmem:[#allocation4 + $0x8] sm:$0xff]  ;;  %v341_v21 = vlaneseq }
  0x71   :  { %173 = vmatprep.mubr.bf16.mxu0 %v5615_v1  ;;  %214 = vmatprep.mubr.bf16.mxu1 %v5615_v1  ;;  %v112_v4 = vld [vmem:[#allocation4 + $0x10] sm:$0xff]  ;;  %v4802_v5 = vcombine.high %v110_v2, %v110_v2  ;;  %v4804_v6 = vcombine.high %v111_v3, %v111_v3  ;;  %v4801_v7 = vcombine.low %v110_v2, %v110_v2  ;;  %v113_v9 = vld [vmem:[#allocation4 + $0x18] sm:$0xff]  ;;  %vm124_vm1 = vcmask 64512   ;;  %s5618_s5 = smov [#allocation15]  }
  0x72   :  { %v4803_v8 = vcombine.low %v111_v3, %v111_v3  ;;  %v4810_v10 = vcombine.high %v112_v4, %v112_v4  ;;  %v4812_v11 = vcombine.high %v113_v9, %v113_v9  ;;  %v4809_v12 = vcombine.low %v112_v4, %v112_v4  ;;  %s4789_s23 = sshll.u32 %s5618_s5, 4  ;;  %s4790_s23 = int_to_ptr.vmem [resolvable:$true] %s4789_s23 }
  0x73   :  { %v4811_v13 = vcombine.low %v113_v9, %v113_v9  ;;  %4805 = vmatprep.subr.msk.bf16.mxu0 %vm128_vm0, %v4802_v5  ;;  %4807 = vmatprep.subr.msk.bf16.mxu1 %vm128_vm0, %v4804_v6  ;;  %v130_v14 = vsel %vm128_vm0, %v4801_v7, 0  ;;  %v5616_v18 = vmov 1065369472   ;;  %v5617_v19 = vmov 1983009808   ;;  %s5573_s1 = scalar_lea.vmem %s4790_s23, 16  ;;  %p5578_p7 = scmp.lt.s32.totalorder %s4790_s23, %s4790_s23 }
  0x74   :  { %v136_v15 = vsel %vm128_vm0, %v4803_v8, 0  ;;  %142 = vmatpush1.bf16.msra.mxu0 %v130_v14  ;;  %v234_v16 = vsel %vm128_vm0, %v4809_v12, 0  ;;  %v339_v20 = vunpack.c.l.s4 %v5617_v19  ;;  %v5749_v23 = vshrl.u32 %v341_v21, 7  ;;  %v584_v14 = vld [vmem:[#allocation10 + $0x40] sm:$0xff]  ;;  %p5574_p6 = scmp.ne.s32.totalorder %s4790_s23, %s5573_s1  ;;  %s5577_s24 = scalar_lea.vmem %s4790_s23, 32 }
  0x75   :  { %183 = vmatpush1.bf16.msra.mxu1 %v136_v15  ;;  %4813 = vmatprep.subr.msk.bf16.mxu0 %vm128_vm0, %v4810_v10  ;;  %v240_v17 = vsel %vm128_vm0, %v4811_v13, 0  ;;  %vm375_vm2 = vcmask 1041409   ;;  %vm377_vm3 = vcmask 1043459   ;;  %vm379_vm4 = vcmask 1045509   ;;  %v576_v13 = vld [vmem:[#allocation10] sm:$0xff]  ;;  %v577_v15 = vld [vmem:[#allocation10 + $0x8] sm:$0xff]  ;;  %p5579_p8 = scmp.lt.s32.totalorder %s5577_s24, %s5573_s1 }
  0x76   :  { %4815 = vmatprep.subr.msk.bf16.mxu1 %vm128_vm0, %v4812_v11  ;;  %v340_v22 = vunpack.c.0.s8 %v339_v20  ;;  %vm381_vm5 = vcmask 1047559   ;;  %vm421_vm6 = vcmask 1041408   ;;  %v592_v19 = vld [vmem:[#allocation10 + $0x80] sm:$0xff]  ;;  %vm4781_vm7 = vcmask 0  }
  0x77   :  { %4806 = vmatmul.mubr.msk.bf16.vlgmr.msra.gmra.mrb[0].mxu0 %vm124_vm1, %v5616_v18  ;;  %v600_v20 = vld [vmem:[#allocation10 + $0xc0] sm:$0xff]  ;;  %p5580_p9 = por %p5579_p8, %p5578_p7 }
  0x78   :  { %4808 = vmatmul.mubr.msk.bf16.vlgmr.msra.gmra.mrb[0].mxu1 %vm124_vm1, %v5616_v18  ;;  %246 = vmatpush1.bf16.msra.mxu0 %v234_v16  ;;  %v343_v26 = vsub.s32 %v340_v22, %v5749_v23  ;;  %v4817_v16 = vcombine.low %v576_v13, %v584_v14 }
  0x79   :  { %287 = vmatpush1.bf16.msra.mxu1 %v240_v17  ;;  %277 = vmatprep.mubr.bf16.mxu0 %v5615_v1  ;;  %v4818_v17 = vcombine.high %v576_v13, %v584_v14  ;;  %p5581_p10 = pnand %p5580_p9, %p5574_p6 }
  0x7a   :  { %318 = vmatprep.mubr.bf16.mxu1 %v5615_v1 }
  0x7b   :  { %3802 = vmatprep.subr.bf16.mxu0 %v4818_v17  ;;  %v673_v17 = vld [vmem:[#allocation10 + $0x308] sm:$0xff] }
  0x7f   :  { %4814 = vmatmul.mubr.msk.bf16.vlgmr.msra.gmra.mrb[4].mxu0 %vm124_vm1, %v5616_v18 }
  0x80   :  { %4816 = vmatmul.mubr.msk.bf16.vlgmr.msra.gmra.mrb[4].mxu1 %vm124_vm1, %v5616_v18  ;;  %v585_v18 = vld [vmem:[#allocation10 + $0x48] sm:$0xff]  ;;  %3803 = vmatpush1.bf16.msra.mxu0 %v4817_v16  ;;  %v680_v16 = vld [vmem:[#allocation10 + $0x340] sm:$0xff] }
  0x81   :  { %v4819_v21 = vcombine.low %v577_v15, %v585_v18  ;;  %v4820_v22 = vcombine.high %v577_v15, %v585_v18  ;;  %v672_v15 = vld [vmem:[#allocation10 + $0x300] sm:$0xff] }
  0x82   :  { %v4914_v18 = vcombine.high %v672_v15, %v680_v16 }
  0x83   :  { %3884 = vmatprep.subr.bf16.mxu1 %v4820_v22 }
  0x84   :  { %3885 = vmatpush1.bf16.msra.mxu1 %v4819_v21 }
 0x14a   :  { %v175_v24 = vpop.f32.mrb[0].mxu0 }
 0x14b   :  { %v216_v25 = vpop.f32.mrb[0].mxu1  ;;  %v177_v27 = vpop.f32.mrb[1].mxu0 }
 0x14c   :  { %v218_v28 = vpop.f32.mrb[1].mxu1  ;;  %v336_v29 = vcombine.low %v175_v24, %v177_v27  ;;  %v179_v31 = vpop.f32.mrb[2].mxu0  ;;  %v4834_v24 = vcombine.high %v592_v19, %v600_v20  ;;  %v608_v27 = vld [vmem:[#allocation10 + $0x100] sm:$0xff] }
 0x14d   :  { %v337_v30 = vcombine.low %v216_v25, %v218_v28  ;;  %v220_v32 = vpop.f32.mrb[2].mxu1  ;;  %v180_v33 = vpop.f32.mrb[3].mxu0  ;;  %v593_v25 = vld [vmem:[#allocation10 + $0x88] sm:$0xff] }
 0x14e   :  { %v221_v34 = vpop.f32.mrb[3].mxu1  ;;  %v344_v35 = vrot.slane %v336_v29, %v343_v26  ;;  %v616_v29 = vld [vmem:[#allocation10 + $0x140] sm:$0xff]  ;;  %v617_v31 = vld [vmem:[#allocation10 + $0x148] sm:$0xff]  ;;  %v4833_v32 = vcombine.low %v592_v19, %v600_v20  ;;  %3804 = vmatprep.subr.bf16.mxu0 %v4834_v24  ;;  %v4913_v20 = vcombine.low %v672_v15, %v680_v16 }
 0x14f   :  { %v351_v36 = vrot.slane %v337_v30, %v343_v26  ;;  %v609_v30 = vld [vmem:[#allocation10 + $0x108] sm:$0xff]  ;;  %v4850_v34 = vcombine.high %v608_v27, %v616_v29  ;;  %v688_v24 = vld [vmem:[#allocation10 + $0x380] sm:$0xff] }
 0x150   :  { %3805 = vmatpush1.bf16.msra.mxu0 %v4833_v32  ;;  %v681_v19 = vld [vmem:[#allocation10 + $0x348] sm:$0xff] }
 0x151   :  { %v352_v37 = vcombine.low %v344_v35, %v351_v36  ;;  %v4852_v35 = vcombine.high %v609_v30, %v617_v31  ;;  %v624_v36 = vld [vmem:[#allocation10 + $0x180] sm:$0xff]  ;;  %3806 = vmatprep.subr.bf16.mxu0 %v4850_v34  ;;  %v4915_v21 = vcombine.low %v673_v17, %v681_v19  ;;  %v4916_v22 = vcombine.high %v673_v17, %v681_v19 }
 0x152   :  { %v279_v38 = vpop.f32.mrb[4].mxu0  ;;  %v808_v19 = vld [vmem:[#allocation10 + $0x740] sm:$0xff] }
 0x153   :  { %v320_v39 = vpop.f32.mrb[4].mxu1  ;;  %v281_v40 = vpop.f32.mrb[5].mxu0 }
 0x154   :  { %v322_v41 = vpop.f32.mrb[5].mxu1  ;;  %v353_v42 = vcombine.low %v279_v38, %v281_v40  ;;  %v283_v44 = vpop.f32.mrb[6].mxu0  ;;  %v625_v38 = vld [vmem:[#allocation10 + $0x188] sm:$0xff]  ;;  %v4849_v40 = vcombine.low %v608_v27, %v616_v29 }
 0x155   :  { %v354_v43 = vcombine.low %v320_v39, %v322_v41  ;;  %v324_v45 = vpop.f32.mrb[6].mxu1  ;;  %v284_v46 = vpop.f32.mrb[7].mxu0  ;;  %v633_v39 = vld [vmem:[#allocation10 + $0x1c8] sm:$0xff]  ;;  %v4851_v41 = vcombine.low %v609_v30, %v617_v31  ;;  %v640_v44 = vld [vmem:[#allocation10 + $0x200] sm:$0xff] }
 0x156   :  { %v325_v47 = vpop.f32.mrb[7].mxu1  ;;  %v361_v48 = vrot.slane %v353_v42, %v343_v26  ;;  %v648_v45 = vld [vmem:[#allocation10 + $0x240] sm:$0xff]  ;;  %v641_v46 = vld [vmem:[#allocation10 + $0x208] sm:$0xff]  ;;  %3807 = vmatpush1.bf16.msra.mxu0 %v4849_v40 }
 0x157   :  { %v368_v49 = vrot.slane %v354_v43, %v343_v26  ;;  %v4868_v43 = vcombine.high %v625_v38, %v633_v39  ;;  %v649_v47 = vld [vmem:[#allocation10 + $0x248] sm:$0xff]  ;;  %v704_v30 = vld [vmem:[#allocation10 + $0x400] sm:$0xff] }
 0x158   :  { %v697_v29 = vld [vmem:[#allocation10 + $0x3c8] sm:$0xff]  ;;  %v712_v31 = vld [vmem:[#allocation10 + $0x440] sm:$0xff] }
 0x159   :  { %v369_v50 = vcombine.low %v361_v48, %v368_v49  ;;  %v4867_v49 = vcombine.low %v625_v38, %v633_v39  ;;  %v4946_v34 = vcombine.high %v704_v30, %v712_v31  ;;  %v720_v38 = vld [vmem:[#allocation10 + $0x480] sm:$0xff]  ;;  %v721_v40 = vld [vmem:[#allocation10 + $0x488] sm:$0xff] }
 0x15a   :  { %v728_v39 = vld [vmem:[#allocation10 + $0x4c0] sm:$0xff] }
 0x15b   :  { %v374_v51 = vrot.slane %v369_v50, 7  ;;  %v4882_v50 = vcombine.high %v640_v44, %v648_v45 }
 0x15d   :  { %v376_v52 = vsel %vm375_vm2, %v374_v51, %v352_v37  ;;  %v632_v37 = vld [vmem:[#allocation10 + $0x1c0] sm:$0xff] }
 0x15e   :  { %v378_v53 = vsel %vm377_vm3, %v374_v51, %v376_v52  ;;  %v4866_v42 = vcombine.high %v624_v36, %v632_v37  ;;  %v4865_v48 = vcombine.low %v624_v36, %v632_v37  ;;  %v4881_v52 = vcombine.low %v640_v44, %v648_v45  ;;  %v713_v36 = vld [vmem:[#allocation10 + $0x448] sm:$0xff] }
 0x15f   :  { %v380_v54 = vsel %vm379_vm4, %v374_v51, %v378_v53  ;;  %v4883_v53 = vcombine.low %v641_v46, %v649_v47  ;;  %v4962_v44 = vcombine.high %v720_v38, %v728_v39 }
 0x160   :  { %v382_v55 = vsel %vm381_vm5, %v374_v51, %v380_v54  ;;  %3808 = vmatprep.subr.bf16.mxu0 %v4866_v42  ;;  %v4884_v51 = vcombine.high %v641_v46, %v649_v47  ;;  %v4945_v42 = vcombine.low %v704_v30, %v712_v31  ;;  %v736_v46 = vld [vmem:[#allocation10 + $0x500] sm:$0xff]  ;;  %v825_v30 = vld [vmem:[#allocation10 + $0x7c8] sm:$0xff] }
 0x161   :  { %v390_v56 = vmul.f32 0.125, %v382_v55  ;;  %3809 = vmatpush1.bf16.msra.mxu0 %v4865_v48  ;;  %v744_v47 = vld [vmem:[#allocation10 + $0x540] sm:$0xff]  ;;  %v737_v48 = vld [vmem:[#allocation10 + $0x508] sm:$0xff] }
 0x162   :  { %3810 = vmatprep.subr.bf16.mxu0 %v4882_v50  ;;  %v4961_v50 = vcombine.low %v720_v38, %v728_v39  ;;  %v5794_v38 = vld [vmem:[#allocation10 + $0x840] sm:$0xff]  ;;  %v5796_v39 = vld [vmem:[#allocation10 + $0x808] sm:$0xff] }
 0x163   :  { %v392_v57 = vcombine.high %v390_v56, %v390_v56  ;;  %v399_v58 = vrot.slane %v390_v56, %v343_v26 }
 0x165   :  { %v406_v59 = vrot.slane %v392_v57, %v343_v26  ;;  %v407_v60 = vcombine.high %v399_v58, %v399_v58  ;;  %v413_v61 = vpack.c.bf16 %v399_v58, %v399_v58  ;;  %v601_v26 = vld [vmem:[#allocation10 + $0xc8] sm:$0xff]  ;;  %3811 = vmatpush1.bf16.msra.mxu0 %v4881_v52  ;;  %v4978_v52 = vcombine.high %v736_v46, %v744_v47 }
 0x166   :  { %v4836_v28 = vcombine.high %v593_v25, %v601_v26  ;;  %v4835_v33 = vcombine.low %v593_v25, %v601_v26  ;;  %v696_v25 = vld [vmem:[#allocation10 + $0x3c0] sm:$0xff]  ;;  %v689_v26 = vld [vmem:[#allocation10 + $0x388] sm:$0xff] }
 0x167   :  { %v408_v62 = vcombine.high %v406_v59, %v406_v59  ;;  %v414_v63 = vpack.c.bf16 %v407_v60, %v407_v60  ;;  %v415_v0 = vpack.c.bf16 %v406_v59, %v406_v59  ;;  %v5752_v1 = vunpack.c.l.bf16 %v413_v61 }
 0x168   :  { %3886 = vmatprep.subr.bf16.mxu1 %v4836_v28  ;;  %v4929_v27 = vcombine.low %v688_v24, %v696_v25  ;;  %v4930_v28 = vcombine.high %v688_v24, %v696_v25  ;;  %v4931_v32 = vcombine.low %v689_v26, %v697_v29 }
 0x169   :  { %v416_v2 = vpack.c.bf16 %v408_v62, %v408_v62  ;;  %v5754_v3 = vunpack.c.l.bf16 %v414_v63  ;;  %v5756_v4 = vunpack.c.l.bf16 %v415_v0  ;;  %v422_v6 = vsel %vm421_vm6, %v5752_v1, 0.0  ;;  %3887 = vmatpush1.bf16.msra.mxu1 %v4835_v33 }
 0x16a   :  { %3888 = vmatprep.subr.bf16.mxu1 %v4852_v35  ;;  %v4932_v33 = vcombine.high %v689_v26, %v697_v29  ;;  %v705_v35 = vld [vmem:[#allocation10 + $0x408] sm:$0xff] }
 0x16b   :  { %v5758_v5 = vunpack.c.l.bf16 %v416_v2  ;;  %v423_v7 = vsel %vm421_vm6, %v5754_v3, 0.0  ;;  %v425_v9 = vsel %vm421_vm6, %v5756_v4, 0.0  ;;  %v4948_v37 = vcombine.high %v705_v35, %v713_v36  ;;  %v817_v29 = vld [vmem:[#allocation10 + $0x788] sm:$0xff] }
 0x16c   :  { %v424_v8 = vadd.f32 %v423_v7, %v422_v6  ;;  %v656_v7 = vld [vmem:[#allocation10 + $0x280] sm:$0xff] }
 0x16d   :  { %v427_v11 = vsel %vm421_vm6, %v5758_v5, 0.0  ;;  %3889 = vmatpush1.bf16.msra.mxu1 %v4851_v41  ;;  %v729_v41 = vld [vmem:[#allocation10 + $0x4c8] sm:$0xff] }
 0x16e   :  { %v426_v10 = vadd.f32 %v425_v9, %v424_v8  ;;  %3890 = vmatprep.subr.bf16.mxu1 %v4868_v43  ;;  %v664_v8 = vld [vmem:[#allocation10 + $0x2c0] sm:$0xff]  ;;  %v657_v9 = vld [vmem:[#allocation10 + $0x288] sm:$0xff]  ;;  %v4947_v43 = vcombine.low %v705_v35, %v713_v36  ;;  %v4964_v45 = vcombine.high %v721_v40, %v729_v41  ;;  %v5059_v36 = vcombine.low %v817_v29, %v825_v30 }
 0x170   :  { %v428_v12 = vadd.f32 %v427_v11, %v426_v10  ;;  %v4898_v10 = vcombine.high %v656_v7, %v664_v8  ;;  %v665_v11 = vld [vmem:[#allocation10 + $0x2c8] sm:$0xff] }
 0x171   :  { %3891 = vmatpush1.bf16.msra.mxu1 %v4867_v49  ;;  %v4899_v13 = vcombine.low %v657_v9, %v665_v11  ;;  %v4900_v14 = vcombine.high %v657_v9, %v665_v11  ;;  %v745_v49 = vld [vmem:[#allocation10 + $0x548] sm:$0xff]  ;;  %v792_v11 = vld [vmem:[#allocation10 + $0x6c0] sm:$0xff] }
 0x172   :  { %429 = vadd.xlane.f32.xlu0 %v428_v12  ;;  %3892 = vmatprep.subr.bf16.mxu1 %v4884_v51  ;;  %v4897_v12 = vcombine.low %v656_v7, %v664_v8  ;;  %v4963_v51 = vcombine.low %v721_v40, %v729_v41  ;;  %v5800_v41 = vld [vmem:[#allocation10 + $0x848] sm:$0xff] }
 0x173   :  { %3812 = vmatprep.subr.bf16.mxu0 %v4898_v10  ;;  %v784_v10 = vld [vmem:[#allocation10 + $0x680] sm:$0xff] }
 0x174   :  { %3813 = vmatpush1.bf16.msra.mxu0 %v4897_v12  ;;  %v785_v12 = vld [vmem:[#allocation10 + $0x688] sm:$0xff]  ;;  %v5026_v16 = vcombine.high %v784_v10, %v792_v11 }
 0x175   :  { %3893 = vmatpush1.bf16.msra.mxu1 %v4883_v53  ;;  %3814 = vmatprep.subr.bf16.mxu0 %v4914_v18  ;;  %v4980_v53 = vcombine.high %v737_v48, %v745_v49  ;;  %v800_v18 = vld [vmem:[#allocation10 + $0x700] sm:$0xff] }
 0x176   :  { %3894 = vmatprep.subr.bf16.mxu1 %v4900_v14  ;;  %v5042_v25 = vcombine.high %v800_v18, %v808_v19  ;;  %v5041_v31 = vcombine.low %v800_v18, %v808_v19 }
 0x178   :  { %3815 = vmatpush1.bf16.msra.mxu0 %v4913_v20  ;;  %v801_v20 = vld [vmem:[#allocation10 + $0x708] sm:$0xff] }
 0x179   :  { %3895 = vmatpush1.bf16.msra.mxu1 %v4899_v13  ;;  %3816 = vmatprep.subr.bf16.mxu0 %v4930_v28  ;;  %v793_v13 = vld [vmem:[#allocation10 + $0x6c8] sm:$0xff]  ;;  %v824_v28 = vld [vmem:[#allocation10 + $0x7c0] sm:$0xff] }
 0x17a   :  { %3896 = vmatprep.subr.bf16.mxu1 %v4916_v22  ;;  %v5028_v17 = vcombine.high %v785_v12, %v793_v13  ;;  %v5025_v22 = vcombine.low %v784_v10, %v792_v11  ;;  %v5027_v24 = vcombine.low %v785_v12, %v793_v13 }
 0x17c   :  { %3817 = vmatpush1.bf16.msra.mxu0 %v4929_v27  ;;  %v816_v27 = vld [vmem:[#allocation10 + $0x780] sm:$0xff] }
 0x17d   :  { %3897 = vmatpush1.bf16.msra.mxu1 %v4915_v21  ;;  %3818 = vmatprep.subr.bf16.mxu0 %v4946_v34  ;;  %v809_v21 = vld [vmem:[#allocation10 + $0x748] sm:$0xff]  ;;  %v5060_v34 = vcombine.high %v817_v29, %v825_v30  ;;  %v5057_v35 = vcombine.low %v816_v27, %v824_v28 }
 0x17e   :  { %3898 = vmatprep.subr.bf16.mxu1 %v4932_v33  ;;  %v5044_v26 = vcombine.high %v801_v20, %v809_v21  ;;  %v5058_v33 = vcombine.high %v816_v27, %v824_v28 }
 0x180   :  { %3819 = vmatpush1.bf16.msra.mxu0 %v4945_v42 }
 0x181   :  { %3899 = vmatpush1.bf16.msra.mxu1 %v4931_v32  ;;  %3820 = vmatprep.subr.bf16.mxu0 %v4962_v44  ;;  %v5043_v32 = vcombine.low %v801_v20, %v809_v21  ;;  %v5076_v44 = vcombine.high %v5796_v39, %v5800_v41 }
 0x182   :  { %3900 = vmatprep.subr.bf16.mxu1 %v4948_v37  ;;  %v5792_v37 = vld [vmem:[#allocation10 + $0x800] sm:$0xff] }
 0x183   :  { %v5074_v40 = vcombine.high %v5792_v37, %v5794_v38  ;;  %v5073_v42 = vcombine.low %v5792_v37, %v5794_v38 }
 0x184   :  { %3821 = vmatpush1.bf16.msra.mxu0 %v4961_v50  ;;  %v5809_v50 = vsub.s32 0, %v5749_v23 }
 0x185   :  { %3901 = vmatpush1.bf16.msra.mxu1 %v4947_v43  ;;  %3822 = vmatprep.subr.bf16.mxu0 %v4978_v52  ;;  %v5075_v43 = vcombine.low %v5796_v39, %v5800_v41  ;;  %v5815_v52 = vsub.s32 4, %v5749_v23 }
 0x186   :  { %3902 = vmatprep.subr.bf16.mxu1 %v4964_v45 }
 0x189   :  { %3903 = vmatpush1.bf16.msra.mxu1 %v4963_v51  ;;  %v5812_v51 = vsub.s32 2, %v5749_v23 }
 0x18a   :  { %3904 = vmatprep.subr.bf16.mxu1 %v4980_v53  ;;  %v5818_v53 = vsub.s32 6, %v5749_v23 }
 0x1ff   :  { %v430_v54 = vpop.xlane.xlu0 %429 }
 0x200   :  { %v432_v55 = vmul.f32 0.001953125, %v430_v54  ;;  %v752_v54 = vld [vmem:[#allocation10 + $0x580] sm:$0xff] }
 0x202   :  { %v5769_v56 = vsub.f32 %v5752_v1, %v432_v55  ;;  %v5772_v57 = vsub.f32 %v5754_v3, %v432_v55  ;;  %v5775_v58 = vsub.f32 %v5756_v4, %v432_v55  ;;  %v5778_v59 = vsub.f32 %v5758_v5, %v432_v55  ;;  %v760_v55 = vld [vmem:[#allocation10 + $0x5c0] sm:$0xff] }
 0x204   :  { %v437_v60 = vmul.f32 %v5769_v56, %v5769_v56  ;;  %v438_v61 = vmul.f32 %v5772_v57, %v5772_v57  ;;  %v439_v62 = vmul.f32 %v5775_v58, %v5775_v58  ;;  %v440_v63 = vmul.f32 %v5778_v59, %v5778_v59 }
 0x206   :  { %v441_v0 = vsel %vm421_vm6, %v437_v60, 0.0  ;;  %v442_v1 = vsel %vm421_vm6, %v438_v61, 0.0  ;;  %v444_v3 = vsel %vm421_vm6, %v439_v62, 0.0  ;;  %v446_v5 = vsel %vm421_vm6, %v440_v63, 0.0  ;;  %v753_v60 = vld [vmem:[#allocation10 + $0x588] sm:$0xff] }
 0x207   :  { %v443_v2 = vadd.f32 %v442_v1, %v441_v0  ;;  %v761_v61 = vld [vmem:[#allocation10 + $0x5c8] sm:$0xff]  ;;  %v4977_v62 = vcombine.low %v736_v46, %v744_v47  ;;  %v4979_v63 = vcombine.low %v737_v48, %v745_v49  ;;  %v4994_v0 = vcombine.high %v752_v54, %v760_v55  ;;  %v457_v48 = vld [vmem:[#allocation7] sm:$0xf]  ;;  %v500_v49 = vld [vmem:[#allocation9] sm:$0xf] }
 0x208   :  { %v4996_v1 = vcombine.high %v753_v60, %v761_v61  ;;  %v4995_v7 = vcombine.low %v753_v60, %v761_v61 }
 0x209   :  { %v445_v4 = vadd.f32 %v444_v3, %v443_v2  ;;  %v768_v2 = vld [vmem:[#allocation10 + $0x600] sm:$0xff]  ;;  %3823 = vmatpush1.bf16.msra.mxu0 %v4977_v62  ;;  %3905 = vmatpush1.bf16.msra.mxu1 %v4979_v63 }
 0x20a   :  { %v776_v3 = vld [vmem:[#allocation10 + $0x640] sm:$0xff]  ;;  %3824 = vmatprep.subr.bf16.mxu0 %v4994_v0  ;;  %3906 = vmatprep.subr.bf16.mxu1 %v4996_v1 }
 0x20b   :  { %v447_v6 = vadd.f32 %v446_v5, %v445_v4  ;;  %v769_v4 = vld [vmem:[#allocation10 + $0x608] sm:$0xff]  ;;  %v5010_v8 = vcombine.high %v768_v2, %v776_v3  ;;  %v5009_v14 = vcombine.low %v768_v2, %v776_v3 }
 0x20c   :  { %v777_v5 = vld [vmem:[#allocation10 + $0x648] sm:$0xff] }
 0x20d   :  { %448 = vadd.xlane.f32.xlu0 %v447_v6  ;;  %v4993_v6 = vcombine.low %v752_v54, %v760_v55  ;;  %v5012_v9 = vcombine.high %v769_v4, %v777_v5  ;;  %3907 = vmatpush1.bf16.msra.mxu1 %v4995_v7  ;;  %v5011_v15 = vcombine.low %v769_v4, %v777_v5  ;;  %v458_v54 = vunpack.c.l.bf16 %v457_v48  ;;  %v856_v48 = vld [vmem:[#allocation10 + $0x8c0] sm:$0xff] }
 0x20e   :  { %v501_v55 = vunpack.c.l.bf16 %v500_v49  ;;  %v849_v49 = vld [vmem:[#allocation10 + $0x888] sm:$0xff] }
 0x20f   :  { %3825 = vmatpush1.bf16.msra.mxu0 %v4993_v6  ;;  %3908 = vmatprep.subr.bf16.mxu1 %v5012_v9  ;;  %v467_v60 = vrot.slane %v458_v54, %v5812_v51  ;;  %v463_v61 = vrot.slane %v458_v54, %v5809_v50  ;;  %v475_v62 = vrot.slane %v458_v54, %v5818_v53 }
 0x210   :  { %3826 = vmatprep.subr.bf16.mxu0 %v5010_v8  ;;  %v471_v63 = vrot.slane %v458_v54, %v5815_v52  ;;  %v510_v0 = vrot.slane %v501_v55, %v5812_v51  ;;  %v506_v1 = vrot.slane %v501_v55, %v5809_v50  ;;  %v518_v2 = vrot.slane %v501_v55, %v5818_v53  ;;  %v857_v54 = vld [vmem:[#allocation10 + $0x8c8] sm:$0xff] }
 0x211   :  { %3909 = vmatpush1.bf16.msra.mxu1 %v5011_v15  ;;  %v514_v3 = vrot.slane %v501_v55, %v5815_v52  ;;  %v487_v23 = vrot.slane %v467_v60, %v5809_v50  ;;  %v483_v4 = vrot.slane %v463_v61, %v5809_v50  ;;  %v495_v5 = vrot.slane %v475_v62, %v5809_v50  ;;  %v864_v62 = vld [vmem:[#allocation10 + $0x900] sm:$0xff] }
 0x212   :  { %3910 = vmatprep.subr.bf16.mxu1 %v5028_v17  ;;  %v491_v6 = vrot.slane %v471_v63, %v5809_v50  ;;  %v530_v8 = vrot.slane %v510_v0, %v5809_v50  ;;  %v526_v9 = vrot.slane %v506_v1, %v5809_v50  ;;  %v538_v10 = vrot.slane %v518_v2, %v5809_v50  ;;  %v872_v1 = vld [vmem:[#allocation10 + $0x940] sm:$0xff]  ;;  %v865_v2 = vld [vmem:[#allocation10 + $0x908] sm:$0xff] }
 0x213   :  { %3827 = vmatpush1.bf16.msra.mxu0 %v5009_v14  ;;  %v534_v11 = vrot.slane %v514_v3, %v5809_v50  ;;  %v5092_v0 = vcombine.high %v849_v49, %v857_v54  ;;  %v873_v3 = vld [vmem:[#allocation10 + $0x948] sm:$0xff]  ;;  %v5105_v37 = vcombine.low %v864_v62, %v872_v1 }
 0x214   :  { %3828 = vmatprep.subr.bf16.mxu0 %v5026_v16  ;;  %v5107_v38 = vcombine.low %v865_v2, %v873_v3 }
 0x215   :  { %3911 = vmatpush1.bf16.msra.mxu1 %v5027_v24 }
 0x216   :  { %3912 = vmatprep.subr.bf16.mxu1 %v5044_v26 }
 0x217   :  { %3829 = vmatpush1.bf16.msra.mxu0 %v5025_v22 }
 0x218   :  { %3830 = vmatprep.subr.bf16.mxu0 %v5042_v25 }
 0x219   :  { %3913 = vmatpush1.bf16.msra.mxu1 %v5043_v32 }
 0x21a   :  { %3914 = vmatprep.subr.bf16.mxu1 %v5060_v34 }
 0x21b   :  { %3831 = vmatpush1.bf16.msra.mxu0 %v5041_v31 }
 0x21c   :  { %3832 = vmatprep.subr.bf16.mxu0 %v5058_v33 }
 0x21d   :  { %3915 = vmatpush1.bf16.msra.mxu1 %v5059_v36 }
 0x21e   :  { %3925 = vmatprep.subr.bf16.mxu1 %v5076_v44 }
 0x21f   :  { %3833 = vmatpush1.bf16.msra.mxu0 %v5057_v35 }
 0x220   :  { %3843 = vmatprep.subr.bf16.mxu0 %v5074_v40 }
 0x29a   :  { %v449_v45 = vpop.xlane.xlu0 %448 }
 0x29b   :  { %v450_v46 = vmul.f32 0.001953125, %v449_v45 }
 0x29d   :  { %v451_v47 = vadd.f32 1e-05, %v450_v46  ;;  %v848_v46 = vld [vmem:[#allocation10 + $0x880] sm:$0xff] }
 0x29e   :  { %v5090_v63 = vcombine.high %v848_v46, %v856_v48 }
 0x29f   :  { %5399 = vrsqrt.f32 %v451_v47 }
 0x2a9   :  { %v5400_v7 = vpop.eup %5399 }
 0x2aa   :  { %v454_v12 = vmul.f32 %v5400_v7, %v5772_v57  ;;  %v453_v13 = vmul.f32 %v5400_v7, %v5769_v56  ;;  %v456_v14 = vmul.f32 %v5400_v7, %v5778_v59  ;;  %v455_v15 = vmul.f32 %v5400_v7, %v5775_v58 }
 0x2ab   :  { %v5108_v7 = vcombine.high %v865_v2, %v873_v3  ;;  %v977_v2 = vld [vmem:[#allocation10 + $0xc88] sm:$0xff] }
 0x2ac   :  { %v497_v16 = vmul.f32 %v487_v23, %v454_v12  ;;  %v496_v17 = vmul.f32 %v483_v4, %v453_v13  ;;  %v499_v18 = vmul.f32 %v495_v5, %v456_v14  ;;  %v498_v19 = vmul.f32 %v491_v6, %v455_v15  ;;  %v897_v12 = vld [vmem:[#allocation10 + $0xa08] sm:$0xff] }
 0x2ad   :  { %v5089_v4 = vcombine.low %v848_v46, %v856_v48  ;;  %v5091_v5 = vcombine.low %v849_v49, %v857_v54  ;;  %v5106_v6 = vcombine.high %v864_v62, %v872_v1  ;;  %v905_v13 = vld [vmem:[#allocation10 + $0xa48] sm:$0xff]  ;;  %v960_v46 = vld [vmem:[#allocation10 + $0xc00] sm:$0xff] }
 0x2ae   :  { %v540_v20 = vadd.f32 %v530_v8, %v497_v16  ;;  %v539_v21 = vadd.f32 %v526_v9, %v496_v17  ;;  %v542_v22 = vadd.f32 %v538_v10, %v499_v18  ;;  %v5840_v24 = vadd.f32 %v534_v11, %v498_v19  ;;  %v880_v8 = vld [vmem:[#allocation10 + $0x980] sm:$0xff]  ;;  %v881_v10 = vld [vmem:[#allocation10 + $0x988] sm:$0xff] }
 0x2af   :  { %v888_v9 = vld [vmem:[#allocation10 + $0x9c0] sm:$0xff]  ;;  %v889_v11 = vld [vmem:[#allocation10 + $0x9c8] sm:$0xff]  ;;  %v5140_v17 = vcombine.high %v897_v12, %v905_v13 }
 0x2b0   :  { %v544_v25 = vpack.c.bf16 %v540_v20, %v540_v20  ;;  %v543_v26 = vpack.c.bf16 %v539_v21, %v539_v21  ;;  %v546_v27 = vpack.c.bf16 %v542_v22, %v542_v22  ;;  %v5122_v39 = vcombine.high %v880_v8, %v888_v9  ;;  %v912_v18 = vld [vmem:[#allocation10 + $0xa80] sm:$0xff]  ;;  %v913_v20 = vld [vmem:[#allocation10 + $0xa88] sm:$0xff] }
 0x2b1   :  { %v5124_v41 = vcombine.high %v881_v10, %v889_v11  ;;  %v5121_v14 = vcombine.low %v880_v8, %v888_v9  ;;  %v5123_v15 = vcombine.low %v881_v10, %v889_v11  ;;  %v920_v19 = vld [vmem:[#allocation10 + $0xac0] sm:$0xff]  ;;  %v921_v21 = vld [vmem:[#allocation10 + $0xac8] sm:$0xff] }
 0x2b2   :  { %v548_v28 = vunpack.c.l.bf16 %v544_v25  ;;  %v547_v57 = vunpack.c.l.bf16 %v543_v26  ;;  %v550_v29 = vunpack.c.l.bf16 %v546_v27  ;;  %v5139_v25 = vcombine.low %v897_v12, %v905_v13  ;;  %v961_v48 = vld [vmem:[#allocation10 + $0xc08] sm:$0xff]  ;;  %v984_v1 = vld [vmem:[#allocation10 + $0xcc0] sm:$0xff] }
 0x2b3   :  { %v5154_v26 = vcombine.high %v912_v18, %v920_v19  ;;  %v5156_v27 = vcombine.high %v913_v20, %v921_v21  ;;  %v969_v49 = vld [vmem:[#allocation10 + $0xc48] sm:$0xff]  ;;  %v992_v9 = vld [vmem:[#allocation10 + $0xd00] sm:$0xff] }
 0x2b4   :  { %v557_v56 = vmul.f32 0.70710677, %v548_v28  ;;  %v556_v30 = vmul.f32 0.70710677, %v547_v57  ;;  %v559_v59 = vmul.f32 0.70710677, %v550_v29 }
 0x2b5   :  { %v552_v32 = vmul.f32 0.5, %v548_v28  ;;  %v551_v35 = vmul.f32 0.5, %v547_v57  ;;  %v554_v44 = vmul.f32 0.5, %v550_v29  ;;  %v928_v28 = vld [vmem:[#allocation10 + $0xb00] sm:$0xff]  ;;  %v929_v29 = vld [vmem:[#allocation10 + $0xb08] sm:$0xff] }
 0x2b6   :  { %5401 = verf.f32 %v557_v56  ;;  %v936_v57 = vld [vmem:[#allocation10 + $0xb40] sm:$0xff]  ;;  %v937_v56 = vld [vmem:[#allocation10 + $0xb48] sm:$0xff] }
 0x2b7   :  { %5403 = verf.f32 %v556_v30  ;;  %v5153_v30 = vcombine.low %v912_v18, %v920_v19  ;;  %v985_v3 = vld [vmem:[#allocation10 + $0xcc8] sm:$0xff]  ;;  %v1000_v10 = vld [vmem:[#allocation10 + $0xd40] sm:$0xff] }
 0x2b8   :  { %5405 = verf.f32 %v559_v59  ;;  %v5155_v59 = vcombine.low %v913_v20, %v921_v21  ;;  %v5220_v8 = vcombine.high %v977_v2, %v985_v3  ;;  %v993_v11 = vld [vmem:[#allocation10 + $0xd08] sm:$0xff]  ;;  %v1008_v12 = vld [vmem:[#allocation10 + $0xd80] sm:$0xff] }
 0x2b9   :  { %v1009_v13 = vld [vmem:[#allocation10 + $0xd88] sm:$0xff]  ;;  %v1024_v20 = vld [vmem:[#allocation10 + $0xe00] sm:$0xff] }
 0x2ba   :  { %v1032_v21 = vld [vmem:[#allocation10 + $0xe40] sm:$0xff] }
 0x2c0   :  { %v5402_v58 = vpop.eup %5401 }
 0x2c1   :  { %v5404_v31 = vpop.eup %5403  ;;  %v565_v33 = vadd.f32 1.0, %v5402_v58  ;;  %v5170_v58 = vcombine.high %v928_v28, %v936_v57 }
 0x2c2   :  { %v5406_v34 = vpop.eup %5405  ;;  %v564_v36 = vadd.f32 1.0, %v5404_v31  ;;  %v5172_v31 = vcombine.high %v929_v29, %v937_v56 }
 0x2c3   :  { %v569_v40 = vmul.f32 %v565_v33, %v552_v32  ;;  %v567_v45 = vadd.f32 1.0, %v5406_v34  ;;  %v944_v32 = vld [vmem:[#allocation10 + $0xb80] sm:$0xff]  ;;  %v945_v34 = vld [vmem:[#allocation10 + $0xb88] sm:$0xff] }
 0x2c4   :  { %v568_v47 = vmul.f32 %v564_v36, %v551_v35  ;;  %v952_v33 = vld [vmem:[#allocation10 + $0xbc0] sm:$0xff]  ;;  %v953_v35 = vld [vmem:[#allocation10 + $0xbc8] sm:$0xff]  ;;  %v5169_v36 = vcombine.low %v928_v28, %v936_v57  ;;  %v5266_v28 = vcombine.high %v1024_v20, %v1032_v21 }
 0x2c5   :  { %v5842_v55 = vpack.c.bf16 %v569_v40, %v569_v40  ;;  %v571_v60 = vmul.f32 %v567_v45, %v554_v44  ;;  %v5171_v40 = vcombine.low %v929_v29, %v937_v56  ;;  %v5186_v44 = vcombine.high %v944_v32, %v952_v33  ;;  %v1040_v29 = vld [vmem:[#allocation10 + $0xe80] sm:$0xff] }
 0x2c6   :  { %v5844_v61 = vpack.c.bf16 %v568_v47, %v568_v47  ;;  %v5188_v45 = vcombine.high %v945_v34, %v953_v35  ;;  %v968_v47 = vld [vmem:[#allocation10 + $0xc40] sm:$0xff]  ;;  %v5185_v54 = vcombine.low %v944_v32, %v952_v33 }
 0x2c7   :  { %3834 = vmatprep.mubr.bf16.mxu0 %v5842_v55  ;;  %3916 = vmatprep.mubr.bf16.mxu1 %v5842_v55  ;;  %v5850_v23 = vpack.c.bf16 %v571_v60, %v571_v60  ;;  %v5187_v60 = vcombine.low %v945_v34, %v953_v35  ;;  %v5202_v62 = vcombine.high %v960_v46, %v968_v47  ;;  %v1048_v56 = vld [vmem:[#allocation10 + $0xec0] sm:$0xff] }
 0x2c8   :  { %3835 = vmatmul.mubr.bf16.vlgmr.msra.gmra.mrb[8].mxu0 %v5844_v61  ;;  %3917 = vmatmul.mubr.bf16.vlgmr.msra.gmra.mrb[8].mxu1 %v5844_v61  ;;  %v5282_v32 = vcombine.high %v1040_v29, %v1048_v56  ;;  %v1056_v34 = vld [vmem:[#allocation10 + $0xf00] sm:$0xff] }
 0x2c9   :  { %3844 = vmatpush1.bf16.msra.mxu0 %v5073_v42  ;;  %3926 = vmatpush1.bf16.msra.mxu1 %v5075_v43  ;;  %v896_v42 = vld [vmem:[#allocation10 + $0xa00] sm:$0xff] }
 0x2ca   :  { %3875 = vmatprep.mubr.bf16.mxu0 %v5850_v23  ;;  %3957 = vmatprep.mubr.bf16.mxu1 %v5850_v23  ;;  %v904_v43 = vld [vmem:[#allocation10 + $0xa40] sm:$0xff] }
 0x2cb   :  { %3845 = vmatprep.subr.bf16.mxu0 %v5090_v63  ;;  %3927 = vmatprep.subr.bf16.mxu1 %v5092_v0  ;;  %v5138_v16 = vcombine.high %v896_v42, %v904_v43  ;;  %v5137_v22 = vcombine.low %v896_v42, %v904_v43  ;;  %v5204_v63 = vcombine.high %v961_v48, %v969_v49  ;;  %v976_v0 = vld [vmem:[#allocation10 + $0xc80] sm:$0xff] }
 0x2cc   :  { %v5234_v42 = vcombine.high %v992_v9, %v1000_v10  ;;  %v1064_v35 = vld [vmem:[#allocation10 + $0xf40] sm:$0xff] }
 0x2cd   :  { %3846 = vmatpush1.bf16.msra.mxu0 %v5089_v4  ;;  %3928 = vmatpush1.bf16.msra.mxu1 %v5091_v5  ;;  %v5201_v4 = vcombine.low %v960_v46, %v968_v47  ;;  %v5203_v5 = vcombine.low %v961_v48, %v969_v49  ;;  %v5298_v46 = vcombine.high %v1056_v34, %v1064_v35  ;;  %v1072_v48 = vld [vmem:[#allocation10 + $0xf80] sm:$0xff] }
 0x2ce   :  { %3847 = vmatprep.subr.bf16.mxu0 %v5106_v6  ;;  %3929 = vmatprep.subr.bf16.mxu1 %v5108_v7  ;;  %v545_v6 = vpack.c.bf16 %v5840_v24, %v5840_v24  ;;  %v5218_v7 = vcombine.high %v976_v0, %v984_v1  ;;  %v1016_v24 = vld [vmem:[#allocation10 + $0xdc0] sm:$0xff] }
 0x2cf   :  { %v5250_v18 = vcombine.high %v1008_v12, %v1016_v24 }
 0x2d1   :  { %3848 = vmatpush1.bf16.msra.mxu0 %v5105_v37  ;;  %3930 = vmatpush1.bf16.msra.mxu1 %v5107_v38  ;;  %v1001_v37 = vld [vmem:[#allocation10 + $0xd48] sm:$0xff]  ;;  %v5217_v38 = vcombine.low %v976_v0, %v984_v1 }
 0x2d2   :  { %3849 = vmatprep.subr.bf16.mxu0 %v5122_v39  ;;  %3931 = vmatprep.subr.bf16.mxu1 %v5124_v41  ;;  %v5219_v39 = vcombine.low %v977_v2, %v985_v3  ;;  %v5862_v41 = vunpack.c.l.bf16 %v545_v6  ;;  %v5236_v43 = vcombine.high %v993_v11, %v1001_v37  ;;  %v579_v6 = vld [vmem:[#allocation10 + $0x18] sm:$0xff] }
 0x2d5   :  { %3850 = vmatpush1.bf16.msra.mxu0 %v5121_v14  ;;  %3932 = vmatpush1.bf16.msra.mxu1 %v5123_v15  ;;  %v1017_v14 = vld [vmem:[#allocation10 + $0xdc8] sm:$0xff]  ;;  %v5233_v15 = vcombine.low %v992_v9, %v1000_v10 }
 0x2d6   :  { %3851 = vmatprep.subr.bf16.mxu0 %v5138_v16  ;;  %3933 = vmatprep.subr.bf16.mxu1 %v5140_v17  ;;  %v5235_v16 = vcombine.low %v993_v11, %v1001_v37  ;;  %v558_v17 = vmul.f32 0.70710677, %v5862_v41  ;;  %v5252_v19 = vcombine.high %v1009_v13, %v1017_v14 }
 0x2d8   :  { %5407 = verf.f32 %v558_v17  ;;  %v618_v17 = vld [vmem:[#allocation10 + $0x150] sm:$0xff] }
 0x2d9   :  { %3852 = vmatpush1.bf16.msra.mxu0 %v5137_v22  ;;  %3934 = vmatpush1.bf16.msra.mxu1 %v5139_v25  ;;  %v1025_v22 = vld [vmem:[#allocation10 + $0xe08] sm:$0xff] }
 0x2da   :  { %3853 = vmatprep.subr.bf16.mxu0 %v5154_v26  ;;  %3935 = vmatprep.subr.bf16.mxu1 %v5156_v27  ;;  %v1033_v25 = vld [vmem:[#allocation10 + $0xe48] sm:$0xff]  ;;  %v5249_v26 = vcombine.low %v1008_v12, %v1016_v24  ;;  %v5251_v27 = vcombine.low %v1009_v13, %v1017_v14  ;;  %v603_v12 = vld [vmem:[#allocation10 + $0xd8] sm:$0xff] }
 0x2db   :  { %v5268_v57 = vcombine.high %v1025_v22, %v1033_v25 }
 0x2dd   :  { %3854 = vmatpush1.bf16.msra.mxu0 %v5153_v30  ;;  %3936 = vmatpush1.bf16.msra.mxu1 %v5155_v59  ;;  %v1041_v30 = vld [vmem:[#allocation10 + $0xe88] sm:$0xff] }
 0x2de   :  { %3855 = vmatprep.subr.bf16.mxu0 %v5170_v58  ;;  %3937 = vmatprep.subr.bf16.mxu1 %v5172_v31  ;;  %v1049_v59 = vld [vmem:[#allocation10 + $0xec8] sm:$0xff]  ;;  %v5265_v58 = vcombine.low %v1024_v20, %v1032_v21  ;;  %v5267_v31 = vcombine.low %v1025_v22, %v1033_v25 }
 0x2df   :  { %v5284_v33 = vcombine.high %v1041_v30, %v1049_v59 }
 0x2e1   :  { %3856 = vmatpush1.bf16.msra.mxu0 %v5169_v36  ;;  %3938 = vmatpush1.bf16.msra.mxu1 %v5171_v40  ;;  %v1057_v36 = vld [vmem:[#allocation10 + $0xf08] sm:$0xff] }
 0x2e2   :  { %3857 = vmatprep.subr.bf16.mxu0 %v5186_v44  ;;  %3939 = vmatprep.subr.bf16.mxu1 %v5188_v45  ;;  %v1065_v40 = vld [vmem:[#allocation10 + $0xf48] sm:$0xff]  ;;  %v5281_v44 = vcombine.low %v1040_v29, %v1048_v56  ;;  %v5283_v45 = vcombine.low %v1041_v30, %v1049_v59  ;;  %v5408_v49 = vpop.eup %5407 }
 0x2e3   :  { %v5300_v47 = vcombine.high %v1057_v36, %v1065_v40  ;;  %v5299_v0 = vcombine.low %v1057_v36, %v1065_v40  ;;  %v566_v3 = vadd.f32 1.0, %v5408_v49 }
 0x2e5   :  { %3858 = vmatpush1.bf16.msra.mxu0 %v5185_v54  ;;  %3940 = vmatpush1.bf16.msra.mxu1 %v5187_v60  ;;  %v1080_v54 = vld [vmem:[#allocation10 + $0xfc0] sm:$0xff]  ;;  %v1073_v60 = vld [vmem:[#allocation10 + $0xf88] sm:$0xff] }
 0x2e6   :  { %3859 = vmatprep.subr.bf16.mxu0 %v5202_v62  ;;  %3941 = vmatprep.subr.bf16.mxu1 %v5204_v63  ;;  %v1081_v62 = vld [vmem:[#allocation10 + $0xfc8] sm:$0xff]  ;;  %v5297_v63 = vcombine.low %v1056_v34, %v1064_v35  ;;  %v5314_v1 = vcombine.high %v1072_v48, %v1080_v54  ;;  %v5313_v9 = vcombine.low %v1072_v48, %v1080_v54 }
 0x2e7   :  { %v5316_v2 = vcombine.high %v1073_v60, %v1081_v62  ;;  %v5315_v10 = vcombine.low %v1073_v60, %v1081_v62  ;;  %v674_v62 = vld [vmem:[#allocation10 + $0x310] sm:$0xff] }
 0x2e9   :  { %3860 = vmatpush1.bf16.msra.mxu0 %v5201_v4  ;;  %3942 = vmatpush1.bf16.msra.mxu1 %v5203_v5  ;;  %v578_v4 = vld [vmem:[#allocation10 + $0x10] sm:$0xff] }
 0x2ea   :  { %3861 = vmatprep.subr.bf16.mxu0 %v5218_v7  ;;  %3943 = vmatprep.subr.bf16.mxu1 %v5220_v8  ;;  %v586_v5 = vld [vmem:[#allocation10 + $0x50] sm:$0xff]  ;;  %v587_v7 = vld [vmem:[#allocation10 + $0x58] sm:$0xff]  ;;  %v553_v8 = vmul.f32 0.5, %v5862_v41 }
 0x2eb   :  { %v4822_v37 = vcombine.high %v578_v4, %v586_v5  ;;  %v4821_v24 = vcombine.low %v578_v4, %v586_v5  ;;  %v4823_v41 = vcombine.low %v579_v6, %v587_v7 }
 0x2ec   :  { %v570_v11 = vmul.f32 %v566_v3, %v553_v8  ;;  %v691_v8 = vld [vmem:[#allocation10 + $0x398] sm:$0xff] }
 0x2ed   :  { %3862 = vmatpush1.bf16.msra.mxu0 %v5217_v38  ;;  %3944 = vmatpush1.bf16.msra.mxu1 %v5219_v39  ;;  %v4824_v38 = vcombine.high %v579_v6, %v587_v7  ;;  %v594_v39 = vld [vmem:[#allocation10 + $0x90] sm:$0xff] }
 0x2ee   :  { %3863 = vmatprep.subr.bf16.mxu0 %v5234_v42  ;;  %3945 = vmatprep.subr.bf16.mxu1 %v5236_v43  ;;  %v602_v42 = vld [vmem:[#allocation10 + $0xd0] sm:$0xff]  ;;  %v595_v43 = vld [vmem:[#allocation10 + $0x98] sm:$0xff]  ;;  %v5866_v13 = vpack.c.bf16 %v570_v11, %v570_v11 }
 0x2ef   :  { %v4838_v14 = vcombine.high %v594_v39, %v602_v42  ;;  %v4837_v20 = vcombine.low %v594_v39, %v602_v42  ;;  %v4839_v21 = vcombine.low %v595_v43, %v603_v12  ;;  %v690_v6 = vld [vmem:[#allocation10 + $0x390] sm:$0xff] }
 0x2f0   :  { %v698_v7 = vld [vmem:[#allocation10 + $0x3d0] sm:$0xff] }
 0x2f1   :  { %3864 = vmatpush1.bf16.msra.mxu0 %v5233_v15  ;;  %3946 = vmatpush1.bf16.msra.mxu1 %v5235_v16  ;;  %v4840_v15 = vcombine.high %v595_v43, %v603_v12  ;;  %v610_v16 = vld [vmem:[#allocation10 + $0x110] sm:$0xff]  ;;  %v707_v43 = vld [vmem:[#allocation10 + $0x418] sm:$0xff] }
 0x2f2   :  { %3865 = vmatprep.subr.bf16.mxu0 %v5250_v18  ;;  %3947 = vmatprep.subr.bf16.mxu1 %v5252_v19  ;;  %v611_v18 = vld [vmem:[#allocation10 + $0x118] sm:$0xff]  ;;  %v4854_v22 = vcombine.high %v610_v16, %v618_v17  ;;  %v4853_v29 = vcombine.low %v610_v16, %v618_v17  ;;  %v706_v39 = vld [vmem:[#allocation10 + $0x410] sm:$0xff] }
 0x2f3   :  { %v619_v19 = vld [vmem:[#allocation10 + $0x158] sm:$0xff]  ;;  %v714_v42 = vld [vmem:[#allocation10 + $0x450] sm:$0xff] }
 0x2f4   :  { %v4856_v25 = vcombine.high %v611_v18, %v619_v19  ;;  %v4855_v56 = vcombine.low %v611_v18, %v619_v19  ;;  %v715_v12 = vld [vmem:[#allocation10 + $0x458] sm:$0xff]  ;;  %v722_v16 = vld [vmem:[#allocation10 + $0x490] sm:$0xff] }
 0x2f5   :  { %3866 = vmatpush1.bf16.msra.mxu0 %v5249_v26  ;;  %3948 = vmatpush1.bf16.msra.mxu1 %v5251_v27  ;;  %v626_v26 = vld [vmem:[#allocation10 + $0x190] sm:$0xff]  ;;  %v723_v18 = vld [vmem:[#allocation10 + $0x498] sm:$0xff] }
 0x2f6   :  { %3867 = vmatprep.subr.bf16.mxu0 %v5266_v28  ;;  %3949 = vmatprep.subr.bf16.mxu1 %v5268_v57  ;;  %v634_v27 = vld [vmem:[#allocation10 + $0x1d0] sm:$0xff]  ;;  %v627_v28 = vld [vmem:[#allocation10 + $0x198] sm:$0xff] }
 0x2f7   :  { %v635_v57 = vld [vmem:[#allocation10 + $0x1d8] sm:$0xff]  ;;  %v4870_v30 = vcombine.high %v626_v26, %v634_v27  ;;  %v4869_v34 = vcombine.low %v626_v26, %v634_v27  ;;  %v730_v17 = vld [vmem:[#allocation10 + $0x4d0] sm:$0xff] }
 0x2f8   :  { %v4872_v59 = vcombine.high %v627_v28, %v635_v57  ;;  %v4871_v35 = vcombine.low %v627_v28, %v635_v57  ;;  %v731_v19 = vld [vmem:[#allocation10 + $0x4d8] sm:$0xff]  ;;  %v738_v26 = vld [vmem:[#allocation10 + $0x510] sm:$0xff] }
 0x2f9   :  { %3868 = vmatpush1.bf16.msra.mxu0 %v5265_v58  ;;  %3950 = vmatpush1.bf16.msra.mxu1 %v5267_v31  ;;  %v642_v58 = vld [vmem:[#allocation10 + $0x210] sm:$0xff]  ;;  %v739_v28 = vld [vmem:[#allocation10 + $0x518] sm:$0xff] }
 0x2fa   :  { %3869 = vmatprep.subr.bf16.mxu0 %v5282_v32  ;;  %3951 = vmatprep.subr.bf16.mxu1 %v5284_v33  ;;  %v650_v31 = vld [vmem:[#allocation10 + $0x250] sm:$0xff]  ;;  %v643_v32 = vld [vmem:[#allocation10 + $0x218] sm:$0xff] }
 0x2fb   :  { %v651_v33 = vld [vmem:[#allocation10 + $0x258] sm:$0xff]  ;;  %v4886_v36 = vcombine.high %v642_v58, %v650_v31  ;;  %v4885_v48 = vcombine.low %v642_v58, %v650_v31  ;;  %v746_v27 = vld [vmem:[#allocation10 + $0x550] sm:$0xff] }
 0x2fc   :  { %v4888_v40 = vcombine.high %v643_v32, %v651_v33  ;;  %v4887_v49 = vcombine.low %v643_v32, %v651_v33  ;;  %v747_v57 = vld [vmem:[#allocation10 + $0x558] sm:$0xff]  ;;  %v754_v58 = vld [vmem:[#allocation10 + $0x590] sm:$0xff] }
 0x2fd   :  { %3870 = vmatpush1.bf16.msra.mxu0 %v5281_v44  ;;  %3952 = vmatpush1.bf16.msra.mxu1 %v5283_v45  ;;  %v658_v44 = vld [vmem:[#allocation10 + $0x290] sm:$0xff]  ;;  %v755_v32 = vld [vmem:[#allocation10 + $0x598] sm:$0xff] }
 0x2fe   :  { %3871 = vmatprep.subr.bf16.mxu0 %v5298_v46  ;;  %3953 = vmatprep.subr.bf16.mxu1 %v5300_v47  ;;  %v666_v45 = vld [vmem:[#allocation10 + $0x2d0] sm:$0xff]  ;;  %v659_v46 = vld [vmem:[#allocation10 + $0x298] sm:$0xff] }
 0x2ff   :  { %v667_v47 = vld [vmem:[#allocation10 + $0x2d8] sm:$0xff]  ;;  %v4902_v54 = vcombine.high %v658_v44, %v666_v45  ;;  %v762_v31 = vld [vmem:[#allocation10 + $0x5d0] sm:$0xff] }
 0x300   :  { %v4904_v60 = vcombine.high %v659_v46, %v667_v47  ;;  %v4903_v3 = vcombine.low %v659_v46, %v667_v47  ;;  %v763_v33 = vld [vmem:[#allocation10 + $0x5d8] sm:$0xff] }
 0x301   :  { %3872 = vmatpush1.bf16.msra.mxu0 %v5297_v63  ;;  %3954 = vmatpush1.bf16.msra.mxu1 %v5299_v0  ;;  %v682_v63 = vld [vmem:[#allocation10 + $0x350] sm:$0xff]  ;;  %v675_v0 = vld [vmem:[#allocation10 + $0x318] sm:$0xff] }
 0x302   :  { %3873 = vmatprep.subr.bf16.mxu0 %v5314_v1  ;;  %3955 = vmatprep.subr.bf16.mxu1 %v5316_v2  ;;  %v683_v1 = vld [vmem:[#allocation10 + $0x358] sm:$0xff]  ;;  %v4901_v2 = vcombine.low %v658_v44, %v666_v45  ;;  %v4918_v4 = vcombine.high %v674_v62, %v682_v63  ;;  %v770_v44 = vld [vmem:[#allocation10 + $0x610] sm:$0xff] }
 0x303   :  { %v4920_v5 = vcombine.high %v675_v0, %v683_v1  ;;  %v4919_v11 = vcombine.low %v675_v0, %v683_v1  ;;  %v778_v45 = vld [vmem:[#allocation10 + $0x650] sm:$0xff]  ;;  %v771_v46 = vld [vmem:[#allocation10 + $0x618] sm:$0xff] }
 0x304   :  { %v779_v47 = vld [vmem:[#allocation10 + $0x658] sm:$0xff] }
 0x305   :  { %3874 = vmatpush1.bf16.msra.mxu0 %v5313_v9  ;;  %3956 = vmatpush1.bf16.msra.mxu1 %v5315_v10  ;;  %v699_v9 = vld [vmem:[#allocation10 + $0x3d8] sm:$0xff]  ;;  %v4917_v10 = vcombine.low %v674_v62, %v682_v63  ;;  %v786_v62 = vld [vmem:[#allocation10 + $0x690] sm:$0xff] }
 0x306   :  { %3966 = vmatprep.subr.bf16.mxu0 %v4822_v37  ;;  %4048 = vmatprep.subr.bf16.mxu1 %v4824_v38  ;;  %v4934_v37 = vcombine.high %v690_v6, %v698_v7  ;;  %v4936_v38 = vcombine.high %v691_v8, %v699_v9  ;;  %v794_v63 = vld [vmem:[#allocation10 + $0x6d0] sm:$0xff]  ;;  %v787_v0 = vld [vmem:[#allocation10 + $0x698] sm:$0xff] }
 0x307   :  { %v795_v1 = vld [vmem:[#allocation10 + $0x6d8] sm:$0xff] }
 0x308   :  { %3876 = vmatmul.mubr.bf16.vlgmr.msra.gmra.mrb[8].mxu0 %v5866_v13  ;;  %3958 = vmatmul.mubr.bf16.vlgmr.msra.gmra.mrb[8].mxu1 %v5866_v13 }
 0x309   :  { %3967 = vmatpush1.bf16.msra.mxu0 %v4821_v24  ;;  %3998 = vmatprep.mubr.bf16.mxu0 %v5842_v55  ;;  %v4933_v24 = vcombine.low %v690_v6, %v698_v7  ;;  %v802_v6 = vld [vmem:[#allocation10 + $0x710] sm:$0xff] }
 0x30a   :  { %4049 = vmatpush1.bf16.msra.mxu1 %v4823_v41  ;;  %4080 = vmatprep.mubr.bf16.mxu1 %v5842_v55  ;;  %v4935_v41 = vcombine.low %v691_v8, %v699_v9  ;;  %v810_v7 = vld [vmem:[#allocation10 + $0x750] sm:$0xff]  ;;  %v803_v8 = vld [vmem:[#allocation10 + $0x718] sm:$0xff] }
 0x30b   :  { %3968 = vmatprep.subr.bf16.mxu0 %v4838_v14  ;;  %4050 = vmatprep.subr.bf16.mxu1 %v4840_v15  ;;  %v4950_v14 = vcombine.high %v706_v39, %v714_v42  ;;  %v4952_v15 = vcombine.high %v707_v43, %v715_v12  ;;  %v811_v9 = vld [vmem:[#allocation10 + $0x758] sm:$0xff] }
 0x30d   :  { %3969 = vmatpush1.bf16.msra.mxu0 %v4837_v20  ;;  %v4949_v20 = vcombine.low %v706_v39, %v714_v42  ;;  %v818_v39 = vld [vmem:[#allocation10 + $0x790] sm:$0xff] }
 0x30e   :  { %4051 = vmatpush1.bf16.msra.mxu1 %v4839_v21  ;;  %3970 = vmatprep.subr.bf16.mxu0 %v4854_v22  ;;  %v4951_v21 = vcombine.low %v707_v43, %v715_v12  ;;  %v4966_v22 = vcombine.high %v722_v16, %v730_v17  ;;  %v826_v42 = vld [vmem:[#allocation10 + $0x7d0] sm:$0xff]  ;;  %v819_v43 = vld [vmem:[#allocation10 + $0x798] sm:$0xff] }
 0x30f   :  { %4052 = vmatprep.subr.bf16.mxu1 %v4856_v25  ;;  %v4968_v25 = vcombine.high %v723_v18, %v731_v19  ;;  %v827_v12 = vld [vmem:[#allocation10 + $0x7d8] sm:$0xff] }
 0x311   :  { %3971 = vmatpush1.bf16.msra.mxu0 %v4853_v29  ;;  %v4965_v29 = vcombine.low %v722_v16, %v730_v17  ;;  %v834_v16 = vld [vmem:[#allocation10 + $0x810] sm:$0xff] }
 0x312   :  { %4053 = vmatpush1.bf16.msra.mxu1 %v4855_v56  ;;  %3972 = vmatprep.subr.bf16.mxu0 %v4870_v30  ;;  %v4967_v56 = vcombine.low %v723_v18, %v731_v19  ;;  %v4982_v30 = vcombine.high %v738_v26, %v746_v27  ;;  %v842_v17 = vld [vmem:[#allocation10 + $0x850] sm:$0xff]  ;;  %v835_v18 = vld [vmem:[#allocation10 + $0x818] sm:$0xff] }
 0x313   :  { %4054 = vmatprep.subr.bf16.mxu1 %v4872_v59  ;;  %v4984_v59 = vcombine.high %v739_v28, %v747_v57  ;;  %v843_v19 = vld [vmem:[#allocation10 + $0x858] sm:$0xff] }
 0x315   :  { %3973 = vmatpush1.bf16.msra.mxu0 %v4869_v34  ;;  %v4981_v34 = vcombine.low %v738_v26, %v746_v27  ;;  %v850_v26 = vld [vmem:[#allocation10 + $0x890] sm:$0xff] }
 0x316   :  { %4055 = vmatpush1.bf16.msra.mxu1 %v4871_v35  ;;  %3974 = vmatprep.subr.bf16.mxu0 %v4886_v36  ;;  %v4983_v35 = vcombine.low %v739_v28, %v747_v57  ;;  %v4998_v36 = vcombine.high %v754_v58, %v762_v31  ;;  %v858_v27 = vld [vmem:[#allocation10 + $0x8d0] sm:$0xff]  ;;  %v5077_v28 = vcombine.low %v834_v16, %v842_v17  ;;  %v851_v57 = vld [vmem:[#allocation10 + $0x898] sm:$0xff] }
 0x317   :  { %4056 = vmatprep.subr.bf16.mxu1 %v4888_v40  ;;  %v5000_v40 = vcombine.high %v755_v32, %v763_v33 }
 0x319   :  { %3975 = vmatpush1.bf16.msra.mxu0 %v4885_v48  ;;  %v4997_v48 = vcombine.low %v754_v58, %v762_v31  ;;  %v874_v58 = vld [vmem:[#allocation10 + $0x950] sm:$0xff] }
 0x31a   :  { %4057 = vmatpush1.bf16.msra.mxu1 %v4887_v49  ;;  %3976 = vmatprep.subr.bf16.mxu0 %v4902_v54  ;;  %v4999_v49 = vcombine.low %v755_v32, %v763_v33  ;;  %v5014_v54 = vcombine.high %v770_v44, %v778_v45  ;;  %v867_v32 = vld [vmem:[#allocation10 + $0x918] sm:$0xff] }
 0x31b   :  { %4058 = vmatprep.subr.bf16.mxu1 %v4904_v60  ;;  %v5016_v60 = vcombine.high %v771_v46, %v779_v47  ;;  %v875_v33 = vld [vmem:[#allocation10 + $0x958] sm:$0xff] }
 0x31d   :  { %3977 = vmatpush1.bf16.msra.mxu0 %v4901_v2  ;;  %v5013_v2 = vcombine.low %v770_v44, %v778_v45  ;;  %v882_v44 = vld [vmem:[#allocation10 + $0x990] sm:$0xff] }
 0x31e   :  { %4059 = vmatpush1.bf16.msra.mxu1 %v4903_v3  ;;  %3978 = vmatprep.subr.bf16.mxu0 %v4918_v4  ;;  %v5015_v3 = vcombine.low %v771_v46, %v779_v47  ;;  %v5030_v4 = vcombine.high %v786_v62, %v794_v63  ;;  %v890_v45 = vld [vmem:[#allocation10 + $0x9d0] sm:$0xff]  ;;  %v883_v46 = vld [vmem:[#allocation10 + $0x998] sm:$0xff] }
 0x31f   :  { %4060 = vmatprep.subr.bf16.mxu1 %v4920_v5  ;;  %v5032_v5 = vcombine.high %v787_v0, %v795_v1  ;;  %v891_v47 = vld [vmem:[#allocation10 + $0x9d8] sm:$0xff] }
 0x321   :  { %3979 = vmatpush1.bf16.msra.mxu0 %v4917_v10  ;;  %v5029_v10 = vcombine.low %v786_v62, %v794_v63  ;;  %v898_v62 = vld [vmem:[#allocation10 + $0xa10] sm:$0xff] }
 0x322   :  { %4061 = vmatpush1.bf16.msra.mxu1 %v4919_v11  ;;  %3980 = vmatprep.subr.bf16.mxu0 %v4934_v37  ;;  %v5031_v11 = vcombine.low %v787_v0, %v795_v1  ;;  %v5046_v37 = vcombine.high %v802_v6, %v810_v7  ;;  %v906_v63 = vld [vmem:[#allocation10 + $0xa50] sm:$0xff]  ;;  %v899_v0 = vld [vmem:[#allocation10 + $0xa18] sm:$0xff] }
 0x323   :  { %4062 = vmatprep.subr.bf16.mxu1 %v4936_v38  ;;  %v5048_v38 = vcombine.high %v803_v8, %v811_v9  ;;  %v907_v1 = vld [vmem:[#allocation10 + $0xa58] sm:$0xff] }
 0x325   :  { %3981 = vmatpush1.bf16.msra.mxu0 %v4933_v24  ;;  %v5045_v24 = vcombine.low %v802_v6, %v810_v7  ;;  %v914_v6 = vld [vmem:[#allocation10 + $0xa90] sm:$0xff] }
 0x326   :  { %4063 = vmatpush1.bf16.msra.mxu1 %v4935_v41  ;;  %3982 = vmatprep.subr.bf16.mxu0 %v4950_v14  ;;  %v5047_v41 = vcombine.low %v803_v8, %v811_v9  ;;  %v5062_v14 = vcombine.high %v818_v39, %v826_v42  ;;  %v922_v7 = vld [vmem:[#allocation10 + $0xad0] sm:$0xff]  ;;  %v915_v8 = vld [vmem:[#allocation10 + $0xa98] sm:$0xff] }
 0x327   :  { %4064 = vmatprep.subr.bf16.mxu1 %v4952_v15  ;;  %v5064_v15 = vcombine.high %v819_v43, %v827_v12  ;;  %v923_v9 = vld [vmem:[#allocation10 + $0xad8] sm:$0xff] }
 0x329   :  { %3983 = vmatpush1.bf16.msra.mxu0 %v4949_v20  ;;  %v5061_v20 = vcombine.low %v818_v39, %v826_v42  ;;  %v930_v39 = vld [vmem:[#allocation10 + $0xb10] sm:$0xff] }
 0x32a   :  { %4065 = vmatpush1.bf16.msra.mxu1 %v4951_v21  ;;  %3984 = vmatprep.subr.bf16.mxu0 %v4966_v22  ;;  %v5063_v21 = vcombine.low %v819_v43, %v827_v12  ;;  %v5078_v22 = vcombine.high %v834_v16, %v842_v17  ;;  %v938_v42 = vld [vmem:[#allocation10 + $0xb50] sm:$0xff]  ;;  %v931_v43 = vld [vmem:[#allocation10 + $0xb18] sm:$0xff] }
 0x32b   :  { %4066 = vmatprep.subr.bf16.mxu1 %v4968_v25  ;;  %v5080_v25 = vcombine.high %v835_v18, %v843_v19  ;;  %v939_v12 = vld [vmem:[#allocation10 + $0xb58] sm:$0xff]  ;;  %v946_v16 = vld [vmem:[#allocation10 + $0xb90] sm:$0xff] }
 0x32c   :  { %v954_v17 = vld [vmem:[#allocation10 + $0xbd0] sm:$0xff] }
 0x32d   :  { %3985 = vmatpush1.bf16.msra.mxu0 %v4965_v29  ;;  %v859_v29 = vld [vmem:[#allocation10 + $0x8d8] sm:$0xff] }
 0x32e   :  { %4067 = vmatpush1.bf16.msra.mxu1 %v4967_v56  ;;  %3986 = vmatprep.subr.bf16.mxu0 %v4982_v30  ;;  %v5079_v56 = vcombine.low %v835_v18, %v843_v19  ;;  %v5094_v30 = vcombine.high %v850_v26, %v858_v27  ;;  %v5096_v31 = vcombine.high %v851_v57, %v859_v29  ;;  %v947_v18 = vld [vmem:[#allocation10 + $0xb98] sm:$0xff] }
 0x32f   :  { %4068 = vmatprep.subr.bf16.mxu1 %v4984_v59  ;;  %v866_v59 = vld [vmem:[#allocation10 + $0x910] sm:$0xff]  ;;  %v955_v19 = vld [vmem:[#allocation10 + $0xbd8] sm:$0xff] }
 0x331   :  { %3987 = vmatpush1.bf16.msra.mxu0 %v4981_v34  ;;  %v5093_v34 = vcombine.low %v850_v26, %v858_v27  ;;  %v962_v26 = vld [vmem:[#allocation10 + $0xc10] sm:$0xff] }
 0x332   :  { %4069 = vmatpush1.bf16.msra.mxu1 %v4983_v35  ;;  %3988 = vmatprep.subr.bf16.mxu0 %v4998_v36  ;;  %v5095_v35 = vcombine.low %v851_v57, %v859_v29  ;;  %v5110_v36 = vcombine.high %v866_v59, %v874_v58  ;;  %v970_v27 = vld [vmem:[#allocation10 + $0xc50] sm:$0xff]  ;;  %v971_v57 = vld [vmem:[#allocation10 + $0xc58] sm:$0xff]  ;;  %v5189_v29 = vcombine.low %v946_v16, %v954_v17 }
 0x333   :  { %4070 = vmatprep.subr.bf16.mxu1 %v5000_v40  ;;  %v5112_v40 = vcombine.high %v867_v32, %v875_v33 }
 0x335   :  { %3989 = vmatpush1.bf16.msra.mxu0 %v4997_v48  ;;  %v5109_v48 = vcombine.low %v866_v59, %v874_v58  ;;  %v978_v58 = vld [vmem:[#allocation10 + $0xc90] sm:$0xff] }
 0x336   :  { %4071 = vmatpush1.bf16.msra.mxu1 %v4999_v49  ;;  %3990 = vmatprep.subr.bf16.mxu0 %v5014_v54  ;;  %v5111_v49 = vcombine.low %v867_v32, %v875_v33  ;;  %v5126_v54 = vcombine.high %v882_v44, %v890_v45  ;;  %v979_v32 = vld [vmem:[#allocation10 + $0xc98] sm:$0xff] }
 0x337   :  { %4072 = vmatprep.subr.bf16.mxu1 %v5016_v60  ;;  %v5128_v60 = vcombine.high %v883_v46, %v891_v47  ;;  %v987_v33 = vld [vmem:[#allocation10 + $0xcd8] sm:$0xff] }
 0x339   :  { %3991 = vmatpush1.bf16.msra.mxu0 %v5013_v2  ;;  %v5125_v2 = vcombine.low %v882_v44, %v890_v45  ;;  %v994_v44 = vld [vmem:[#allocation10 + $0xd10] sm:$0xff] }
 0x33a   :  { %4073 = vmatpush1.bf16.msra.mxu1 %v5015_v3  ;;  %3992 = vmatprep.subr.bf16.mxu0 %v5030_v4  ;;  %v5127_v3 = vcombine.low %v883_v46, %v891_v47  ;;  %v5142_v4 = vcombine.high %v898_v62, %v906_v63  ;;  %v1002_v45 = vld [vmem:[#allocation10 + $0xd50] sm:$0xff]  ;;  %v995_v46 = vld [vmem:[#allocation10 + $0xd18] sm:$0xff] }
 0x33b   :  { %4074 = vmatprep.subr.bf16.mxu1 %v5032_v5  ;;  %v5144_v5 = vcombine.high %v899_v0, %v907_v1  ;;  %v1003_v47 = vld [vmem:[#allocation10 + $0xd58] sm:$0xff] }
 0x33d   :  { %3993 = vmatpush1.bf16.msra.mxu0 %v5029_v10  ;;  %v5141_v10 = vcombine.low %v898_v62, %v906_v63  ;;  %v1010_v62 = vld [vmem:[#allocation10 + $0xd90] sm:$0xff] }
 0x33e   :  { %4075 = vmatpush1.bf16.msra.mxu1 %v5031_v11  ;;  %3994 = vmatprep.subr.bf16.mxu0 %v5046_v37  ;;  %v5143_v11 = vcombine.low %v899_v0, %v907_v1  ;;  %v5158_v37 = vcombine.high %v914_v6, %v922_v7  ;;  %v1018_v63 = vld [vmem:[#allocation10 + $0xdd0] sm:$0xff]  ;;  %v1011_v0 = vld [vmem:[#allocation10 + $0xd98] sm:$0xff] }
 0x33f   :  { %4076 = vmatprep.subr.bf16.mxu1 %v5048_v38  ;;  %v5160_v38 = vcombine.high %v915_v8, %v923_v9  ;;  %v1019_v1 = vld [vmem:[#allocation10 + $0xdd8] sm:$0xff] }
 0x341   :  { %3995 = vmatpush1.bf16.msra.mxu0 %v5045_v24  ;;  %v5157_v24 = vcombine.low %v914_v6, %v922_v7  ;;  %v1026_v6 = vld [vmem:[#allocation10 + $0xe10] sm:$0xff] }
 0x342   :  { %4077 = vmatpush1.bf16.msra.mxu1 %v5047_v41  ;;  %3996 = vmatprep.subr.bf16.mxu0 %v5062_v14  ;;  %v5159_v41 = vcombine.low %v915_v8, %v923_v9  ;;  %v5174_v14 = vcombine.high %v930_v39, %v938_v42  ;;  %v1034_v7 = vld [vmem:[#allocation10 + $0xe50] sm:$0xff]  ;;  %v1027_v8 = vld [vmem:[#allocation10 + $0xe18] sm:$0xff] }
 0x343   :  { %4078 = vmatprep.subr.bf16.mxu1 %v5064_v15  ;;  %v5176_v15 = vcombine.high %v931_v43, %v939_v12  ;;  %v1035_v9 = vld [vmem:[#allocation10 + $0xe58] sm:$0xff] }
 0x345   :  { %3997 = vmatpush1.bf16.msra.mxu0 %v5061_v20  ;;  %v5173_v20 = vcombine.low %v930_v39, %v938_v42  ;;  %v1042_v39 = vld [vmem:[#allocation10 + $0xe90] sm:$0xff] }
 0x346   :  { %4079 = vmatpush1.bf16.msra.mxu1 %v5063_v21  ;;  %4007 = vmatprep.subr.bf16.mxu0 %v5078_v22  ;;  %v5175_v21 = vcombine.low %v931_v43, %v939_v12  ;;  %v5190_v22 = vcombine.high %v946_v16, %v954_v17  ;;  %v1050_v42 = vld [vmem:[#allocation10 + $0xed0] sm:$0xff]  ;;  %v1043_v43 = vld [vmem:[#allocation10 + $0xe98] sm:$0xff] }
 0x347   :  { %4089 = vmatprep.subr.bf16.mxu1 %v5080_v25  ;;  %v5192_v25 = vcombine.high %v947_v18, %v955_v19  ;;  %v1051_v12 = vld [vmem:[#allocation10 + $0xed8] sm:$0xff]  ;;  %v1058_v16 = vld [vmem:[#allocation10 + $0xf10] sm:$0xff] }
 0x348   :  { %3999 = vmatmul.mubr.bf16.vlgmr.msra.gmra.mrb[12].mxu0 %v5844_v61  ;;  %v1066_v17 = vld [vmem:[#allocation10 + $0xf50] sm:$0xff] }
 0x349   :  { %4081 = vmatmul.mubr.bf16.vlgmr.msra.gmra.mrb[12].mxu1 %v5844_v61  ;;  %4008 = vmatpush1.bf16.msra.mxu0 %v5077_v28  ;;  %v963_v28 = vld [vmem:[#allocation10 + $0xc18] sm:$0xff] }
 0x34a   :  { %4039 = vmatprep.mubr.bf16.mxu0 %v5850_v23  ;;  %4090 = vmatpush1.bf16.msra.mxu1 %v5079_v56  ;;  %v5191_v56 = vcombine.low %v947_v18, %v955_v19  ;;  %v5208_v59 = vcombine.high %v963_v28, %v971_v57  ;;  %v1059_v18 = vld [vmem:[#allocation10 + $0xf18] sm:$0xff] }
 0x34b   :  { %4121 = vmatprep.mubr.bf16.mxu1 %v5850_v23  ;;  %4009 = vmatprep.subr.bf16.mxu0 %v5094_v30  ;;  %v5206_v30 = vcombine.high %v962_v26, %v970_v27  ;;  %v1067_v19 = vld [vmem:[#allocation10 + $0xf58] sm:$0xff] }
 0x34c   :  { %4091 = vmatprep.subr.bf16.mxu1 %v5096_v31  ;;  %v986_v31 = vld [vmem:[#allocation10 + $0xcd0] sm:$0xff] }
 0x34d   :  { %4010 = vmatpush1.bf16.msra.mxu0 %v5093_v34  ;;  %v5205_v34 = vcombine.low %v962_v26, %v970_v27  ;;  %v1074_v26 = vld [vmem:[#allocation10 + $0xf90] sm:$0xff] }
 0x34e   :  { %4092 = vmatpush1.bf16.msra.mxu1 %v5095_v35  ;;  %4011 = vmatprep.subr.bf16.mxu0 %v5110_v36  ;;  %v5207_v35 = vcombine.low %v963_v28, %v971_v57  ;;  %v5222_v36 = vcombine.high %v978_v58, %v986_v31  ;;  %v1082_v27 = vld [vmem:[#allocation10 + $0xfd0] sm:$0xff]  ;;  %v1075_v28 = vld [vmem:[#allocation10 + $0xf98] sm:$0xff] }
 0x34f   :  { %4093 = vmatprep.subr.bf16.mxu1 %v5112_v40  ;;  %v5224_v40 = vcombine.high %v979_v32, %v987_v33  ;;  %v1083_v57 = vld [vmem:[#allocation10 + $0xfd8] sm:$0xff] }
 0x351   :  { %4012 = vmatpush1.bf16.msra.mxu0 %v5109_v48  ;;  %v5221_v48 = vcombine.low %v978_v58, %v986_v31  ;;  %v580_v58 = vld [vmem:[#allocation10 + $0x20] sm:$0xff] }
 0x352   :  { %4094 = vmatpush1.bf16.msra.mxu1 %v5111_v49  ;;  %4013 = vmatprep.subr.bf16.mxu0 %v5126_v54  ;;  %v5223_v49 = vcombine.low %v979_v32, %v987_v33  ;;  %v5238_v54 = vcombine.high %v994_v44, %v1002_v45  ;;  %v588_v31 = vld [vmem:[#allocation10 + $0x60] sm:$0xff]  ;;  %v581_v32 = vld [vmem:[#allocation10 + $0x28] sm:$0xff] }
 0x353   :  { %4095 = vmatprep.subr.bf16.mxu1 %v5128_v60  ;;  %v5240_v60 = vcombine.high %v995_v46, %v1003_v47  ;;  %v589_v33 = vld [vmem:[#allocation10 + $0x68] sm:$0xff] }
 0x355   :  { %4014 = vmatpush1.bf16.msra.mxu0 %v5125_v2  ;;  %v5237_v2 = vcombine.low %v994_v44, %v1002_v45  ;;  %v596_v44 = vld [vmem:[#allocation10 + $0xa0] sm:$0xff] }
 0x356   :  { %4096 = vmatpush1.bf16.msra.mxu1 %v5127_v3  ;;  %4015 = vmatprep.subr.bf16.mxu0 %v5142_v4  ;;  %v5239_v3 = vcombine.low %v995_v46, %v1003_v47  ;;  %v5254_v4 = vcombine.high %v1010_v62, %v1018_v63  ;;  %v604_v45 = vld [vmem:[#allocation10 + $0xe0] sm:$0xff]  ;;  %v4825_v46 = vcombine.low %v580_v58, %v588_v31  ;;  %v597_v47 = vld [vmem:[#allocation10 + $0xa8] sm:$0xff] }
 0x357   :  { %4097 = vmatprep.subr.bf16.mxu1 %v5144_v5  ;;  %v5256_v5 = vcombine.high %v1011_v0, %v1019_v1 }
 0x359   :  { %4016 = vmatpush1.bf16.msra.mxu0 %v5141_v10  ;;  %v5253_v10 = vcombine.low %v1010_v62, %v1018_v63  ;;  %v620_v62 = vld [vmem:[#allocation10 + $0x160] sm:$0xff] }
 0x35a   :  { %4098 = vmatpush1.bf16.msra.mxu1 %v5143_v11  ;;  %4017 = vmatprep.subr.bf16.mxu0 %v5158_v37  ;;  %v5255_v11 = vcombine.low %v1011_v0, %v1019_v1  ;;  %v5270_v37 = vcombine.high %v1026_v6, %v1034_v7  ;;  %v613_v0 = vld [vmem:[#allocation10 + $0x128] sm:$0xff] }
 0x35b   :  { %4099 = vmatprep.subr.bf16.mxu1 %v5160_v38  ;;  %v5272_v38 = vcombine.high %v1027_v8, %v1035_v9  ;;  %v621_v1 = vld [vmem:[#allocation10 + $0x168] sm:$0xff] }
 0x35d   :  { %4018 = vmatpush1.bf16.msra.mxu0 %v5157_v24  ;;  %v5269_v24 = vcombine.low %v1026_v6, %v1034_v7  ;;  %v628_v6 = vld [vmem:[#allocation10 + $0x1a0] sm:$0xff] }
 0x35e   :  { %4100 = vmatpush1.bf16.msra.mxu1 %v5159_v41  ;;  %4019 = vmatprep.subr.bf16.mxu0 %v5174_v14  ;;  %v5271_v41 = vcombine.low %v1027_v8, %v1035_v9  ;;  %v5286_v14 = vcombine.high %v1042_v39, %v1050_v42  ;;  %v636_v7 = vld [vmem:[#allocation10 + $0x1e0] sm:$0xff]  ;;  %v629_v8 = vld [vmem:[#allocation10 + $0x1a8] sm:$0xff] }
 0x35f   :  { %4101 = vmatprep.subr.bf16.mxu1 %v5176_v15  ;;  %v5288_v15 = vcombine.high %v1043_v43, %v1051_v12  ;;  %v637_v9 = vld [vmem:[#allocation10 + $0x1e8] sm:$0xff] }
 0x361   :  { %4020 = vmatpush1.bf16.msra.mxu0 %v5173_v20  ;;  %v5285_v20 = vcombine.low %v1042_v39, %v1050_v42  ;;  %v644_v39 = vld [vmem:[#allocation10 + $0x220] sm:$0xff] }
 0x362   :  { %4102 = vmatpush1.bf16.msra.mxu1 %v5175_v21  ;;  %4021 = vmatprep.subr.bf16.mxu0 %v5190_v22  ;;  %v5287_v21 = vcombine.low %v1043_v43, %v1051_v12  ;;  %v5302_v22 = vcombine.high %v1058_v16, %v1066_v17  ;;  %v652_v42 = vld [vmem:[#allocation10 + $0x260] sm:$0xff]  ;;  %v645_v43 = vld [vmem:[#allocation10 + $0x228] sm:$0xff] }
 0x363   :  { %4103 = vmatprep.subr.bf16.mxu1 %v5192_v25  ;;  %v5304_v25 = vcombine.high %v1059_v18, %v1067_v19  ;;  %v653_v12 = vld [vmem:[#allocation10 + $0x268] sm:$0xff] }
 0x365   :  { %4022 = vmatpush1.bf16.msra.mxu0 %v5189_v29  ;;  %v5301_v29 = vcombine.low %v1058_v16, %v1066_v17  ;;  %v660_v16 = vld [vmem:[#allocation10 + $0x2a0] sm:$0xff] }
 0x366   :  { %4104 = vmatpush1.bf16.msra.mxu1 %v5191_v56  ;;  %4023 = vmatprep.subr.bf16.mxu0 %v5206_v30  ;;  %v5303_v56 = vcombine.low %v1059_v18, %v1067_v19  ;;  %v5318_v30 = vcombine.high %v1074_v26, %v1082_v27  ;;  %v668_v17 = vld [vmem:[#allocation10 + $0x2e0] sm:$0xff]  ;;  %v661_v18 = vld [vmem:[#allocation10 + $0x2a8] sm:$0xff] }
 0x367   :  { %4105 = vmatprep.subr.bf16.mxu1 %v5208_v59  ;;  %v5320_v59 = vcombine.high %v1075_v28, %v1083_v57  ;;  %v669_v19 = vld [vmem:[#allocation10 + $0x2e8] sm:$0xff] }
 0x369   :  { %4024 = vmatpush1.bf16.msra.mxu0 %v5205_v34  ;;  %v5317_v34 = vcombine.low %v1074_v26, %v1082_v27  ;;  %v676_v26 = vld [vmem:[#allocation10 + $0x320] sm:$0xff] }
 0x36a   :  { %4106 = vmatpush1.bf16.msra.mxu1 %v5207_v35  ;;  %4025 = vmatprep.subr.bf16.mxu0 %v5222_v36  ;;  %v5319_v35 = vcombine.low %v1075_v28, %v1083_v57  ;;  %v4826_v36 = vcombine.high %v580_v58, %v588_v31  ;;  %v684_v27 = vld [vmem:[#allocation10 + $0x360] sm:$0xff]  ;;  %v677_v28 = vld [vmem:[#allocation10 + $0x328] sm:$0xff] }
 0x36b   :  { %4107 = vmatprep.subr.bf16.mxu1 %v5224_v40  ;;  %v4828_v40 = vcombine.high %v581_v32, %v589_v33  ;;  %v685_v57 = vld [vmem:[#allocation10 + $0x368] sm:$0xff]  ;;  %v692_v58 = vld [vmem:[#allocation10 + $0x3a0] sm:$0xff] }
 0x36c   :  { %v700_v31 = vld [vmem:[#allocation10 + $0x3e0] sm:$0xff] }
 0x36d   :  { %4026 = vmatpush1.bf16.msra.mxu0 %v5221_v48  ;;  %v605_v48 = vld [vmem:[#allocation10 + $0xe8] sm:$0xff] }
 0x36e   :  { %4108 = vmatpush1.bf16.msra.mxu1 %v5223_v49  ;;  %4027 = vmatprep.subr.bf16.mxu0 %v5238_v54  ;;  %v4827_v49 = vcombine.low %v581_v32, %v589_v33  ;;  %v4842_v54 = vcombine.high %v596_v44, %v604_v45  ;;  %v4844_v63 = vcombine.high %v597_v47, %v605_v48  ;;  %v693_v32 = vld [vmem:[#allocation10 + $0x3a8] sm:$0xff] }
 0x36f   :  { %4109 = vmatprep.subr.bf16.mxu1 %v5240_v60  ;;  %v612_v60 = vld [vmem:[#allocation10 + $0x120] sm:$0xff]  ;;  %v701_v33 = vld [vmem:[#allocation10 + $0x3e8] sm:$0xff] }
 0x371   :  { %4028 = vmatpush1.bf16.msra.mxu0 %v5237_v2  ;;  %v4841_v2 = vcombine.low %v596_v44, %v604_v45  ;;  %v708_v44 = vld [vmem:[#allocation10 + $0x420] sm:$0xff] }
 0x372   :  { %4110 = vmatpush1.bf16.msra.mxu1 %v5239_v3  ;;  %4029 = vmatprep.subr.bf16.mxu0 %v5254_v4  ;;  %v4843_v3 = vcombine.low %v597_v47, %v605_v48  ;;  %v4858_v4 = vcombine.high %v612_v60, %v620_v62  ;;  %v716_v45 = vld [vmem:[#allocation10 + $0x460] sm:$0xff]  ;;  %v717_v47 = vld [vmem:[#allocation10 + $0x468] sm:$0xff]  ;;  %v4937_v48 = vcombine.low %v692_v58, %v700_v31 }
 0x373   :  { %4111 = vmatprep.subr.bf16.mxu1 %v5256_v5  ;;  %v4860_v5 = vcombine.high %v613_v0, %v621_v1 }
 0x375   :  { %4030 = vmatpush1.bf16.msra.mxu0 %v5253_v10  ;;  %v4857_v10 = vcombine.low %v612_v60, %v620_v62  ;;  %v724_v62 = vld [vmem:[#allocation10 + $0x4a0] sm:$0xff] }
 0x376   :  { %4112 = vmatpush1.bf16.msra.mxu1 %v5255_v11  ;;  %4031 = vmatprep.subr.bf16.mxu0 %v5270_v37  ;;  %v4859_v11 = vcombine.low %v613_v0, %v621_v1  ;;  %v4874_v37 = vcombine.high %v628_v6, %v636_v7  ;;  %v725_v0 = vld [vmem:[#allocation10 + $0x4a8] sm:$0xff] }
 0x377   :  { %4113 = vmatprep.subr.bf16.mxu1 %v5272_v38  ;;  %v4876_v38 = vcombine.high %v629_v8, %v637_v9  ;;  %v733_v1 = vld [vmem:[#allocation10 + $0x4e8] sm:$0xff] }
 0x379   :  { %4032 = vmatpush1.bf16.msra.mxu0 %v5269_v24  ;;  %v4873_v24 = vcombine.low %v628_v6, %v636_v7  ;;  %v740_v6 = vld [vmem:[#allocation10 + $0x520] sm:$0xff] }
 0x37a   :  { %4114 = vmatpush1.bf16.msra.mxu1 %v5271_v41  ;;  %4033 = vmatprep.subr.bf16.mxu0 %v5286_v14  ;;  %v4875_v41 = vcombine.low %v629_v8, %v637_v9  ;;  %v4890_v14 = vcombine.high %v644_v39, %v652_v42  ;;  %v748_v7 = vld [vmem:[#allocation10 + $0x560] sm:$0xff]  ;;  %v741_v8 = vld [vmem:[#allocation10 + $0x528] sm:$0xff] }
 0x37b   :  { %4115 = vmatprep.subr.bf16.mxu1 %v5288_v15  ;;  %v4892_v15 = vcombine.high %v645_v43, %v653_v12  ;;  %v749_v9 = vld [vmem:[#allocation10 + $0x568] sm:$0xff] }
 0x37d   :  { %4034 = vmatpush1.bf16.msra.mxu0 %v5285_v20  ;;  %v4889_v20 = vcombine.low %v644_v39, %v652_v42  ;;  %v756_v39 = vld [vmem:[#allocation10 + $0x5a0] sm:$0xff] }
 0x37e   :  { %4116 = vmatpush1.bf16.msra.mxu1 %v5287_v21  ;;  %4035 = vmatprep.subr.bf16.mxu0 %v5302_v22  ;;  %v4891_v21 = vcombine.low %v645_v43, %v653_v12  ;;  %v4906_v22 = vcombine.high %v660_v16, %v668_v17  ;;  %v764_v42 = vld [vmem:[#allocation10 + $0x5e0] sm:$0xff]  ;;  %v757_v43 = vld [vmem:[#allocation10 + $0x5a8] sm:$0xff] }
 0x37f   :  { %4117 = vmatprep.subr.bf16.mxu1 %v5304_v25  ;;  %v4908_v25 = vcombine.high %v661_v18, %v669_v19  ;;  %v765_v12 = vld [vmem:[#allocation10 + $0x5e8] sm:$0xff] }
 0x381   :  { %4036 = vmatpush1.bf16.msra.mxu0 %v5301_v29  ;;  %v4905_v29 = vcombine.low %v660_v16, %v668_v17  ;;  %v772_v16 = vld [vmem:[#allocation10 + $0x620] sm:$0xff] }
 0x382   :  { %4118 = vmatpush1.bf16.msra.mxu1 %v5303_v56  ;;  %4037 = vmatprep.subr.bf16.mxu0 %v5318_v30  ;;  %v4907_v56 = vcombine.low %v661_v18, %v669_v19  ;;  %v4922_v30 = vcombine.high %v676_v26, %v684_v27  ;;  %v780_v17 = vld [vmem:[#allocation10 + $0x660] sm:$0xff]  ;;  %v773_v18 = vld [vmem:[#allocation10 + $0x628] sm:$0xff] }
 0x383   :  { %4119 = vmatprep.subr.bf16.mxu1 %v5320_v59  ;;  %v4924_v59 = vcombine.high %v677_v28, %v685_v57  ;;  %v781_v19 = vld [vmem:[#allocation10 + $0x668] sm:$0xff] }
 0x385   :  { %4038 = vmatpush1.bf16.msra.mxu0 %v5317_v34  ;;  %v4921_v34 = vcombine.low %v676_v26, %v684_v27  ;;  %v788_v26 = vld [vmem:[#allocation10 + $0x6a0] sm:$0xff] }
 0x386   :  { %4120 = vmatpush1.bf16.msra.mxu1 %v5319_v35  ;;  %4130 = vmatprep.subr.bf16.mxu0 %v4826_v36  ;;  %v4923_v35 = vcombine.low %v677_v28, %v685_v57  ;;  %v4938_v36 = vcombine.high %v692_v58, %v700_v31  ;;  %v796_v27 = vld [vmem:[#allocation10 + $0x6e0] sm:$0xff]  ;;  %v789_v28 = vld [vmem:[#allocation10 + $0x6a8] sm:$0xff] }
 0x387   :  { %4212 = vmatprep.subr.bf16.mxu1 %v4828_v40  ;;  %v4940_v40 = vcombine.high %v693_v32, %v701_v33  ;;  %v797_v57 = vld [vmem:[#allocation10 + $0x6e8] sm:$0xff]  ;;  %v804_v58 = vld [vmem:[#allocation10 + $0x720] sm:$0xff] }
 0x388   :  { %4040 = vmatmul.mubr.bf16.vlgmr.msra.gmra.mrb[12].mxu0 %v5866_v13  ;;  %v812_v31 = vld [vmem:[#allocation10 + $0x760] sm:$0xff] }
 0x389   :  { %4122 = vmatmul.mubr.bf16.vlgmr.msra.gmra.mrb[12].mxu1 %v5866_v13  ;;  %4131 = vmatpush1.bf16.msra.mxu0 %v4825_v46  ;;  %v709_v46 = vld [vmem:[#allocation10 + $0x428] sm:$0xff] }
 0x38a   :  { %4162 = vmatprep.mubr.bf16.mxu0 %v5842_v55  ;;  %4213 = vmatpush1.bf16.msra.mxu1 %v4827_v49  ;;  %v4939_v49 = vcombine.low %v693_v32, %v701_v33  ;;  %v4956_v60 = vcombine.high %v709_v46, %v717_v47  ;;  %v805_v32 = vld [vmem:[#allocation10 + $0x728] sm:$0xff] }
 0x38b   :  { %4244 = vmatprep.mubr.bf16.mxu1 %v5842_v55  ;;  %4132 = vmatprep.subr.bf16.mxu0 %v4842_v54  ;;  %v4954_v54 = vcombine.high %v708_v44, %v716_v45  ;;  %v813_v33 = vld [vmem:[#allocation10 + $0x768] sm:$0xff] }
 0x38c   :  { %4214 = vmatprep.subr.bf16.mxu1 %v4844_v63  ;;  %v732_v63 = vld [vmem:[#allocation10 + $0x4e0] sm:$0xff] }
 0x38d   :  { %4133 = vmatpush1.bf16.msra.mxu0 %v4841_v2  ;;  %v4953_v2 = vcombine.low %v708_v44, %v716_v45  ;;  %v820_v44 = vld [vmem:[#allocation10 + $0x7a0] sm:$0xff] }
 0x38e   :  { %4215 = vmatpush1.bf16.msra.mxu1 %v4843_v3  ;;  %4134 = vmatprep.subr.bf16.mxu0 %v4858_v4  ;;  %v4955_v3 = vcombine.low %v709_v46, %v717_v47  ;;  %v4970_v4 = vcombine.high %v724_v62, %v732_v63  ;;  %v828_v45 = vld [vmem:[#allocation10 + $0x7e0] sm:$0xff]  ;;  %v821_v46 = vld [vmem:[#allocation10 + $0x7a8] sm:$0xff] }
 0x38f   :  { %4216 = vmatprep.subr.bf16.mxu1 %v4860_v5  ;;  %v4972_v5 = vcombine.high %v725_v0, %v733_v1  ;;  %v829_v47 = vld [vmem:[#allocation10 + $0x7e8] sm:$0xff] }
 0x391   :  { %4135 = vmatpush1.bf16.msra.mxu0 %v4857_v10  ;;  %v4969_v10 = vcombine.low %v724_v62, %v732_v63  ;;  %v836_v62 = vld [vmem:[#allocation10 + $0x820] sm:$0xff] }
 0x392   :  { %4217 = vmatpush1.bf16.msra.mxu1 %v4859_v11  ;;  %4136 = vmatprep.subr.bf16.mxu0 %v4874_v37  ;;  %v4971_v11 = vcombine.low %v725_v0, %v733_v1  ;;  %v4986_v37 = vcombine.high %v740_v6, %v748_v7  ;;  %v844_v63 = vld [vmem:[#allocation10 + $0x860] sm:$0xff]  ;;  %v837_v0 = vld [vmem:[#allocation10 + $0x828] sm:$0xff] }
 0x393   :  { %4218 = vmatprep.subr.bf16.mxu1 %v4876_v38  ;;  %v4988_v38 = vcombine.high %v741_v8, %v749_v9  ;;  %v845_v1 = vld [vmem:[#allocation10 + $0x868] sm:$0xff] }
 0x395   :  { %4137 = vmatpush1.bf16.msra.mxu0 %v4873_v24  ;;  %v4985_v24 = vcombine.low %v740_v6, %v748_v7  ;;  %v852_v6 = vld [vmem:[#allocation10 + $0x8a0] sm:$0xff] }
 0x396   :  { %4219 = vmatpush1.bf16.msra.mxu1 %v4875_v41  ;;  %4138 = vmatprep.subr.bf16.mxu0 %v4890_v14  ;;  %v4987_v41 = vcombine.low %v741_v8, %v749_v9  ;;  %v5002_v14 = vcombine.high %v756_v39, %v764_v42  ;;  %v860_v7 = vld [vmem:[#allocation10 + $0x8e0] sm:$0xff]  ;;  %v5081_v8 = vcombine.low %v836_v62, %v844_v63  ;;  %v853_v9 = vld [vmem:[#allocation10 + $0x8a8] sm:$0xff] }
 0x397   :  { %4220 = vmatprep.subr.bf16.mxu1 %v4892_v15  ;;  %v5004_v15 = vcombine.high %v757_v43, %v765_v12 }
 0x399   :  { %4139 = vmatpush1.bf16.msra.mxu0 %v4889_v20  ;;  %v5001_v20 = vcombine.low %v756_v39, %v764_v42  ;;  %v876_v39 = vld [vmem:[#allocation10 + $0x960] sm:$0xff] }
 0x39a   :  { %4221 = vmatpush1.bf16.msra.mxu1 %v4891_v21  ;;  %4140 = vmatprep.subr.bf16.mxu0 %v4906_v22  ;;  %v5003_v21 = vcombine.low %v757_v43, %v765_v12  ;;  %v5018_v22 = vcombine.high %v772_v16, %v780_v17  ;;  %v869_v43 = vld [vmem:[#allocation10 + $0x928] sm:$0xff] }
 0x39b   :  { %4222 = vmatprep.subr.bf16.mxu1 %v4908_v25  ;;  %v5020_v25 = vcombine.high %v773_v18, %v781_v19  ;;  %v877_v12 = vld [vmem:[#allocation10 + $0x968] sm:$0xff] }
 0x39d   :  { %4141 = vmatpush1.bf16.msra.mxu0 %v4905_v29  ;;  %v5017_v29 = vcombine.low %v772_v16, %v780_v17  ;;  %v884_v16 = vld [vmem:[#allocation10 + $0x9a0] sm:$0xff] }
 0x39e   :  { %4223 = vmatpush1.bf16.msra.mxu1 %v4907_v56  ;;  %4142 = vmatprep.subr.bf16.mxu0 %v4922_v30  ;;  %v5019_v56 = vcombine.low %v773_v18, %v781_v19  ;;  %v5034_v30 = vcombine.high %v788_v26, %v796_v27  ;;  %v892_v17 = vld [vmem:[#allocation10 + $0x9e0] sm:$0xff]  ;;  %v885_v18 = vld [vmem:[#allocation10 + $0x9a8] sm:$0xff] }
 0x39f   :  { %4224 = vmatprep.subr.bf16.mxu1 %v4924_v59  ;;  %v5036_v59 = vcombine.high %v789_v28, %v797_v57  ;;  %v893_v19 = vld [vmem:[#allocation10 + $0x9e8] sm:$0xff] }
 0x3a1   :  { %4143 = vmatpush1.bf16.msra.mxu0 %v4921_v34  ;;  %v5033_v34 = vcombine.low %v788_v26, %v796_v27  ;;  %v5132_v26 = vcombine.high %v885_v18, %v893_v19  ;;  %v900_v27 = vld [vmem:[#allocation10 + $0xa20] sm:$0xff] }
 0x3a2   :  { %4225 = vmatpush1.bf16.msra.mxu1 %v4923_v35  ;;  %4144 = vmatprep.subr.bf16.mxu0 %v4938_v36  ;;  %v5035_v35 = vcombine.low %v789_v28, %v797_v57  ;;  %v5050_v36 = vcombine.high %v804_v58, %v812_v31  ;;  %v908_v28 = vld [vmem:[#allocation10 + $0xa60] sm:$0xff]  ;;  %v901_v57 = vld [vmem:[#allocation10 + $0xa28] sm:$0xff] }
 0x3a3   :  { %4226 = vmatprep.subr.bf16.mxu1 %v4940_v40  ;;  %v5052_v40 = vcombine.high %v805_v32, %v813_v33 }
 0x3a5   :  { %4145 = vmatpush1.bf16.msra.mxu0 %v4937_v48  ;;  %v5049_v48 = vcombine.low %v804_v58, %v812_v31  ;;  %v5146_v58 = vcombine.high %v900_v27, %v908_v28 }
 0x3a6   :  { %4227 = vmatpush1.bf16.msra.mxu1 %v4939_v49  ;;  %4146 = vmatprep.subr.bf16.mxu0 %v4954_v54  ;;  %v5051_v49 = vcombine.low %v805_v32, %v813_v33  ;;  %v5066_v54 = vcombine.high %v820_v44, %v828_v45  ;;  %v916_v32 = vld [vmem:[#allocation10 + $0xaa0] sm:$0xff] }
 0x3a7   :  { %4228 = vmatprep.subr.bf16.mxu1 %v4956_v60  ;;  %v5068_v60 = vcombine.high %v821_v46, %v829_v47  ;;  %v924_v33 = vld [vmem:[#allocation10 + $0xae0] sm:$0xff] }
 0x3a9   :  { %4147 = vmatpush1.bf16.msra.mxu0 %v4953_v2  ;;  %v5065_v2 = vcombine.low %v820_v44, %v828_v45  ;;  %v5145_v44 = vcombine.low %v900_v27, %v908_v28 }
 0x3aa   :  { %4229 = vmatpush1.bf16.msra.mxu1 %v4955_v3  ;;  %4148 = vmatprep.subr.bf16.mxu0 %v4970_v4  ;;  %v5067_v3 = vcombine.low %v821_v46, %v829_v47  ;;  %v5082_v4 = vcombine.high %v836_v62, %v844_v63 }
 0x3ab   :  { %4230 = vmatprep.subr.bf16.mxu1 %v4972_v5  ;;  %v5084_v5 = vcombine.high %v837_v0, %v845_v1 }
 0x3ad   :  { %4149 = vmatpush1.bf16.msra.mxu0 %v4969_v10  ;;  %v861_v10 = vld [vmem:[#allocation10 + $0x8e8] sm:$0xff] }
 0x3ae   :  { %4231 = vmatpush1.bf16.msra.mxu1 %v4971_v11  ;;  %4150 = vmatprep.subr.bf16.mxu0 %v4986_v37  ;;  %v5083_v11 = vcombine.low %v837_v0, %v845_v1  ;;  %v5098_v37 = vcombine.high %v852_v6, %v860_v7  ;;  %v5100_v42 = vcombine.high %v853_v9, %v861_v10  ;;  %v933_v0 = vld [vmem:[#allocation10 + $0xb28] sm:$0xff] }
 0x3af   :  { %4232 = vmatprep.subr.bf16.mxu1 %v4988_v38  ;;  %v868_v38 = vld [vmem:[#allocation10 + $0x920] sm:$0xff]  ;;  %v941_v1 = vld [vmem:[#allocation10 + $0xb68] sm:$0xff] }
 0x3b1   :  { %4151 = vmatpush1.bf16.msra.mxu0 %v4985_v24  ;;  %v5097_v24 = vcombine.low %v852_v6, %v860_v7 }
 0x3b2   :  { %4233 = vmatpush1.bf16.msra.mxu1 %v4987_v41  ;;  %4152 = vmatprep.subr.bf16.mxu0 %v5002_v14  ;;  %v5099_v41 = vcombine.low %v853_v9, %v861_v10  ;;  %v5114_v14 = vcombine.high %v868_v38, %v876_v39  ;;  %v5180_v9 = vcombine.high %v933_v0, %v941_v1  ;;  %v948_v10 = vld [vmem:[#allocation10 + $0xba0] sm:$0xff] }
 0x3b3   :  { %4234 = vmatprep.subr.bf16.mxu1 %v5004_v15  ;;  %v5116_v15 = vcombine.high %v869_v43, %v877_v12 }
 0x3b5   :  { %4153 = vmatpush1.bf16.msra.mxu0 %v5001_v20  ;;  %v5113_v20 = vcombine.low %v868_v38, %v876_v39 }
 0x3b6   :  { %4235 = vmatpush1.bf16.msra.mxu1 %v5003_v21  ;;  %4154 = vmatprep.subr.bf16.mxu0 %v5018_v22  ;;  %v5884_v21 = vld [vmem:[#allocation12] sm:$0xff]  ;;  %v5115_v22 = vcombine.low %v869_v43, %v877_v12  ;;  %v949_v43 = vld [vmem:[#allocation10 + $0xba8] sm:$0xff] }
 0x3b7   :  { %4236 = vmatprep.subr.bf16.mxu1 %v5020_v25  ;;  %v5130_v25 = vcombine.high %v884_v16, %v892_v17  ;;  %v957_v12 = vld [vmem:[#allocation10 + $0xbe8] sm:$0xff] }
 0x3b8   :  { %v5196_v28 = vcombine.high %v949_v43, %v957_v12 }
 0x3b9   :  { %4155 = vmatpush1.bf16.msra.mxu0 %v5017_v29  ;;  %v909_v29 = vld [vmem:[#allocation10 + $0xa68] sm:$0xff] }
 0x3ba   :  { %4237 = vmatpush1.bf16.msra.mxu1 %v5019_v56  ;;  %4156 = vmatprep.subr.bf16.mxu0 %v5034_v30  ;;  %v1090_v56 = vunpack.c.l.bf16 %v5884_v21  ;;  %v5129_v30 = vcombine.low %v884_v16, %v892_v17  ;;  %v5148_v31 = vcombine.high %v901_v57, %v909_v29  ;;  %v5147_v47 = vcombine.low %v901_v57, %v909_v29  ;;  %v964_v57 = vld [vmem:[#allocation10 + $0xc20] sm:$0xff] }
 0x3bb   :  { %4238 = vmatprep.subr.bf16.mxu1 %v5036_v59  ;;  %v5131_v59 = vcombine.low %v885_v18, %v893_v19  ;;  %v5179_v17 = vcombine.low %v933_v0, %v941_v1  ;;  %v972_v29 = vld [vmem:[#allocation10 + $0xc60] sm:$0xff] }
 0x3bc   :  { %v1105_v45 = vrot.slane %v1090_v56, %v5812_v51  ;;  %v1113_v46 = vrot.slane %v1090_v56, %v5818_v53 }
 0x3bd   :  { %4157 = vmatpush1.bf16.msra.mxu0 %v5033_v34  ;;  %v1101_v34 = vrot.slane %v1090_v56, %v5809_v50 }
 0x3be   :  { %4239 = vmatpush1.bf16.msra.mxu1 %v5035_v35  ;;  %4158 = vmatprep.subr.bf16.mxu0 %v5050_v36  ;;  %v1109_v35 = vrot.slane %v1090_v56, %v5815_v52  ;;  %v917_v36 = vld [vmem:[#allocation10 + $0xaa8] sm:$0xff] }
 0x3bf   :  { %4240 = vmatprep.subr.bf16.mxu1 %v5052_v40  ;;  %v925_v40 = vld [vmem:[#allocation10 + $0xae8] sm:$0xff]  ;;  %v1181_v62 = vrot.slane %v1101_v34, %v5809_v50 }
 0x3c0   :  { %v1189_v63 = vrot.slane %v1109_v35, %v5809_v50 }
 0x3c1   :  { %4159 = vmatpush1.bf16.msra.mxu0 %v5049_v48  ;;  %v5162_v48 = vcombine.high %v916_v32, %v924_v33 }
 0x3c2   :  { %4241 = vmatpush1.bf16.msra.mxu1 %v5051_v49  ;;  %4160 = vmatprep.subr.bf16.mxu0 %v5066_v54  ;;  %v5164_v49 = vcombine.high %v917_v36, %v925_v40  ;;  %v932_v54 = vld [vmem:[#allocation10 + $0xb20] sm:$0xff] }
 0x3c3   :  { %4242 = vmatprep.subr.bf16.mxu1 %v5068_v60  ;;  %v940_v60 = vld [vmem:[#allocation10 + $0xb60] sm:$0xff] }
 0x3c4   :  { %v5178_v6 = vcombine.high %v932_v54, %v940_v60  ;;  %v5177_v16 = vcombine.low %v932_v54, %v940_v60  ;;  %v981_v54 = vld [vmem:[#allocation10 + $0xca8] sm:$0xff] }
 0x3c5   :  { %4161 = vmatpush1.bf16.msra.mxu0 %v5065_v2  ;;  %v1185_v2 = vrot.slane %v1105_v45, %v5809_v50  ;;  %v5905_v45 = vld [vmem:[#allocation13] sm:$0xff]  ;;  %v989_v60 = vld [vmem:[#allocation10 + $0xce8] sm:$0xff] }
 0x3c6   :  { %4243 = vmatpush1.bf16.msra.mxu1 %v5067_v3  ;;  %4171 = vmatprep.subr.bf16.mxu0 %v5082_v4  ;;  %v1193_v3 = vrot.slane %v1113_v46, %v5809_v50  ;;  %v5161_v4 = vcombine.low %v916_v32, %v924_v33 }
 0x3c7   :  { %4253 = vmatprep.subr.bf16.mxu1 %v5084_v5  ;;  %v5163_v5 = vcombine.low %v917_v36, %v925_v40  ;;  %v5195_v36 = vcombine.low %v949_v43, %v957_v12  ;;  %v5210_v40 = vcombine.high %v964_v57, %v972_v29  ;;  %v1013_v43 = vld [vmem:[#allocation10 + $0xda8] sm:$0xff] }
 0x3c8   :  { %4163 = vmatmul.mubr.bf16.vlgmr.msra.gmra.mrb[16].mxu0 %v5844_v61  ;;  %v1021_v12 = vld [vmem:[#allocation10 + $0xde8] sm:$0xff] }
 0x3c9   :  { %4245 = vmatmul.mubr.bf16.vlgmr.msra.gmra.mrb[16].mxu1 %v5844_v61  ;;  %4172 = vmatpush1.bf16.msra.mxu0 %v5081_v8 }
 0x3ca   :  { %4203 = vmatprep.mubr.bf16.mxu0 %v5850_v23  ;;  %4254 = vmatpush1.bf16.msra.mxu1 %v5083_v11  ;;  %v956_v11 = vld [vmem:[#allocation10 + $0xbe0] sm:$0xff] }
 0x3cb   :  { %4285 = vmatprep.mubr.bf16.mxu1 %v5850_v23  ;;  %4173 = vmatprep.subr.bf16.mxu0 %v5098_v37  ;;  %v5193_v33 = vcombine.low %v948_v10, %v956_v11 }
 0x3cc   :  { %4255 = vmatprep.subr.bf16.mxu1 %v5100_v42 }
 0x3cd   :  { %4174 = vmatpush1.bf16.msra.mxu0 %v5097_v24 }
 0x3ce   :  { %4256 = vmatpush1.bf16.msra.mxu1 %v5099_v41  ;;  %4175 = vmatprep.subr.bf16.mxu0 %v5114_v14 }
 0x3cf   :  { %4257 = vmatprep.subr.bf16.mxu1 %v5116_v15 }
 0x3d1   :  { %4176 = vmatpush1.bf16.msra.mxu0 %v5113_v20 }
 0x3d2   :  { %4258 = vmatpush1.bf16.msra.mxu1 %v5115_v22  ;;  %4177 = vmatprep.subr.bf16.mxu0 %v5130_v25  ;;  %v5194_v25 = vcombine.high %v948_v10, %v956_v11 }
 0x3d3   :  { %4259 = vmatprep.subr.bf16.mxu1 %v5132_v26 }
 0x3d5   :  { %4178 = vmatpush1.bf16.msra.mxu0 %v5129_v30 }
 0x3d6   :  { %4260 = vmatpush1.bf16.msra.mxu1 %v5131_v59  ;;  %4179 = vmatprep.subr.bf16.mxu0 %v5146_v58  ;;  %v965_v59 = vld [vmem:[#allocation10 + $0xc28] sm:$0xff] }
 0x3d7   :  { %4261 = vmatprep.subr.bf16.mxu1 %v5148_v31  ;;  %v973_v58 = vld [vmem:[#allocation10 + $0xc68] sm:$0xff] }
 0x3d8   :  { %v5211_v0 = vcombine.low %v965_v59, %v973_v58 }
 0x3d9   :  { %4180 = vmatpush1.bf16.msra.mxu0 %v5145_v44  ;;  %v980_v44 = vld [vmem:[#allocation10 + $0xca0] sm:$0xff] }
 0x3da   :  { %4262 = vmatpush1.bf16.msra.mxu1 %v5147_v47  ;;  %4181 = vmatprep.subr.bf16.mxu0 %v5162_v48  ;;  %v5212_v48 = vcombine.high %v965_v59, %v973_v58 }
 0x3db   :  { %v3877_v7 = vpop.f32.mrb[8].mxu0  ;;  %v3959_v8 = vpop.f32.mrb[8].mxu1  ;;  %4263 = vmatprep.subr.bf16.mxu1 %v5164_v49  ;;  %v988_v49 = vld [vmem:[#allocation10 + $0xce0] sm:$0xff] }
 0x3dc   :  { %v5329_v37 = vadd.f32 %v3877_v7, %v1181_v62  ;;  %v5331_v38 = vadd.f32 %v3959_v8, %v1189_v63  ;;  %v3879_v39 = vpop.f32.mrb[9].mxu0  ;;  %v3961_v42 = vpop.f32.mrb[9].mxu1  ;;  %v5209_v62 = vcombine.low %v964_v57, %v972_v29  ;;  %v5910_v63 = vunpack.c.l.bf16 %v5905_v45 }
 0x3dd   :  { %v5330_v24 = vadd.f32 %v3879_v39, %v1185_v2  ;;  %v5332_v41 = vadd.f32 %v3961_v42, %v1193_v3  ;;  %v3881_v14 = vpop.f32.mrb[10].mxu0  ;;  %v3963_v15 = vpop.f32.mrb[10].mxu1  ;;  %4182 = vmatpush1.bf16.msra.mxu0 %v5161_v4  ;;  %v5226_v1 = vcombine.high %v980_v44, %v988_v49  ;;  %v5228_v2 = vcombine.high %v981_v54, %v989_v60  ;;  %v996_v3 = vld [vmem:[#allocation10 + $0xd20] sm:$0xff] }
 0x3de   :  { %v4458_v18 = vpack.c.bf16 %v5329_v37, %v5329_v37  ;;  %v4460_v19 = vpack.c.bf16 %v5331_v38, %v5331_v38  ;;  %4264 = vmatpush1.bf16.msra.mxu1 %v5163_v5  ;;  %v3882_v20 = vpop.f32.mrb[11].mxu0  ;;  %v3964_v22 = vpop.f32.mrb[11].mxu1  ;;  %4183 = vmatprep.subr.bf16.mxu0 %v5178_v6  ;;  %v1004_v4 = vld [vmem:[#allocation10 + $0xd60] sm:$0xff]  ;;  %v997_v5 = vld [vmem:[#allocation10 + $0xd28] sm:$0xff]  ;;  %v5225_v7 = vcombine.low %v980_v44, %v988_v49 }
 0x3df   :  { %v4459_v26 = vpack.c.bf16 %v5330_v24, %v5330_v24  ;;  %v4461_v27 = vpack.c.bf16 %v5332_v41, %v5332_v41  ;;  %4265 = vmatprep.subr.bf16.mxu1 %v5180_v9  ;;  %v1005_v6 = vld [vmem:[#allocation10 + $0xd68] sm:$0xff]  ;;  %v4583_v8 = vrot.slane %v5910_v63, %v5809_v50  ;;  %v5227_v9 = vcombine.low %v981_v54, %v989_v60  ;;  %v1012_v38 = vld [vmem:[#allocation10 + $0xda0] sm:$0xff] }
 0x3e0   :  { %v5895_v56 = vunpack.c.l.bf16 %v4458_v18  ;;  %v5897_v30 = vunpack.c.l.bf16 %v4460_v19  ;;  %v5242_v10 = vcombine.high %v996_v3, %v1004_v4  ;;  %v4591_v11 = vrot.slane %v5910_v63, %v5815_v52  ;;  %v1020_v39 = vld [vmem:[#allocation10 + $0xde0] sm:$0xff] }
 0x3e1   :  { %v5899_v31 = vunpack.c.l.bf16 %v4459_v26  ;;  %v5901_v32 = vunpack.c.l.bf16 %v4461_v27  ;;  %4184 = vmatpush1.bf16.msra.mxu0 %v5177_v16  ;;  %v5244_v37 = vcombine.high %v997_v5, %v1005_v6  ;;  %v4587_v42 = vrot.slane %v5910_v63, %v5812_v51  ;;  %v1028_v26 = vld [vmem:[#allocation10 + $0xe20] sm:$0xff] }
 0x3e2   :  { %v4506_v34 = vmul.f32 0.70710677, %v5895_v56  ;;  %v4508_v35 = vmul.f32 0.70710677, %v5897_v30  ;;  %4266 = vmatpush1.bf16.msra.mxu1 %v5179_v17  ;;  %4185 = vmatprep.subr.bf16.mxu0 %v5194_v25  ;;  %v5241_v24 = vcombine.low %v996_v3, %v1004_v4  ;;  %v5243_v41 = vcombine.low %v997_v5, %v1005_v6  ;;  %v1036_v27 = vld [vmem:[#allocation10 + $0xe60] sm:$0xff] }
 0x3e3   :  { %v4507_v46 = vmul.f32 0.70710677, %v5899_v31  ;;  %v4509_v47 = vmul.f32 0.70710677, %v5901_v32  ;;  %4267 = vmatprep.subr.bf16.mxu1 %v5196_v28  ;;  %v4663_v15 = vrot.slane %v4583_v8, %v5809_v50  ;;  %v4595_v16 = vrot.slane %v5910_v63, %v5818_v53  ;;  %v1044_v63 = vld [vmem:[#allocation10 + $0xea0] sm:$0xff] }
 0x3e4   :  { %5409 = verf.f32 %v4506_v34  ;;  %v5258_v17 = vcombine.high %v1012_v38, %v1020_v39  ;;  %v4490_v19 = vmul.f32 0.5, %v5895_v56  ;;  %v4671_v22 = vrot.slane %v4591_v11, %v5809_v50  ;;  %v1037_v34 = vld [vmem:[#allocation10 + $0xe68] sm:$0xff]  ;;  %v1060_v11 = vld [vmem:[#allocation10 + $0xf20] sm:$0xff] }
 0x3e5   :  { %5411 = verf.f32 %v4508_v35  ;;  %4186 = vmatpush1.bf16.msra.mxu0 %v5193_v33  ;;  %v5260_v25 = vcombine.high %v1013_v43, %v1021_v12  ;;  %v4492_v57 = vmul.f32 0.5, %v5897_v30  ;;  %v4667_v59 = vrot.slane %v4587_v42, %v5809_v50  ;;  %v1029_v33 = vld [vmem:[#allocation10 + $0xe28] sm:$0xff] }
 0x3e6   :  { %5413 = verf.f32 %v4507_v46  ;;  %4268 = vmatpush1.bf16.msra.mxu1 %v5195_v36  ;;  %4187 = vmatprep.subr.bf16.mxu0 %v5210_v40  ;;  %v5257_v58 = vcombine.low %v1012_v38, %v1020_v39  ;;  %v4491_v56 = vmul.f32 0.5, %v5899_v31  ;;  %v5259_v44 = vcombine.low %v1013_v43, %v1021_v12  ;;  %v1045_v31 = vld [vmem:[#allocation10 + $0xea8] sm:$0xff] }
 0x3e7   :  { %5415 = verf.f32 %v4509_v47  ;;  %4269 = vmatprep.subr.bf16.mxu1 %v5212_v48  ;;  %v4493_v47 = vmul.f32 0.5, %v5901_v32  ;;  %v5274_v30 = vcombine.high %v1028_v26, %v1036_v27  ;;  %v4675_v60 = vrot.slane %v4595_v16, %v5809_v50  ;;  %v1061_v39 = vld [vmem:[#allocation10 + $0xf28] sm:$0xff] }
 0x3e8   :  { %v5273_v32 = vcombine.low %v1028_v26, %v1036_v27  ;;  %v5275_v6 = vcombine.low %v1029_v33, %v1037_v34  ;;  %v1069_v42 = vld [vmem:[#allocation10 + $0xf68] sm:$0xff] }
 0x3e9   :  { %4188 = vmatpush1.bf16.msra.mxu0 %v5209_v62  ;;  %v5276_v62 = vcombine.high %v1029_v33, %v1037_v34  ;;  %v5308_v16 = vcombine.high %v1061_v39, %v1069_v42  ;;  %v5307_v26 = vcombine.low %v1061_v39, %v1069_v42 }
 0x3ea   :  { %4270 = vmatpush1.bf16.msra.mxu1 %v5211_v0  ;;  %4189 = vmatprep.subr.bf16.mxu0 %v5226_v1  ;;  %v1052_v0 = vld [vmem:[#allocation10 + $0xee0] sm:$0xff] }
 0x3eb   :  { %4271 = vmatprep.subr.bf16.mxu1 %v5228_v2  ;;  %v1053_v2 = vld [vmem:[#allocation10 + $0xee8] sm:$0xff]  ;;  %v5289_v12 = vcombine.low %v1044_v63, %v1052_v0 }
 0x3ed   :  { %4190 = vmatpush1.bf16.msra.mxu0 %v5225_v7  ;;  %v5290_v7 = vcombine.high %v1044_v63, %v1052_v0  ;;  %v623_v63 = vld [vmem:[#allocation10 + $0x178] sm:$0xff] }
 0x3ee   :  { %v5410_v14 = vpop.eup %5409  ;;  %4272 = vmatpush1.bf16.msra.mxu1 %v5227_v9  ;;  %4191 = vmatprep.subr.bf16.mxu0 %v5242_v10  ;;  %v5292_v10 = vcombine.high %v1045_v31, %v1053_v2 }
 0x3ef   :  { %v5412_v18 = vpop.eup %5411  ;;  %v4538_v20 = vadd.f32 1.0, %v5410_v14  ;;  %4273 = vmatprep.subr.bf16.mxu1 %v5244_v37  ;;  %v1068_v37 = vld [vmem:[#allocation10 + $0xf60] sm:$0xff] }
 0x3f0   :  { %v5414_v28 = vpop.eup %5413  ;;  %v4540_v29 = vadd.f32 1.0, %v5412_v18  ;;  %v5306_v14 = vcombine.high %v1060_v11, %v1068_v37  ;;  %v1084_v18 = vld [vmem:[#allocation10 + $0xfe0] sm:$0xff] }
 0x3f1   :  { %v5416_v35 = vpop.eup %5415  ;;  %v4554_v36 = vmul.f32 %v4538_v20, %v4490_v19  ;;  %v4539_v40 = vadd.f32 1.0, %v5414_v28  ;;  %4192 = vmatpush1.bf16.msra.mxu0 %v5241_v24  ;;  %v1077_v20 = vld [vmem:[#allocation10 + $0xfa8] sm:$0xff] }
 0x3f2   :  { %v4556_v46 = vmul.f32 %v4540_v29, %v4492_v57  ;;  %v4541_v48 = vadd.f32 1.0, %v5416_v35  ;;  %4274 = vmatpush1.bf16.msra.mxu1 %v5243_v41  ;;  %4193 = vmatprep.subr.bf16.mxu0 %v5258_v17  ;;  %v5291_v41 = vcombine.low %v1045_v31, %v1053_v2  ;;  %v1076_v17 = vld [vmem:[#allocation10 + $0xfa0] sm:$0xff]  ;;  %v582_v57 = vld [vmem:[#allocation10 + $0x30] sm:$0xff] }
 0x3f3   :  { %v4724_v49 = vmul.f32 %v4663_v15, %v4554_v36  ;;  %v4555_v54 = vmul.f32 %v4539_v40, %v4491_v56  ;;  %4275 = vmatprep.subr.bf16.mxu1 %v5260_v25  ;;  %v5305_v25 = vcombine.low %v1060_v11, %v1068_v37  ;;  %v5322_v27 = vcombine.high %v1076_v17, %v1084_v18  ;;  %v590_v29 = vld [vmem:[#allocation10 + $0x70] sm:$0xff]  ;;  %v647_v37 = vld [vmem:[#allocation10 + $0x238] sm:$0xff] }
 0x3f4   :  { %v4557_v1 = vmul.f32 %v4541_v48, %v4493_v47  ;;  %v4726_v4 = vmul.f32 %v4671_v22, %v4556_v46  ;;  %v1085_v22 = vld [vmem:[#allocation10 + $0xfe8] sm:$0xff]  ;;  %v5321_v33 = vcombine.low %v1076_v17, %v1084_v18  ;;  %v4830_v35 = vcombine.high %v582_v57, %v590_v29  ;;  %v598_v56 = vld [vmem:[#allocation10 + $0xb0] sm:$0xff]  ;;  %v599_v46 = vld [vmem:[#allocation10 + $0xb8] sm:$0xff] }
 0x3f5   :  { %v4740_v3 = vsel %vm421_vm6, %v4724_v49, 0.0  ;;  %v4725_v5 = vmul.f32 %v4667_v59, %v4555_v54  ;;  %4194 = vmatpush1.bf16.msra.mxu0 %v5257_v58  ;;  %v5324_v28 = vcombine.high %v1077_v20, %v1085_v22  ;;  %v583_v59 = vld [vmem:[#allocation10 + $0x38] sm:$0xff]  ;;  %v5323_v34 = vcombine.low %v1077_v20, %v1085_v22  ;;  %v606_v40 = vld [vmem:[#allocation10 + $0xf0] sm:$0xff] }
 0x3f6   :  { %4276 = vmatpush1.bf16.msra.mxu1 %v5259_v44  ;;  %4195 = vmatprep.subr.bf16.mxu0 %v5274_v30  ;;  %v4727_v9 = vmul.f32 %v4675_v60, %v4557_v1  ;;  %v4743_v43 = vsel %vm421_vm6, %v4726_v4, 0.0  ;;  %v591_v58 = vld [vmem:[#allocation10 + $0x78] sm:$0xff]  ;;  %v4829_v44 = vcombine.low %v582_v57, %v590_v29  ;;  %v4846_v30 = vcombine.high %v598_v56, %v606_v40  ;;  %v614_v49 = vld [vmem:[#allocation10 + $0x130] sm:$0xff] }
 0x3f7   :  { %v4741_v8 = vsel %vm421_vm6, %v4725_v5, 0.0  ;;  %4277 = vmatprep.subr.bf16.mxu1 %v5276_v62  ;;  %v4832_v36 = vcombine.high %v583_v59, %v591_v58  ;;  %v607_v47 = vld [vmem:[#allocation10 + $0xf8] sm:$0xff]  ;;  %v4831_v48 = vcombine.low %v583_v59, %v591_v58  ;;  %v622_v54 = vld [vmem:[#allocation10 + $0x170] sm:$0xff]  ;;  %v4845_v0 = vcombine.low %v598_v56, %v606_v40 }
 0x3f8   :  { %v4742_v38 = vadd.f32 %v4741_v8, %v4740_v3  ;;  %v4745_v15 = vsel %vm421_vm6, %v4727_v9, 0.0  ;;  %v4848_v60 = vcombine.high %v599_v46, %v607_v47  ;;  %v615_v62 = vld [vmem:[#allocation10 + $0x138] sm:$0xff]  ;;  %v4847_v1 = vcombine.low %v599_v46, %v607_v47  ;;  %v630_v3 = vld [vmem:[#allocation10 + $0x1b0] sm:$0xff] }
 0x3f9   :  { %4196 = vmatpush1.bf16.msra.mxu0 %v5273_v32  ;;  %v4862_v31 = vcombine.high %v614_v49, %v622_v54  ;;  %v4864_v2 = vcombine.high %v615_v62, %v623_v63  ;;  %v638_v4 = vld [vmem:[#allocation10 + $0x1f0] sm:$0xff]  ;;  %v631_v5 = vld [vmem:[#allocation10 + $0x1b8] sm:$0xff] }
 0x3fa   :  { %v4744_v24 = vadd.f32 %v4743_v43, %v4742_v38  ;;  %4278 = vmatpush1.bf16.msra.mxu1 %v5275_v6  ;;  %4197 = vmatprep.subr.bf16.mxu0 %v5290_v7  ;;  %v639_v32 = vld [vmem:[#allocation10 + $0x1f8] sm:$0xff]  ;;  %v4861_v6 = vcombine.low %v614_v49, %v622_v54  ;;  %v4863_v7 = vcombine.low %v615_v62, %v623_v63  ;;  %v654_v11 = vld [vmem:[#allocation10 + $0x270] sm:$0xff] }
 0x3fb   :  { %4279 = vmatprep.subr.bf16.mxu1 %v5292_v10  ;;  %v4878_v8 = vcombine.high %v630_v3, %v638_v4  ;;  %v4880_v9 = vcombine.high %v631_v5, %v639_v32  ;;  %v646_v10 = vld [vmem:[#allocation10 + $0x230] sm:$0xff]  ;;  %v655_v38 = vld [vmem:[#allocation10 + $0x278] sm:$0xff]  ;;  %v4879_v39 = vcombine.low %v631_v5, %v639_v32 }
 0x3fc   :  { %v5932_v19 = vadd.f32 %v4745_v15, %v4744_v24  ;;  %v4894_v42 = vcombine.high %v646_v10, %v654_v11  ;;  %v4896_v43 = vcombine.high %v647_v37, %v655_v38  ;;  %v670_v24 = vld [vmem:[#allocation10 + $0x2f0] sm:$0xff]  ;;  %v4893_v15 = vcombine.low %v646_v10, %v654_v11  ;;  %v711_v47 = vld [vmem:[#allocation10 + $0x438] sm:$0xff] }
 0x3fd   :  { %4198 = vmatpush1.bf16.msra.mxu0 %v5289_v12  ;;  %v662_v12 = vld [vmem:[#allocation10 + $0x2b0] sm:$0xff] }
 0x3fe   :  { %4280 = vmatpush1.bf16.msra.mxu1 %v5291_v41  ;;  %4199 = vmatprep.subr.bf16.mxu0 %v5306_v14  ;;  %v663_v41 = vld [vmem:[#allocation10 + $0x2b8] sm:$0xff]  ;;  %v4910_v17 = vcombine.high %v662_v12, %v670_v24  ;;  %v678_v20 = vld [vmem:[#allocation10 + $0x330] sm:$0xff] }
 0x3ff   :  { %4281 = vmatprep.subr.bf16.mxu1 %v5308_v16  ;;  %v671_v14 = vld [vmem:[#allocation10 + $0x2f8] sm:$0xff]  ;;  %v4895_v16 = vcombine.low %v647_v37, %v655_v38  ;;  %v686_v22 = vld [vmem:[#allocation10 + $0x370] sm:$0xff] }
 0x400   :  { %v4912_v18 = vcombine.high %v663_v41, %v671_v14  ;;  %v4926_v57 = vcombine.high %v678_v20, %v686_v22  ;;  %v694_v59 = vld [vmem:[#allocation10 + $0x3b0] sm:$0xff] }
 0x401   :  { %4200 = vmatpush1.bf16.msra.mxu0 %v5305_v25  ;;  %v679_v25 = vld [vmem:[#allocation10 + $0x338] sm:$0xff]  ;;  %v702_v58 = vld [vmem:[#allocation10 + $0x3f0] sm:$0xff] }
 0x402   :  { %4282 = vmatpush1.bf16.msra.mxu1 %v5307_v26  ;;  %4201 = vmatprep.subr.bf16.mxu0 %v5322_v27  ;;  %v687_v26 = vld [vmem:[#allocation10 + $0x378] sm:$0xff]  ;;  %v4909_v27 = vcombine.low %v662_v12, %v670_v24  ;;  %v4942_v56 = vcombine.high %v694_v59, %v702_v58  ;;  %v718_v46 = vld [vmem:[#allocation10 + $0x470] sm:$0xff] }
 0x403   :  { %4283 = vmatprep.subr.bf16.mxu1 %v5324_v28  ;;  %v4911_v28 = vcombine.low %v663_v41, %v671_v14  ;;  %v4928_v29 = vcombine.high %v679_v25, %v687_v26  ;;  %v726_v62 = vld [vmem:[#allocation10 + $0x4b0] sm:$0xff] }
 0x404   :  { %v734_v63 = vld [vmem:[#allocation10 + $0x4f0] sm:$0xff] }
 0x405   :  { %4202 = vmatpush1.bf16.msra.mxu0 %v5321_v33  ;;  %v695_v33 = vld [vmem:[#allocation10 + $0x3b8] sm:$0xff]  ;;  %v742_v5 = vld [vmem:[#allocation10 + $0x530] sm:$0xff] }
 0x406   :  { %4284 = vmatpush1.bf16.msra.mxu1 %v5323_v34  ;;  %4294 = vmatprep.subr.bf16.mxu0 %v4830_v35  ;;  %v703_v34 = vld [vmem:[#allocation10 + $0x3f8] sm:$0xff]  ;;  %v4925_v35 = vcombine.low %v678_v20, %v686_v22  ;;  %v750_v32 = vld [vmem:[#allocation10 + $0x570] sm:$0xff] }
 0x407   :  { %4376 = vmatprep.subr.bf16.mxu1 %v4832_v36  ;;  %v4927_v36 = vcombine.low %v679_v25, %v687_v26  ;;  %v4944_v40 = vcombine.high %v695_v33, %v703_v34  ;;  %v4943_v49 = vcombine.low %v695_v33, %v703_v34  ;;  %v4990_v10 = vcombine.high %v742_v5, %v750_v32  ;;  %v758_v37 = vld [vmem:[#allocation10 + $0x5b0] sm:$0xff] }
 0x408   :  { %4204 = vmatmul.mubr.bf16.vlgmr.msra.gmra.mrb[16].mxu0 %v5866_v13  ;;  %v766_v38 = vld [vmem:[#allocation10 + $0x5f0] sm:$0xff] }
 0x409   :  { %4286 = vmatmul.mubr.bf16.vlgmr.msra.gmra.mrb[16].mxu1 %v5866_v13  ;;  %4295 = vmatpush1.bf16.msra.mxu0 %v4829_v44  ;;  %v710_v44 = vld [vmem:[#allocation10 + $0x430] sm:$0xff]  ;;  %v5006_v12 = vcombine.high %v758_v37, %v766_v38 }
 0x40a   :  { %4326 = vmatprep.mubr.bf16.mxu0 %v5842_v55  ;;  %4377 = vmatpush1.bf16.msra.mxu1 %v4831_v48  ;;  %v719_v48 = vld [vmem:[#allocation10 + $0x478] sm:$0xff]  ;;  %v4958_v54 = vcombine.high %v710_v44, %v718_v46  ;;  %v774_v41 = vld [vmem:[#allocation10 + $0x630] sm:$0xff] }
 0x40b   :  { %4408 = vmatprep.mubr.bf16.mxu1 %v5842_v55  ;;  %4296 = vmatprep.subr.bf16.mxu0 %v4846_v30  ;;  %v4877_v55 = vcombine.low %v630_v3, %v638_v4  ;;  %v4941_v30 = vcombine.low %v694_v59, %v702_v58  ;;  %v4974_v3 = vcombine.high %v726_v62, %v734_v63  ;;  %v782_v14 = vld [vmem:[#allocation10 + $0x670] sm:$0xff] }
 0x40c   :  { %4378 = vmatprep.subr.bf16.mxu1 %v4848_v60  ;;  %v4960_v60 = vcombine.high %v711_v47, %v719_v48  ;;  %v5022_v20 = vcombine.high %v774_v41, %v782_v14  ;;  %v790_v25 = vld [vmem:[#allocation10 + $0x6b0] sm:$0xff] }
 0x40d   :  { %4297 = vmatpush1.bf16.msra.mxu0 %v4845_v0  ;;  %v727_v0 = vld [vmem:[#allocation10 + $0x4b8] sm:$0xff]  ;;  %v798_v26 = vld [vmem:[#allocation10 + $0x6f0] sm:$0xff] }
 0x40e   :  { %4379 = vmatpush1.bf16.msra.mxu1 %v4847_v1  ;;  %4298 = vmatprep.subr.bf16.mxu0 %v4862_v31  ;;  %v735_v1 = vld [vmem:[#allocation10 + $0x4f8] sm:$0xff]  ;;  %v4957_v31 = vcombine.low %v710_v44, %v718_v46  ;;  %v5038_v59 = vcombine.high %v790_v25, %v798_v26  ;;  %v806_v33 = vld [vmem:[#allocation10 + $0x730] sm:$0xff] }
 0x40f   :  { %4380 = vmatprep.subr.bf16.mxu1 %v4864_v2  ;;  %v4959_v2 = vcombine.low %v711_v47, %v719_v48  ;;  %v4976_v4 = vcombine.high %v727_v0, %v735_v1  ;;  %v814_v34 = vld [vmem:[#allocation10 + $0x770] sm:$0xff] }
 0x410   :  { %v5054_v44 = vcombine.high %v806_v33, %v814_v34  ;;  %v822_v47 = vld [vmem:[#allocation10 + $0x7b0] sm:$0xff] }
 0x411   :  { %4299 = vmatpush1.bf16.msra.mxu0 %v4861_v6  ;;  %v743_v6 = vld [vmem:[#allocation10 + $0x538] sm:$0xff]  ;;  %v830_v48 = vld [vmem:[#allocation10 + $0x7f0] sm:$0xff] }
 0x412   :  { %4381 = vmatpush1.bf16.msra.mxu1 %v4863_v7  ;;  %4300 = vmatprep.subr.bf16.mxu0 %v4878_v8  ;;  %v751_v7 = vld [vmem:[#allocation10 + $0x578] sm:$0xff]  ;;  %v4973_v8 = vcombine.low %v726_v62, %v734_v63  ;;  %v5070_v62 = vcombine.high %v822_v47, %v830_v48 }
 0x413   :  { %4382 = vmatprep.subr.bf16.mxu1 %v4880_v9  ;;  %v4975_v9 = vcombine.low %v727_v0, %v735_v1  ;;  %v4992_v11 = vcombine.high %v743_v6, %v751_v7  ;;  %v838_v0 = vld [vmem:[#allocation10 + $0x830] sm:$0xff] }
 0x414   :  { %v846_v1 = vld [vmem:[#allocation10 + $0x870] sm:$0xff] }
 0x415   :  { %4301 = vmatpush1.bf16.msra.mxu0 %v4877_v55  ;;  %v759_v55 = vld [vmem:[#allocation10 + $0x5b8] sm:$0xff] }
 0x416   :  { %4383 = vmatpush1.bf16.msra.mxu1 %v4879_v39  ;;  %4302 = vmatprep.subr.bf16.mxu0 %v4894_v42  ;;  %v767_v39 = vld [vmem:[#allocation10 + $0x5f8] sm:$0xff]  ;;  %v4989_v42 = vcombine.low %v742_v5, %v750_v32  ;;  %v5086_v5 = vcombine.high %v838_v0, %v846_v1 }
 0x417   :  { %4384 = vmatprep.subr.bf16.mxu1 %v4896_v43  ;;  %v4991_v43 = vcombine.low %v743_v6, %v751_v7  ;;  %v5008_v24 = vcombine.high %v759_v55, %v767_v39  ;;  %v854_v6 = vld [vmem:[#allocation10 + $0x8b0] sm:$0xff] }
 0x418   :  { %v862_v7 = vld [vmem:[#allocation10 + $0x8f0] sm:$0xff] }
 0x419   :  { %4303 = vmatpush1.bf16.msra.mxu0 %v4893_v15  ;;  %v775_v15 = vld [vmem:[#allocation10 + $0x638] sm:$0xff] }
 0x41a   :  { %4385 = vmatpush1.bf16.msra.mxu1 %v4895_v16  ;;  %4304 = vmatprep.subr.bf16.mxu0 %v4910_v17  ;;  %v783_v16 = vld [vmem:[#allocation10 + $0x678] sm:$0xff]  ;;  %v5005_v17 = vcombine.low %v758_v37, %v766_v38  ;;  %v5102_v37 = vcombine.high %v854_v6, %v862_v7  ;;  %v870_v38 = vld [vmem:[#allocation10 + $0x930] sm:$0xff] }
 0x41b   :  { %4386 = vmatprep.subr.bf16.mxu1 %v4912_v18  ;;  %v5007_v18 = vcombine.low %v759_v55, %v767_v39  ;;  %v5024_v22 = vcombine.high %v775_v15, %v783_v16  ;;  %v878_v55 = vld [vmem:[#allocation10 + $0x970] sm:$0xff] }
 0x41d   :  { %4305 = vmatpush1.bf16.msra.mxu0 %v4909_v27  ;;  %v791_v27 = vld [vmem:[#allocation10 + $0x6b8] sm:$0xff] }
 0x41e   :  { %4387 = vmatpush1.bf16.msra.mxu1 %v4911_v28  ;;  %4306 = vmatprep.subr.bf16.mxu0 %v4926_v57  ;;  %v799_v28 = vld [vmem:[#allocation10 + $0x6f8] sm:$0xff]  ;;  %v5021_v57 = vcombine.low %v774_v41, %v782_v14  ;;  %v5118_v41 = vcombine.high %v870_v38, %v878_v55 }
 0x41f   :  { %4388 = vmatprep.subr.bf16.mxu1 %v4928_v29  ;;  %v5023_v29 = vcombine.low %v775_v15, %v783_v16  ;;  %v5040_v58 = vcombine.high %v791_v27, %v799_v28  ;;  %v886_v15 = vld [vmem:[#allocation10 + $0x9b0] sm:$0xff] }
 0x420   :  { %v894_v16 = vld [vmem:[#allocation10 + $0x9f0] sm:$0xff] }
 0x421   :  { %4307 = vmatpush1.bf16.msra.mxu0 %v4925_v35  ;;  %v807_v35 = vld [vmem:[#allocation10 + $0x738] sm:$0xff] }
 0x422   :  { %4389 = vmatpush1.bf16.msra.mxu1 %v4927_v36  ;;  %4308 = vmatprep.subr.bf16.mxu0 %v4942_v56  ;;  %v815_v36 = vld [vmem:[#allocation10 + $0x778] sm:$0xff]  ;;  %v5037_v56 = vcombine.low %v790_v25, %v798_v26  ;;  %v902_v26 = vld [vmem:[#allocation10 + $0xa30] sm:$0xff] }
 0x423   :  { %4390 = vmatprep.subr.bf16.mxu1 %v4944_v40  ;;  %v5039_v40 = vcombine.low %v791_v27, %v799_v28  ;;  %v5056_v46 = vcombine.high %v807_v35, %v815_v36  ;;  %v910_v27 = vld [vmem:[#allocation10 + $0xa70] sm:$0xff]  ;;  %v903_v28 = vld [vmem:[#allocation10 + $0xa38] sm:$0xff] }
 0x425   :  { %4309 = vmatpush1.bf16.msra.mxu0 %v4941_v30  ;;  %v823_v30 = vld [vmem:[#allocation10 + $0x7b8] sm:$0xff] }
 0x426   :  { %4391 = vmatpush1.bf16.msra.mxu1 %v4943_v49  ;;  %4310 = vmatprep.subr.bf16.mxu0 %v4958_v54  ;;  %v831_v49 = vld [vmem:[#allocation10 + $0x7f8] sm:$0xff]  ;;  %v5053_v54 = vcombine.low %v806_v33, %v814_v34  ;;  %v918_v34 = vld [vmem:[#allocation10 + $0xab0] sm:$0xff] }
 0x427   :  { %4392 = vmatprep.subr.bf16.mxu1 %v4960_v60  ;;  %v5055_v60 = vcombine.low %v807_v35, %v815_v36  ;;  %v5072_v63 = vcombine.high %v823_v30, %v831_v49  ;;  %v926_v35 = vld [vmem:[#allocation10 + $0xaf0] sm:$0xff] }
 0x429   :  { %4311 = vmatpush1.bf16.msra.mxu0 %v4957_v31  ;;  %v839_v31 = vld [vmem:[#allocation10 + $0x838] sm:$0xff] }
 0x42a   :  { %4393 = vmatpush1.bf16.msra.mxu1 %v4959_v2  ;;  %4312 = vmatprep.subr.bf16.mxu0 %v4974_v3  ;;  %v847_v2 = vld [vmem:[#allocation10 + $0x878] sm:$0xff]  ;;  %v5069_v3 = vcombine.low %v822_v47, %v830_v48 }
 0x42b   :  { %4394 = vmatprep.subr.bf16.mxu1 %v4976_v4  ;;  %v5071_v4 = vcombine.low %v823_v30, %v831_v49  ;;  %v5088_v32 = vcombine.high %v839_v31, %v847_v2  ;;  %v5166_v30 = vcombine.high %v918_v34, %v926_v35 }
 0x42d   :  { %4313 = vmatpush1.bf16.msra.mxu0 %v4973_v8  ;;  %v5085_v8 = vcombine.low %v838_v0, %v846_v1  ;;  %v943_v0 = vld [vmem:[#allocation10 + $0xb78] sm:$0xff] }
 0x42e   :  { %4395 = vmatpush1.bf16.msra.mxu1 %v4975_v9  ;;  %4314 = vmatprep.subr.bf16.mxu0 %v4990_v10  ;;  %v855_v9 = vld [vmem:[#allocation10 + $0x8b8] sm:$0xff] }
 0x42f   :  { %4396 = vmatprep.subr.bf16.mxu1 %v4992_v11  ;;  %v863_v10 = vld [vmem:[#allocation10 + $0x8f8] sm:$0xff]  ;;  %v5087_v11 = vcombine.low %v839_v31, %v847_v2  ;;  %v5165_v2 = vcombine.low %v918_v34, %v926_v35 }
 0x430   :  { %v5104_v39 = vcombine.high %v855_v9, %v863_v10 }
 0x431   :  { %4315 = vmatpush1.bf16.msra.mxu0 %v4989_v42  ;;  %v871_v42 = vld [vmem:[#allocation10 + $0x938] sm:$0xff] }
 0x432   :  { %4397 = vmatpush1.bf16.msra.mxu1 %v4991_v43  ;;  %4316 = vmatprep.subr.bf16.mxu0 %v5006_v12  ;;  %v879_v43 = vld [vmem:[#allocation10 + $0x978] sm:$0xff]  ;;  %v5101_v12 = vcombine.low %v854_v6, %v862_v7  ;;  %v950_v7 = vld [vmem:[#allocation10 + $0xbb0] sm:$0xff] }
 0x433   :  { %4398 = vmatprep.subr.bf16.mxu1 %v5008_v24  ;;  %v5103_v24 = vcombine.low %v855_v9, %v863_v10  ;;  %v5120_v14 = vcombine.high %v871_v42, %v879_v43 }
 0x435   :  { %4317 = vmatpush1.bf16.msra.mxu0 %v5005_v17  ;;  %v887_v17 = vld [vmem:[#allocation10 + $0x9b8] sm:$0xff] }
 0x436   :  { %4399 = vmatpush1.bf16.msra.mxu1 %v5007_v18  ;;  %4318 = vmatprep.subr.bf16.mxu0 %v5022_v20  ;;  %v895_v18 = vld [vmem:[#allocation10 + $0x9f8] sm:$0xff]  ;;  %v5117_v20 = vcombine.low %v870_v38, %v878_v55 }
 0x437   :  { %4400 = vmatprep.subr.bf16.mxu1 %v5024_v22  ;;  %v5134_v22 = vcombine.high %v886_v15, %v894_v16  ;;  %v5136_v25 = vcombine.high %v887_v17, %v895_v18  ;;  %v959_v38 = vld [vmem:[#allocation10 + $0xbf8] sm:$0xff] }
 0x439   :  { %4319 = vmatpush1.bf16.msra.mxu0 %v5021_v57  ;;  %v911_v57 = vld [vmem:[#allocation10 + $0xa78] sm:$0xff] }
 0x43a   :  { %4401 = vmatpush1.bf16.msra.mxu1 %v5023_v29  ;;  %4320 = vmatprep.subr.bf16.mxu0 %v5038_v59  ;;  %v5133_v29 = vcombine.low %v886_v15, %v894_v16  ;;  %v5135_v59 = vcombine.low %v887_v17, %v895_v18  ;;  %v5152_v33 = vcombine.high %v903_v28, %v911_v57 }
 0x43b   :  { %4402 = vmatprep.subr.bf16.mxu1 %v5040_v58  ;;  %v5150_v58 = vcombine.high %v902_v26, %v910_v27  ;;  %v5151_v47 = vcombine.low %v903_v28, %v911_v57  ;;  %v967_v57 = vld [vmem:[#allocation10 + $0xc38] sm:$0xff] }
 0x43d   :  { %4321 = vmatpush1.bf16.msra.mxu0 %v5037_v56  ;;  %v919_v56 = vld [vmem:[#allocation10 + $0xab8] sm:$0xff] }
 0x43e   :  { %4403 = vmatpush1.bf16.msra.mxu1 %v5039_v40  ;;  %4322 = vmatprep.subr.bf16.mxu0 %v5054_v44  ;;  %v927_v40 = vld [vmem:[#allocation10 + $0xaf8] sm:$0xff]  ;;  %v5149_v44 = vcombine.low %v902_v26, %v910_v27  ;;  %v974_v26 = vld [vmem:[#allocation10 + $0xc70] sm:$0xff] }
 0x43f   :  { %4404 = vmatprep.subr.bf16.mxu1 %v5056_v46  ;;  %v5168_v49 = vcombine.high %v919_v56, %v927_v40 }
 0x441   :  { %4323 = vmatpush1.bf16.msra.mxu0 %v5053_v54  ;;  %v934_v54 = vld [vmem:[#allocation10 + $0xb30] sm:$0xff] }
 0x442   :  { %4405 = vmatpush1.bf16.msra.mxu1 %v5055_v60  ;;  %4324 = vmatprep.subr.bf16.mxu0 %v5070_v62  ;;  %v942_v60 = vld [vmem:[#allocation10 + $0xb70] sm:$0xff] }
 0x443   :  { %4406 = vmatprep.subr.bf16.mxu1 %v5072_v63  ;;  %v935_v63 = vld [vmem:[#allocation10 + $0xb38] sm:$0xff] }
 0x444   :  { %v5184_v6 = vcombine.high %v935_v63, %v943_v0 }
 0x445   :  { %4325 = vmatpush1.bf16.msra.mxu0 %v5069_v3 }
 0x446   :  { %4407 = vmatpush1.bf16.msra.mxu1 %v5071_v4  ;;  %4335 = vmatprep.subr.bf16.mxu0 %v5086_v5  ;;  %v5167_v4 = vcombine.low %v919_v56, %v927_v40  ;;  %v5182_v5 = vcombine.high %v934_v54, %v942_v60 }
 0x447   :  { %4417 = vmatprep.subr.bf16.mxu1 %v5088_v32 }
 0x448   :  { %4327 = vmatmul.mubr.bf16.vlgmr.msra.gmra.mrb[20].mxu0 %v5844_v61 }
 0x449   :  { %4409 = vmatmul.mubr.bf16.vlgmr.msra.gmra.mrb[20].mxu1 %v5844_v61  ;;  %4336 = vmatpush1.bf16.msra.mxu0 %v5085_v8  ;;  %v5119_v61 = vcombine.low %v871_v42, %v879_v43  ;;  %v958_v8 = vld [vmem:[#allocation10 + $0xbf0] sm:$0xff] }
 0x44a   :  { %4367 = vmatprep.mubr.bf16.mxu0 %v5850_v23  ;;  %4418 = vmatpush1.bf16.msra.mxu1 %v5087_v11  ;;  %v5198_v17 = vcombine.high %v950_v7, %v958_v8 }
 0x44b   :  { %4449 = vmatprep.mubr.bf16.mxu1 %v5850_v23  ;;  %4337 = vmatprep.subr.bf16.mxu0 %v5102_v37  ;;  %v1091_v23 = vunpack.c.h.bf16 %v5884_v21  ;;  %v951_v37 = vld [vmem:[#allocation10 + $0xbb8] sm:$0xff] }
 0x44c   :  { %4419 = vmatprep.subr.bf16.mxu1 %v5104_v39  ;;  %v5199_v35 = vcombine.low %v951_v37, %v959_v38 }
 0x44d   :  { %4338 = vmatpush1.bf16.msra.mxu0 %v5101_v12  ;;  %v1117_v36 = vrot.slane %v1091_v23, %v5809_v50  ;;  %v1125_v46 = vrot.slane %v1091_v23, %v5815_v52  ;;  %v1121_v21 = vrot.slane %v1091_v23, %v5812_v51  ;;  %v1129_v48 = vrot.slane %v1091_v23, %v5818_v53  ;;  %v975_v23 = vld [vmem:[#allocation10 + $0xc78] sm:$0xff] }
 0x44e   :  { %4420 = vmatpush1.bf16.msra.mxu1 %v5103_v24  ;;  %4339 = vmatprep.subr.bf16.mxu0 %v5118_v41  ;;  %v5181_v12 = vcombine.low %v934_v54, %v942_v60  ;;  %v5183_v24 = vcombine.low %v935_v63, %v943_v0  ;;  %v5964_v54 = vunpack.c.h.bf16 %v5905_v45  ;;  %v5215_v60 = vcombine.low %v967_v57, %v975_v23  ;;  %v998_v0 = vld [vmem:[#allocation10 + $0xd30] sm:$0xff] }
 0x44f   :  { %4421 = vmatprep.subr.bf16.mxu1 %v5120_v14  ;;  %v1197_v62 = vrot.slane %v1117_v36, %v5809_v50  ;;  %v1205_v1 = vrot.slane %v1125_v46, %v5809_v50  ;;  %v1201_v31 = vrot.slane %v1121_v21, %v5809_v50  ;;  %v1209_v3 = vrot.slane %v1129_v48, %v5809_v50  ;;  %v982_v46 = vld [vmem:[#allocation10 + $0xcb0] sm:$0xff]  ;;  %v983_v48 = vld [vmem:[#allocation10 + $0xcb8] sm:$0xff] }
 0x450   :  { %v990_v21 = vld [vmem:[#allocation10 + $0xcf0] sm:$0xff] }
 0x451   :  { %4340 = vmatpush1.bf16.msra.mxu0 %v5117_v20 }
 0x452   :  { %4422 = vmatpush1.bf16.msra.mxu1 %v5119_v61  ;;  %4341 = vmatprep.subr.bf16.mxu0 %v5134_v22  ;;  %v5200_v22 = vcombine.high %v951_v37, %v959_v38  ;;  %v4611_v37 = vrot.slane %v5964_v54, %v5818_v53 }
 0x453   :  { %4423 = vmatprep.subr.bf16.mxu1 %v5136_v25  ;;  %v966_v25 = vld [vmem:[#allocation10 + $0xc30] sm:$0xff] }
 0x454   :  { %v5214_v36 = vcombine.high %v966_v25, %v974_v26 }
 0x455   :  { %4342 = vmatpush1.bf16.msra.mxu0 %v5133_v29 }
 0x456   :  { %4424 = vmatpush1.bf16.msra.mxu1 %v5135_v59  ;;  %4343 = vmatprep.subr.bf16.mxu0 %v5150_v58  ;;  %v5197_v58 = vcombine.low %v950_v7, %v958_v8  ;;  %v1014_v7 = vld [vmem:[#allocation10 + $0xdb0] sm:$0xff] }
 0x457   :  { %4425 = vmatprep.subr.bf16.mxu1 %v5152_v33  ;;  %v1022_v8 = vld [vmem:[#allocation10 + $0xdf0] sm:$0xff] }
 0x459   :  { %4344 = vmatpush1.bf16.msra.mxu0 %v5149_v44  ;;  %v5216_v44 = vcombine.high %v967_v57, %v975_v23 }
 0x45a   :  { %4426 = vmatpush1.bf16.msra.mxu1 %v5151_v47  ;;  %4345 = vmatprep.subr.bf16.mxu0 %v5166_v30  ;;  %v991_v30 = vld [vmem:[#allocation10 + $0xcf8] sm:$0xff] }
 0x45b   :  { %v4041_v32 = vpop.f32.mrb[12].mxu0  ;;  %4427 = vmatprep.subr.bf16.mxu1 %v5168_v49  ;;  %v5213_v49 = vcombine.low %v966_v25, %v974_v26  ;;  %v5232_v63 = vcombine.high %v983_v48, %v991_v30  ;;  %v5231_v45 = vcombine.low %v983_v48, %v991_v30  ;;  %v5261_v25 = vcombine.low %v1014_v7, %v1022_v8  ;;  %v1031_v26 = vld [vmem:[#allocation10 + $0xe38] sm:$0xff]  ;;  %v1054_v48 = vld [vmem:[#allocation10 + $0xef0] sm:$0xff] }
 0x45c   :  { %v5333_v9 = vadd.f32 %v4041_v32, %v1197_v62  ;;  %v4123_v10 = vpop.f32.mrb[12].mxu1  ;;  %v4043_v11 = vpop.f32.mrb[13].mxu0  ;;  %v5230_v62 = vcombine.high %v982_v46, %v990_v21  ;;  %v4607_v32 = vrot.slane %v5964_v54, %v5815_v52 }
 0x45d   :  { %v5335_v55 = vadd.f32 %v4123_v10, %v1205_v1  ;;  %v5334_v39 = vadd.f32 %v4043_v11, %v1201_v31  ;;  %v4125_v42 = vpop.f32.mrb[13].mxu1  ;;  %v4045_v43 = vpop.f32.mrb[14].mxu0  ;;  %4346 = vmatpush1.bf16.msra.mxu0 %v5165_v2  ;;  %v1006_v1 = vld [vmem:[#allocation10 + $0xd70] sm:$0xff]  ;;  %v999_v31 = vld [vmem:[#allocation10 + $0xd38] sm:$0xff] }
 0x45e   :  { %v4462_v41 = vpack.c.bf16 %v5333_v9, %v5333_v9  ;;  %v5336_v14 = vadd.f32 %v4125_v42, %v1209_v3  ;;  %v4127_v15 = vpop.f32.mrb[14].mxu1  ;;  %4428 = vmatpush1.bf16.msra.mxu1 %v5167_v4  ;;  %v4046_v16 = vpop.f32.mrb[15].mxu0  ;;  %4347 = vmatprep.subr.bf16.mxu0 %v5182_v5  ;;  %v1007_v2 = vld [vmem:[#allocation10 + $0xd78] sm:$0xff]  ;;  %v5229_v3 = vcombine.low %v982_v46, %v990_v21 }
 0x45f   :  { %v4464_v18 = vpack.c.bf16 %v5335_v55, %v5335_v55  ;;  %v4463_v20 = vpack.c.bf16 %v5334_v39, %v5334_v39  ;;  %v4128_v61 = vpop.f32.mrb[15].mxu1  ;;  %4429 = vmatprep.subr.bf16.mxu1 %v5184_v6  ;;  %v4599_v4 = vrot.slane %v5964_v54, %v5809_v50  ;;  %v5246_v5 = vcombine.high %v998_v0, %v1006_v1  ;;  %v1015_v10 = vld [vmem:[#allocation10 + $0xdb8] sm:$0xff]  ;;  %v1030_v16 = vld [vmem:[#allocation10 + $0xe30] sm:$0xff] }
 0x460   :  { %v5951_v27 = vunpack.c.l.bf16 %v4462_v41  ;;  %v4465_v28 = vpack.c.bf16 %v5336_v14, %v5336_v14  ;;  %v5248_v6 = vcombine.high %v999_v31, %v1007_v2  ;;  %v4603_v9 = vrot.slane %v5964_v54, %v5812_v51  ;;  %v1023_v11 = vld [vmem:[#allocation10 + $0xdf8] sm:$0xff] }
 0x461   :  { %v5953_v29 = vunpack.c.l.bf16 %v4464_v18  ;;  %v5955_v59 = vunpack.c.l.bf16 %v4463_v20  ;;  %4348 = vmatpush1.bf16.msra.mxu0 %v5181_v12  ;;  %v5245_v38 = vcombine.low %v998_v0, %v1006_v1  ;;  %v4679_v39 = vrot.slane %v4599_v4, %v5809_v50  ;;  %v1062_v4 = vld [vmem:[#allocation10 + $0xf30] sm:$0xff] }
 0x462   :  { %v4510_v33 = vmul.f32 0.70710677, %v5951_v27  ;;  %v5958_v34 = vunpack.c.l.bf16 %v4465_v28  ;;  %4430 = vmatpush1.bf16.msra.mxu1 %v5183_v24  ;;  %4349 = vmatprep.subr.bf16.mxu0 %v5198_v17  ;;  %v5247_v42 = vcombine.low %v999_v31, %v1007_v2  ;;  %v5262_v43 = vcombine.high %v1014_v7, %v1022_v8  ;;  %v1038_v17 = vld [vmem:[#allocation10 + $0xe70] sm:$0xff]  ;;  %v1039_v28 = vld [vmem:[#allocation10 + $0xe78] sm:$0xff] }
 0x463   :  { %v4512_v56 = vmul.f32 0.70710677, %v5953_v29  ;;  %v4511_v40 = vmul.f32 0.70710677, %v5955_v59  ;;  %4431 = vmatprep.subr.bf16.mxu1 %v5200_v22  ;;  %v4494_v24 = vmul.f32 0.5, %v5951_v27  ;;  %v4687_v14 = vrot.slane %v4607_v32, %v5809_v50  ;;  %v1063_v32 = vld [vmem:[#allocation10 + $0xf38] sm:$0xff] }
 0x464   :  { %5417 = verf.f32 %v4510_v33  ;;  %v4513_v47 = vmul.f32 0.70710677, %v5958_v34  ;;  %v5264_v15 = vcombine.high %v1015_v10, %v1023_v11  ;;  %v4496_v20 = vmul.f32 0.5, %v5953_v29 }
 0x465   :  { %5419 = verf.f32 %v4512_v56  ;;  %4350 = vmatpush1.bf16.msra.mxu0 %v5197_v58  ;;  %v4683_v22 = vrot.slane %v4603_v9, %v5809_v50  ;;  %v4495_v27 = vmul.f32 0.5, %v5955_v59  ;;  %v5263_v33 = vcombine.low %v1015_v10, %v1023_v11  ;;  %v1047_v59 = vld [vmem:[#allocation10 + $0xeb8] sm:$0xff] }
 0x466   :  { %5421 = verf.f32 %v4511_v40  ;;  %4432 = vmatpush1.bf16.msra.mxu1 %v5199_v35  ;;  %4351 = vmatprep.subr.bf16.mxu0 %v5214_v36  ;;  %v4497_v36 = vmul.f32 0.5, %v5958_v34  ;;  %v5278_v29 = vcombine.high %v1030_v16, %v1038_v17  ;;  %v4691_v46 = vrot.slane %v4611_v37, %v5809_v50 }
 0x467   :  { %5423 = verf.f32 %v4513_v47  ;;  %4433 = vmatprep.subr.bf16.mxu1 %v5216_v44  ;;  %v5280_v21 = vcombine.high %v1031_v26, %v1039_v28  ;;  %v1046_v47 = vld [vmem:[#allocation10 + $0xeb0] sm:$0xff]  ;;  %v5277_v34 = vcombine.low %v1030_v16, %v1038_v17  ;;  %v5279_v0 = vcombine.low %v1031_v26, %v1039_v28  ;;  %v5991_v17 = vld [vmem:[#allocation12 + $0x8] sm:$0xff] }
 0x468   :  { %v5294_v1 = vcombine.high %v1046_v47, %v1054_v48  ;;  %v5293_v8 = vcombine.low %v1046_v47, %v1054_v48 }
 0x469   :  { %4352 = vmatpush1.bf16.msra.mxu0 %v5213_v49  ;;  %v1055_v49 = vld [vmem:[#allocation10 + $0xef8] sm:$0xff] }
 0x46a   :  { %4434 = vmatpush1.bf16.msra.mxu1 %v5215_v60  ;;  %4353 = vmatprep.subr.bf16.mxu0 %v5230_v62 }
 0x46b   :  { %4435 = vmatprep.subr.bf16.mxu1 %v5232_v63 }
 0x46d   :  { %4354 = vmatpush1.bf16.msra.mxu0 %v5229_v3  ;;  %v5296_v3 = vcombine.high %v1047_v59, %v1055_v49 }
 0x46e   :  { %v5418_v55 = vpop.eup %5417  ;;  %4436 = vmatpush1.bf16.msra.mxu1 %v5231_v45  ;;  %4355 = vmatprep.subr.bf16.mxu0 %v5246_v5  ;;  %v1070_v45 = vld [vmem:[#allocation10 + $0xf70] sm:$0xff] }
 0x46f   :  { %v5420_v12 = vpop.eup %5419  ;;  %v4542_v41 = vadd.f32 1.0, %v5418_v55  ;;  %4437 = vmatprep.subr.bf16.mxu1 %v5248_v6  ;;  %v1071_v6 = vld [vmem:[#allocation10 + $0xf78] sm:$0xff]  ;;  %v5310_v10 = vcombine.high %v1062_v4, %v1070_v45  ;;  %v1086_v55 = vld [vmem:[#allocation10 + $0xff0] sm:$0xff] }
 0x470   :  { %v5422_v18 = vpop.eup %5421  ;;  %v4544_v61 = vadd.f32 1.0, %v5420_v12  ;;  %v5312_v37 = vcombine.high %v1063_v32, %v1071_v6  ;;  %v5309_v12 = vcombine.low %v1062_v4, %v1070_v45 }
 0x471   :  { %v5424_v57 = vpop.eup %5423  ;;  %v4558_v23 = vmul.f32 %v4542_v41, %v4494_v24  ;;  %v4543_v58 = vadd.f32 1.0, %v5422_v18  ;;  %4356 = vmatpush1.bf16.msra.mxu0 %v5245_v38  ;;  %v1078_v38 = vld [vmem:[#allocation10 + $0xfb0] sm:$0xff]  ;;  %v5311_v24 = vcombine.low %v1063_v32, %v1071_v6  ;;  %v1092_v18 = vunpack.c.l.bf16 %v5991_v17 }
 0x472   :  { %v4560_v35 = vmul.f32 %v4544_v61, %v4496_v20  ;;  %v4545_v56 = vadd.f32 1.0, %v5424_v57  ;;  %4438 = vmatpush1.bf16.msra.mxu1 %v5247_v42  ;;  %4357 = vmatprep.subr.bf16.mxu0 %v5262_v43  ;;  %v1079_v42 = vld [vmem:[#allocation10 + $0xfb8] sm:$0xff]  ;;  %v5326_v41 = vcombine.high %v1078_v38, %v1086_v55 }
 0x473   :  { %v4728_v40 = vmul.f32 %v4679_v39, %v4558_v23  ;;  %v4559_v44 = vmul.f32 %v4543_v58, %v4495_v27  ;;  %4439 = vmatprep.subr.bf16.mxu1 %v5264_v15  ;;  %v1087_v43 = vld [vmem:[#allocation10 + $0xff8] sm:$0xff]  ;;  %v5325_v15 = vcombine.low %v1078_v38, %v1086_v55  ;;  %v1133_v20 = vrot.slane %v1092_v18, %v5809_v50 }
 0x474   :  { %v4561_v30 = vmul.f32 %v4545_v56, %v4497_v36  ;;  %v4730_v60 = vmul.f32 %v4687_v14, %v4560_v35  ;;  %v5328_v14 = vcombine.high %v1079_v42, %v1087_v43  ;;  %v5327_v16 = vcombine.low %v1079_v42, %v1087_v43 }
 0x475   :  { %v4747_v54 = vsel %vm421_vm6, %v4728_v40, 0.0  ;;  %v4729_v62 = vmul.f32 %v4683_v22, %v4559_v44  ;;  %4358 = vmatpush1.bf16.msra.mxu0 %v5261_v25  ;;  %v1141_v61 = vrot.slane %v1092_v18, %v5815_v52  ;;  %v1137_v22 = vrot.slane %v1092_v18, %v5812_v51 }
 0x476   :  { %v4748_v63 = vadd.f32 %v4747_v54, %v5932_v19  ;;  %4440 = vmatpush1.bf16.msra.mxu1 %v5263_v33  ;;  %4359 = vmatprep.subr.bf16.mxu0 %v5278_v29  ;;  %v4731_v2 = vmul.f32 %v4691_v46, %v4561_v30  ;;  %v4751_v7 = vsel %vm421_vm6, %v4730_v60, 0.0  ;;  %v5295_v19 = vcombine.low %v1047_v59, %v1055_v49 }
 0x477   :  { %v4749_v31 = vsel %vm421_vm6, %v4729_v62, 0.0  ;;  %4441 = vmatprep.subr.bf16.mxu1 %v5280_v21  ;;  %v1145_v25 = vrot.slane %v1092_v18, %v5818_v53  ;;  %v1213_v26 = vrot.slane %v1133_v20, %v5809_v50  ;;  %v1221_v28 = vrot.slane %v1141_v61, %v5809_v50 }
 0x478   :  { %v4750_v5 = vadd.f32 %v4749_v31, %v4748_v63  ;;  %v4753_v11 = vsel %vm421_vm6, %v4731_v2, 0.0  ;;  %v1217_v57 = vrot.slane %v1137_v22, %v5809_v50 }
 0x479   :  { %4360 = vmatpush1.bf16.msra.mxu0 %v5277_v34 }
 0x47a   :  { %v4752_v9 = vadd.f32 %v4751_v7, %v4750_v5  ;;  %4442 = vmatpush1.bf16.msra.mxu1 %v5279_v0  ;;  %4361 = vmatprep.subr.bf16.mxu0 %v5294_v1  ;;  %v6002_v1 = vld [vmem:[#allocation13 + $0x8] sm:$0xff] }
 0x47b   :  { %4443 = vmatprep.subr.bf16.mxu1 %v5296_v3  ;;  %v4574_v2 = vunpack.c.l.bf16 %v6002_v1 }
 0x47c   :  { %v5987_v39 = vadd.f32 %v4753_v11, %v4752_v9 }
 0x47d   :  { %4362 = vmatpush1.bf16.msra.mxu0 %v5293_v8  ;;  %v4615_v3 = vrot.slane %v4574_v2, %v5809_v50  ;;  %v4623_v4 = vrot.slane %v4574_v2, %v5815_v52  ;;  %v4619_v45 = vrot.slane %v4574_v2, %v5812_v51  ;;  %v4627_v9 = vrot.slane %v4574_v2, %v5818_v53 }
 0x47e   :  { %4444 = vmatpush1.bf16.msra.mxu1 %v5295_v19  ;;  %4363 = vmatprep.subr.bf16.mxu0 %v5310_v10 }
 0x47f   :  { %4445 = vmatprep.subr.bf16.mxu1 %v5312_v37  ;;  %v4695_v8 = vrot.slane %v4615_v3, %v5809_v50  ;;  %v4703_v37 = vrot.slane %v4623_v4, %v5809_v50  ;;  %v4707_v18 = vrot.slane %v4627_v9, %v5809_v50 }
 0x481   :  { %4364 = vmatpush1.bf16.msra.mxu0 %v5309_v12  ;;  %v4699_v12 = vrot.slane %v4619_v45, %v5809_v50 }
 0x482   :  { %4446 = vmatpush1.bf16.msra.mxu1 %v5311_v24  ;;  %4365 = vmatprep.subr.bf16.mxu0 %v5326_v41 }
 0x483   :  { %4447 = vmatprep.subr.bf16.mxu1 %v5328_v14 }
 0x485   :  { %4366 = vmatpush1.bf16.msra.mxu0 %v5325_v15 }
 0x486   :  { %4448 = vmatpush1.bf16.msra.mxu1 %v5327_v16 }
 0x488   :  { %4368 = vmatmul.mubr.bf16.vlgmr.msra.gmra.mrb[20].mxu0 %v5866_v13 }
 0x489   :  { %4450 = vmatmul.mubr.bf16.vlgmr.msra.gmra.mrb[20].mxu1 %v5866_v13  ;;  %v1225_v13 = vrot.slane %v1145_v25, %v5809_v50 }
 0x4db   :  { %v4205_v23 = vpop.f32.mrb[16].mxu0 }
 0x4dc   :  { %v5337_v27 = vadd.f32 %v4205_v23, %v1213_v26  ;;  %v4287_v58 = vpop.f32.mrb[16].mxu1  ;;  %v4207_v33 = vpop.f32.mrb[17].mxu0 }
 0x4dd   :  { %v5339_v35 = vadd.f32 %v4287_v58, %v1221_v28  ;;  %v5338_v36 = vadd.f32 %v4207_v33, %v1217_v57  ;;  %v4289_v56 = vpop.f32.mrb[17].mxu1  ;;  %v4209_v29 = vpop.f32.mrb[18].mxu0 }
 0x4de   :  { %v4466_v40 = vpack.c.bf16 %v5337_v27, %v5337_v27  ;;  %v5340_v44 = vadd.f32 %v4289_v56, %v1225_v13  ;;  %v4291_v46 = vpop.f32.mrb[18].mxu1  ;;  %v4210_v21 = vpop.f32.mrb[19].mxu0 }
 0x4df   :  { %v4468_v47 = vpack.c.bf16 %v5339_v35, %v5339_v35  ;;  %v4467_v48 = vpack.c.bf16 %v5338_v36, %v5338_v36  ;;  %v4292_v30 = vpop.f32.mrb[19].mxu1  ;;  %v1093_v35 = vunpack.c.h.bf16 %v5991_v17 }
 0x4e0   :  { %v4482_v59 = vunpack.c.l.bf16 %v4466_v40  ;;  %v4469_v49 = vpack.c.bf16 %v5340_v44, %v5340_v44 }
 0x4e1   :  { %v4484_v54 = vunpack.c.l.bf16 %v4468_v47  ;;  %v4483_v60 = vunpack.c.l.bf16 %v4467_v48  ;;  %v1149_v36 = vrot.slane %v1093_v35, %v5809_v50  ;;  %v1157_v56 = vrot.slane %v1093_v35, %v5815_v52 }
 0x4e2   :  { %v4514_v62 = vmul.f32 0.70710677, %v4482_v59  ;;  %v4485_v34 = vunpack.c.l.bf16 %v4469_v49  ;;  %v4498_v6 = vmul.f32 0.5, %v4482_v59  ;;  %v1153_v29 = vrot.slane %v1093_v35, %v5812_v51 }
 0x4e3   :  { %v4516_v63 = vmul.f32 0.70710677, %v4484_v54  ;;  %v4515_v0 = vmul.f32 0.70710677, %v4483_v60  ;;  %v4500_v10 = vmul.f32 0.5, %v4484_v54  ;;  %v4499_v42 = vmul.f32 0.5, %v4483_v60 }
 0x4e4   :  { %5425 = verf.f32 %v4514_v62  ;;  %v4517_v31 = vmul.f32 0.70710677, %v4485_v34  ;;  %v4501_v41 = vmul.f32 0.5, %v4485_v34  ;;  %v1229_v40 = vrot.slane %v1149_v36, %v5809_v50 }
 0x4e5   :  { %5427 = verf.f32 %v4516_v63  ;;  %v1237_v44 = vrot.slane %v1157_v56, %v5809_v50  ;;  %v1233_v46 = vrot.slane %v1153_v29, %v5809_v50 }
 0x4e6   :  { %5429 = verf.f32 %v4515_v0 }
 0x4e7   :  { %5431 = verf.f32 %v4517_v31 }
 0x4ee   :  { %v5426_v5 = vpop.eup %5425 }
 0x4ef   :  { %v5428_v32 = vpop.eup %5427  ;;  %v4546_v7 = vadd.f32 1.0, %v5426_v5 }
 0x4f0   :  { %v5430_v19 = vpop.eup %5429  ;;  %v4548_v11 = vadd.f32 1.0, %v5428_v32 }
 0x4f1   :  { %v5432_v38 = vpop.eup %5431  ;;  %v4562_v55 = vmul.f32 %v4546_v7, %v4498_v6  ;;  %v4547_v43 = vadd.f32 1.0, %v5430_v19 }
 0x4f2   :  { %v4564_v24 = vmul.f32 %v4548_v11, %v4500_v10  ;;  %v4549_v14 = vadd.f32 1.0, %v5432_v38  ;;  %v4575_v10 = vunpack.c.h.bf16 %v6002_v1 }
 0x4f3   :  { %v4732_v15 = vmul.f32 %v4695_v8, %v4562_v55  ;;  %v4563_v16 = vmul.f32 %v4547_v43, %v4499_v42 }
 0x4f4   :  { %v4565_v20 = vmul.f32 %v4549_v14, %v4501_v41  ;;  %v4734_v22 = vmul.f32 %v4703_v37, %v4564_v24  ;;  %v4631_v11 = vrot.slane %v4575_v10, %v5809_v50  ;;  %v4639_v37 = vrot.slane %v4575_v10, %v5815_v52 }
 0x4f5   :  { %v4755_v61 = vsel %vm421_vm6, %v4732_v15, 0.0  ;;  %v4733_v25 = vmul.f32 %v4699_v12, %v4563_v16  ;;  %v4635_v38 = vrot.slane %v4575_v10, %v5812_v51  ;;  %v4643_v41 = vrot.slane %v4575_v10, %v5818_v53 }
 0x4f6   :  { %v4756_v26 = vadd.f32 %v4755_v61, %v5987_v39  ;;  %v4735_v57 = vmul.f32 %v4707_v18, %v4565_v20  ;;  %v4759_v23 = vsel %vm421_vm6, %v4734_v22, 0.0  ;;  %v1161_v39 = vrot.slane %v1093_v35, %v5818_v53 }
 0x4f7   :  { %v4757_v28 = vsel %vm421_vm6, %v4733_v25, 0.0  ;;  %v4711_v24 = vrot.slane %v4631_v11, %v5809_v50  ;;  %v4719_v1 = vrot.slane %v4639_v37, %v5809_v50  ;;  %v4715_v52 = vrot.slane %v4635_v38, %v5809_v50 }
 0x4f8   :  { %v4758_v13 = vadd.f32 %v4757_v28, %v4756_v26  ;;  %v4761_v58 = vsel %vm421_vm6, %v4735_v57, 0.0  ;;  %v1241_v21 = vrot.slane %v1161_v39, %v5809_v50 }
 0x4fa   :  { %v4760_v27 = vadd.f32 %v4759_v23, %v4758_v13  ;;  %v4723_v13 = vrot.slane %v4643_v41, %v5809_v50 }
 0x4fc   :  { %v6018_v33 = vadd.f32 %v4761_v58, %v4760_v27 }
 0x55b   :  { %v4369_v47 = vpop.f32.mrb[20].mxu0 }
 0x55c   :  { %v5341_v48 = vadd.f32 %v4369_v47, %v1229_v40  ;;  %v4451_v30 = vpop.f32.mrb[20].mxu1  ;;  %v4371_v17 = vpop.f32.mrb[21].mxu0 }
 0x55d   :  { %v5343_v59 = vadd.f32 %v4451_v30, %v1237_v44  ;;  %v5342_v49 = vadd.f32 %v4371_v17, %v1233_v46  ;;  %v4453_v54 = vpop.f32.mrb[21].mxu1  ;;  %v4373_v60 = vpop.f32.mrb[22].mxu0 }
 0x55e   :  { %v4470_v62 = vpack.c.bf16 %v5341_v48, %v5341_v48  ;;  %v5344_v34 = vadd.f32 %v4453_v54, %v1241_v21  ;;  %v4455_v63 = vpop.f32.mrb[22].mxu1  ;;  %v4374_v0 = vpop.f32.mrb[23].mxu0  ;;  %v4773_v21 = vld [vmem:[#allocation3] sm:$0x1] }
 0x55f   :  { %v4472_v31 = vpack.c.bf16 %v5343_v59, %v5343_v59  ;;  %v4471_v2 = vpack.c.bf16 %v5342_v49, %v5342_v49  ;;  %v4456_v3 = vpop.f32.mrb[23].mxu1  ;;  %v4774_v47 = vunpack.c.l.bf16 %v4773_v21 }
 0x560   :  { %v4486_v4 = vunpack.c.l.bf16 %v4470_v62  ;;  %v4473_v45 = vpack.c.bf16 %v5344_v34, %v5344_v34 }
 0x561   :  { %v4488_v5 = vunpack.c.l.bf16 %v4472_v31  ;;  %v4487_v32 = vunpack.c.l.bf16 %v4471_v2  ;;  %v4778_v48 = vrot.slane %v4774_v47, %v5809_v50 }
 0x562   :  { %v4518_v6 = vmul.f32 0.70710677, %v4486_v4  ;;  %v4489_v7 = vunpack.c.l.bf16 %v4473_v45  ;;  %v4502_v43 = vmul.f32 0.5, %v4486_v4 }
 0x563   :  { %v4520_v8 = vmul.f32 0.70710677, %v4488_v5  ;;  %v4519_v9 = vmul.f32 0.70710677, %v4487_v32  ;;  %v4504_v15 = vmul.f32 0.5, %v4488_v5  ;;  %v4503_v61 = vmul.f32 0.5, %v4487_v32 }
 0x564   :  { %5433 = verf.f32 %v4518_v6  ;;  %v4521_v19 = vmul.f32 0.70710677, %v4489_v7  ;;  %v4505_v25 = vmul.f32 0.5, %v4489_v7 }
 0x565   :  { %5435 = verf.f32 %v4520_v8 }
 0x566   :  { %5437 = verf.f32 %v4519_v9 }
 0x567   :  { %5439 = verf.f32 %v4521_v19 }
 0x56e   :  { %v5434_v55 = vpop.eup %5433 }
 0x56f   :  { %v5436_v42 = vpop.eup %5435  ;;  %v4550_v12 = vadd.f32 1.0, %v5434_v55 }
 0x570   :  { %v5438_v14 = vpop.eup %5437  ;;  %v4552_v16 = vadd.f32 1.0, %v5436_v42 }
 0x571   :  { %v5440_v18 = vpop.eup %5439  ;;  %v4566_v20 = vmul.f32 %v4550_v12, %v4502_v43  ;;  %v4551_v22 = vadd.f32 1.0, %v5438_v14 }
 0x572   :  { %v4568_v51 = vmul.f32 %v4552_v16, %v4504_v15  ;;  %v4553_v26 = vadd.f32 1.0, %v5440_v18 }
 0x573   :  { %v4736_v28 = vmul.f32 %v4711_v24, %v4566_v20  ;;  %v4567_v57 = vmul.f32 %v4551_v22, %v4503_v61 }
 0x574   :  { %v4569_v23 = vmul.f32 %v4553_v26, %v4505_v25  ;;  %v4738_v27 = vmul.f32 %v4719_v1, %v4568_v51 }
 0x575   :  { %v4737_v53 = vmul.f32 %v4715_v52, %v4567_v57  ;;  %v4763_v58 = vsel %vm421_vm6, %v4736_v28, 0.0 }
 0x576   :  { %v4764_v35 = vadd.f32 %v4763_v58, %v6018_v33  ;;  %v4739_v36 = vmul.f32 %v4723_v13, %v4569_v23  ;;  %v4767_v39 = vsel %vm421_vm6, %v4738_v27, 0.0 }
 0x577   :  { %v4765_v56 = vsel %vm421_vm6, %v4737_v53, 0.0 }
 0x578   :  { %v4766_v29 = vadd.f32 %v4765_v56, %v4764_v35  ;;  %v4769_v44 = vsel %vm421_vm6, %v4739_v36, 0.0 }
 0x57a   :  { %v4768_v40 = vadd.f32 %v4767_v39, %v4766_v29 }
 0x57c   :  { %v4770_v46 = vadd.f32 %v4769_v44, %v4768_v40 }
 0x57e   :  { %4771 = vadd.xlane.f32.xlu1 %v4770_v46 }
 0x60b   :  { %v4772_v30 = vpop.xlane.xlu1 %4771 }
 0x60c   :  { %v4779_v17 = vadd.f32 %v4778_v48, %v4772_v30 }
 0x60e   :  { %v4780_v33 = vpack.c.bf16 %v4779_v17, %v4779_v17 }
 0x610   :  { %4782 = vst.msk [vmem:[#allocation15] sm:$0x1] %vm4781_vm7, %v4780_v33 }
 0x611   :  { %5584 = shalt.err (!%p5581_p10)
}
 0x612   :  { %s5585_s26 = scalar_lea.hbm %s6063_s7, 16 }
 0x613   :  { %p5586_p11 = scmp.ne.s32.totalorder %s6063_s7, %s5585_s26  ;;  %p5589_p12 = scmp.lt.u32.totalorder %s5585_s26, %s6063_s7 }
 0x615   :  { %p5591_p13 = pnand %p5589_p12, %p5586_p11 }
 0x617   :  { %5594 = shalt.err (!%p5591_p13)
}
 0x618   :  { %4792 = dma.vmem_to_hbm [thread:$0]  %s4790_s23, 16, %s6063_s7, [#allocation6]  }
 0x619   :  { %5603 = dma.done.wait [#allocation6], 16  }
 0x61a   :  { %5604 = vsyncadd [#allocation6], 4294967280 }
 0x61b   :  { %4796 = vsyncpa [#allocation5], 1 }
 0x61c   :  { %4797 = vsyncpa [#allocation8], 1 }
 0x61d   :  { %4798 = vsyncpa [#allocation11], 1 }
 0x61e   :  { %4799 = vsyncpa [#allocation14], 1 }
 0x61f   :  { %4800 = vsyncpa [#allocation6], 1 }

</bundles_post_ra>
